<compile_context>
chip_gen: v7x
topology: tpu7x:2x2x1
jax: 0.10.0
libtpu: 0.0.40
codegen_flags: <defaults>
</compile_context>

<pallas_src>
import functools

import jax
import jax.numpy as jnp
import numpy as np
from jax.experimental import pallas as pl
from jax.experimental.pallas import tpu as pltpu

LANE = 128                                       # channel dims padded to lane width
TAPS_3x3 = tuple((kh, kw) for kh in range(3) for kw in range(3))
TAPS_S2D = ((0, 0), (0, 1), (1, 0), (1, 1))      # 3x3/stride-2 conv over space-to-depth
TAPS_1x1 = ((0, 0),)
BN_EPS = 1e-5


def _round_up(x, m):
    return (x + m - 1) // m * m


def _pad_to(a, axis, size):
    pad = [(0, 0)] * a.ndim
    pad[axis] = (0, size - a.shape[axis])
    return jnp.pad(a, pad)


def _pick_tn(cout_p):
    """Output-channel tile: 128 on v5e (4x128^2 MXU), 256 on v6e/v7x (2x256^2)."""
    if cout_p % 256 != 0:
        return 128
    try:
        kind = jax.devices()[0].device_kind.lower()
    except Exception:
        kind = ""
    if "v5 lite" in kind or "v5e" in kind or "v5lite" in kind:
        return 128
    return 256


# ----------------------------------------------------------------------------
# Pallas kernel: implicit-GEMM conv + folded BN + optional residual + ReLU,
# writing directly into the zero-padded layout the next conv consumes.
# ----------------------------------------------------------------------------
def _fused_conv_kernel(*refs, tap_offsets, wr_in, wo, row_tiles, tn, cout_p,
                       relu, has_residual):
    if has_residual:
        x_ref, w_ref, scale_ref, bias_ref, res_ref, o_ref = refs
    else:
        x_ref, w_ref, scale_ref, bias_ref, o_ref = refs
        res_ref = None

    # Weights / BN affine are full-size VMEM-resident blocks (constant index_map);
    # slice the lane window of this Cout tile here (128-aligned slice -> free).
    if cout_p == tn:
        jt = 0
    else:
        jt = pl.multiple_of(pl.program_id(1) * tn, 128)
    scale = scale_ref[:, pl.ds(jt, tn)]                     # (1, tn) f32
    bias = bias_ref[:, pl.ds(jt, tn)]                       # (1, tn) f32

    # Zero the whole output block: halo rows/cols and row-stride padding become
    # the zero padding the NEXT conv's taps read (no host-side jnp.pad).
    o_ref[0] = jnp.zeros(o_ref.shape[1:], o_ref.dtype)

    # Tile the spatial (M) dimension in-kernel so the f32 accumulator stays
    # small (<= ~32K rows*lanes -> low vreg pressure, no big accumulator spill).
    for h0, th in row_tiles:
        tm = th * wr_in
        base = h0 * wr_in                                   # static, 8-aligned
        acc = jnp.zeros((tm, tn), jnp.float32)
        # One MXU matmul per tap from a shifted contiguous slice of the
        # VMEM-resident flat image (implicit im2col, image read from HBM once).
        for t, off in enumerate(tap_offsets):
            lhs = x_ref[0, pl.ds(base + off, tm), :]        # (tm, Cin) bf16
            rhs = w_ref[t, :, pl.ds(jt, tn)]                # (Cin, tn) bf16
            acc = acc + jnp.dot(lhs, rhs, preferred_element_type=jnp.float32)
        # Drop the (wr_in - wo) garbage wide columns, fused epilogue, and store
        # into the interior [1:1+th, 1:1+wo] of the padded output block.
        y = acc.reshape(th, wr_in, tn)[:, :wo, :]
        y = y * scale + bias                                # folded eval-mode BN
        if res_ref is not None:
            y = y + res_ref[0, 1 + h0:1 + h0 + th, 1:1 + wo, :].astype(jnp.float32)
        if relu:
            y = jnp.maximum(y, 0.0)
        o_ref[0, 1 + h0:1 + h0 + th, 1:1 + wo, :] = y.astype(o_ref.dtype)


def fused_conv(x_pad, w, scale, bias, taps, out_hw, residual=None, relu=True,
               out_dtype=jnp.bfloat16):
    """Fused conv + folded BN + optional residual + optional ReLU (implicit GEMM).

    x_pad:    (N, Hp_in, Wr_in, Cin_p) bf16; tap (dy, dx) for output (ho, wo)
              reads x_pad[:, ho+dy, wo+dx, :].  Wr_in must be a multiple of 8.
    w:        (T, Cin_p, Cout_p) bf16 per-tap weight matrices.
    scale/bias: (1, Cout_p) f32 folded BatchNorm affine.
    out_hw:   (Ho, Wo) logical output size.
    residual: (N, >=Ho+1, >=Wo+1, Cout_p) padded-layout tensor added pre-ReLU.
    Returns   (N, Ho+3, round_up(Wo+2, 8), Cout_p) in out_dtype with the valid
              data at [:, 1:Ho+1, 1:Wo+1, :] and zeros elsewhere (this is the
              halo-padded layout the next conv consumes directly).
    """
    n, hp_in, wr_in, cin = x_pad.shape
    n_taps, cin_w, cout_p = w.shape
    assert cin_w == cin and len(taps) == n_taps
    assert wr_in % 8 == 0 and cin % LANE == 0 and cout_p % LANE == 0
    ho, wo = out_hw
    dy_max = max(dy for dy, _ in taps)
    dx_max = max(dx for _, dx in taps)
    offs = tuple(dy * wr_in + dx for dy, dx in taps)

    x_flat = x_pad.reshape(n, hp_in * wr_in, cin)           # free row-major reshape
    flat_len = x_flat.shape[1]
    need = (ho + dy_max) * wr_in + dx_max
    if flat_len < need:
        # Safety net only; in-pipeline layouts already carry the slack rows.
        x_flat = jnp.pad(x_flat, ((0, 0), (0, need - flat_len), (0, 0)))
        flat_len = x_flat.shape[1]

    hp_out = ho + 3                                         # 1 top halo + 2 slack rows
    wr_out = _round_up(wo + 2, 8)

    tn = _pick_tn(cout_p)
    grid = (n, cout_p // tn)

    # In-kernel row tiling: keep the f32 accumulator at <= ~128 KiB.
    row_budget = max(8, (32 * 1024) // tn)
    th = max(1, row_budget // wr_in)
    row_tiles, h0 = [], 0
    while h0 < ho:
        row_tiles.append((h0, min(th, ho - h0)))
        h0 += th
    row_tiles = tuple(row_tiles)

    in_specs = [
        pl.BlockSpec((1, flat_len, cin), lambda i, j: (i, 0, 0)),     # per-image, reused over j
        pl.BlockSpec((n_taps, cin, cout_p), lambda i, j: (0, 0, 0)),  # VMEM-resident weights
        pl.BlockSpec((1, cout_p), lambda i, j: (0, 0)),               # resident BN scale
        pl.BlockSpec((1, cout_p), lambda i, j: (0, 0)),               # resident BN bias
    ]
    args = [x_flat, w, scale, bias]
    if residual is not None:
        rn, rh, rw, rc = residual.shape
        assert rn == n and rc == cout_p and rh >= ho + 1 and rw >= wo + 1
        in_specs.append(pl.BlockSpec((1, rh, rw, tn), lambda i, j: (i, 0, 0, j)))
        args.append(residual)
    out_specs = pl.BlockSpec((1, hp_out, wr_out, tn), lambda i, j: (i, 0, 0, j))

    kern = functools.partial(
        _fused_conv_kernel, tap_offsets=offs, wr_in=wr_in, wo=wo,
        row_tiles=row_tiles, tn=tn, cout_p=cout_p, relu=relu,
        has_residual=residual is not None)

    flops = 2 * n * (ho * wr_in) * n_taps * cin * cout_p
    bytes_accessed = (x_flat.size * 2 + w.size * 2
                      + (scale.size + bias.size) * 4
                      + n * hp_out * wr_out * cout_p * 2
                      + (residual.size * 2 if residual is not None else 0))

    return pl.pallas_call(
        kern,
        out_shape=jax.ShapeDtypeStruct((n, hp_out, wr_out, cout_p), out_dtype),
        grid=grid,
        in_specs=in_specs,
        out_specs=out_specs,
        compiler_params=pltpu.CompilerParams(
            dimension_semantics=("parallel", "parallel"),
            vmem_limit_bytes=32 * 1024 * 1024),
        cost_estimate=pl.CostEstimate(
            flops=int(flops), transcendentals=0,
            bytes_accessed=int(bytes_accessed)),
    )(*args)


# ----------------------------------------------------------------------------
# Parameter construction: per-tap weight matrices, folded BatchNorm
# ----------------------------------------------------------------------------
def _space_to_depth2(x):
    """(N, H, W, C), even H and W -> (N, H/2, W/2, 4C); channel order (p, q, ci)."""
    n, h, w, c = x.shape
    x = x.reshape(n, h // 2, 2, w // 2, 2, c)
    x = jnp.transpose(x, (0, 1, 3, 2, 4, 5))
    return x.reshape(n, h // 2, w // 2, 4 * c)


def _prep_w3x3(w_oihw, cin_p, cout_p):
    """(Cout, Cin, 3, 3) -> (9, Cin_p, Cout_p); tap order matches TAPS_3x3."""
    w = jnp.transpose(w_oihw, (2, 3, 1, 0))                 # (3,3,Cin,Cout)
    w = _pad_to(_pad_to(w, 2, cin_p), 3, cout_p)
    return w.reshape(9, cin_p, cout_p)


def _prep_w3x3_s2d(w_oihw, cin_p, cout_p):
    """Stride-2 3x3 weights -> 4-tap stride-1 weights over a space-to-depth input."""
    w = jnp.transpose(w_oihw, (2, 3, 1, 0))                 # (3,3,Cin,Cout) [kh,kw,ci,co]
    w = _pad_to(_pad_to(w, 2, cin_p), 3, cout_p)
    ws = jnp.zeros((2, 2, 2, 2, cin_p, cout_p), w.dtype)    # [a,b,p,q,ci,co]
    for kh in range(3):
        a, p = divmod(kh, 2)
        for kw in range(3):
            b, q = divmod(kw, 2)
            ws = ws.at[a, b, p, q].set(w[kh, kw])
    return ws.reshape(4, 4 * cin_p, cout_p)                 # tap index = 2a + b


def _prep_w1x1_s2d(w_oihw, cin_p, cout_p):
    """1x1 stride-2 conv over the s2d input: pixel (2ho,2wo) = (p=1,q=1) of cell (ho,wo)."""
    cout, cin = w_oihw.shape[0], w_oihw.shape[1]
    wm = jnp.zeros((4, cin_p, cout_p), jnp.bfloat16)
    wm = wm.at[3, :cin, :cout].set(jnp.transpose(w_oihw[:, :, 0, 0]).astype(jnp.bfloat16))
    return wm.reshape(1, 4 * cin_p, cout_p)


def _fold_bn_padded(gamma, beta, mean, var, cout_p, eps=BN_EPS):
    scale = gamma / jnp.sqrt(var + eps)
    bias = beta - mean * scale
    scale = _pad_to(scale, 0, cout_p).reshape(1, cout_p).astype(jnp.float32)
    bias = _pad_to(bias, 0, cout_p).reshape(1, cout_p).astype(jnp.float32)
    return scale, bias


def _init_conv(key, cout, cin, k):
    fan_in = cin * k * k
    std = (2.0 / fan_in) ** 0.5
    return jax.random.normal(key, (cout, cin, k, k), jnp.float32) * std


def _init_bn(key, c):
    k1, k2, k3, k4 = jax.random.split(key, 4)
    gamma = 1.0 + 0.1 * jax.random.normal(k1, (c,), jnp.float32)
    beta = 0.1 * jax.random.normal(k2, (c,), jnp.float32)
    mean = 0.1 * jax.random.normal(k3, (c,), jnp.float32)
    var = 1.0 + 0.1 * jax.random.uniform(k4, (c,), jnp.float32)
    return gamma, beta, mean, var


def make_basic_block_params(key, cin, cout, stride):
    cin_p, cout_p = _round_up(cin, LANE), _round_up(cout, LANE)
    ks = jax.random.split(key, 6)
    w1 = _init_conv(ks[0], cout, cin, 3).astype(jnp.bfloat16)
    bn1 = _init_bn(ks[1], cout)
    w2 = _init_conv(ks[2], cout, cout, 3).astype(jnp.bfloat16)
    bn2 = _init_bn(ks[3], cout)

    if stride == 2:
        w1m, taps1 = _prep_w3x3_s2d(w1, cin_p, cout_p), TAPS_S2D
    else:
        w1m, taps1 = _prep_w3x3(w1, cin_p, cout_p), TAPS_3x3
    s1, b1 = _fold_bn_padded(*bn1, cout_p)
    w2m = _prep_w3x3(w2, cout_p, cout_p)
    s2, b2 = _fold_bn_padded(*bn2, cout_p)

    p = dict(stride=stride, taps1=taps1, tapsd=None,
             w1=w1m.astype(jnp.bfloat16), s1=s1, b1=b1,
             w2=w2m.astype(jnp.bfloat16), s2=s2, b2=b2,
             wd=None, sd=None, bd=None,
             raw=dict(w1=w1, bn1=bn1, w2=w2, bn2=bn2, wd=None, bnd=None))

    if stride != 1 or cin != cout:
        wd = _init_conv(ks[4], cout, cin, 1).astype(jnp.bfloat16)
        bnd = _init_bn(ks[5], cout)
        if stride == 2:
            p["wd"], p["tapsd"] = _prep_w1x1_s2d(wd, cin_p, cout_p), TAPS_1x1
        else:
            wm = jnp.zeros((1, cin_p, cout_p), jnp.bfloat16)
            wm = wm.at[0, :cin, :cout].set(jnp.transpose(wd[:, :, 0, 0]))
            p["wd"], p["tapsd"] = wm, ((1, 1),)   # 1x1 over the halo-padded layout
        p["sd"], p["bd"] = _fold_bn_padded(*bnd, cout_p)
        p["raw"]["wd"], p["raw"]["bnd"] = wd, bnd
    return p


def make_conv4_params(key, nblocks, in_channels, out_channels):
    n = nblocks[2]
    keys = jax.random.split(key, n)
    params = [make_basic_block_params(keys[0], in_channels, out_channels, stride=2)]
    for i in range(1, n):
        params.append(make_basic_block_params(keys[i], out_channels, out_channels, stride=1))
    return params


# ----------------------------------------------------------------------------
# Forward: BasicBlock and Conv4 stage.  Activations stay in bf16, NHWC, with a
# zero halo and 8-aligned row stride, so no pad/slice copies between kernels.
# ----------------------------------------------------------------------------
def basic_block_forward(x_pad, hw, p):
    h, w = hw
    stride = p["stride"]
    ho, wo = h // stride, w // stride

    if stride == 2:
        n, hp, wr, _ = x_pad.shape
        assert hp % 2 == 0 and wr % 16 == 0 and hp >= h + 2
        # Space-to-depth once; conv1 (4 taps) and the 1x1 downsample (1 tap on
        # the (p=1,q=1) channel group) both consume it -> no strided gather.
        xin = _space_to_depth2(x_pad)
    else:
        xin = x_pad

    # Shortcut branch.
    if p["wd"] is not None:
        shortcut = fused_conv(xin, p["wd"], p["sd"], p["bd"], p["tapsd"],
                              (ho, wo), residual=None, relu=False)
    else:
        shortcut = x_pad                  # identity: already in padded layout

    # conv1 -> bn1 -> relu
    h1 = fused_conv(xin, p["w1"], p["s1"], p["b1"], p["taps1"], (ho, wo),
                    residual=None, relu=True)
    # conv2 -> bn2 -> (+ shortcut) -> relu
    out = fused_conv(h1, p["w2"], p["s2"], p["b2"], TAPS_3x3, (ho, wo),
                     residual=shortcut, relu=True)
    return out, (ho, wo)


def conv4_forward(x_nchw, params, out_channels):
    n, cin, h, w = x_nchw.shape
    assert h % 2 == 0 and w % 2 == 0, "stride-2 space-to-depth needs even H, W"
    cin_p = _round_up(cin, LANE)
    x = jnp.transpose(x_nchw, (0, 2, 3, 1)).astype(jnp.bfloat16)      # NCHW -> NHWC
    # First-block input: halo of 1, slack rows, row stride padded to a multiple
    # of 16 so the space-to-depth halves stay 8-sublane aligned.
    hp0, wr0 = h + 4, _round_up(w + 2, 16)
    x0 = jnp.zeros((n, hp0, wr0, cin_p), jnp.bfloat16)
    x0 = x0.at[:, 1:h + 1, 1:w + 1, :cin].set(x)

    cur, hw = x0, (h, w)
    for p in params:
        cur, hw = basic_block_forward(cur, hw, p)
    ho, wo = hw
    z = cur[:, 1:ho + 1, 1:wo + 1, :out_channels].astype(jnp.float32)
    return jnp.transpose(z, (0, 3, 1, 2))                              # NHWC -> NCHW


# ----------------------------------------------------------------------------
# Pure-JAX reference (same bf16 rounding points, f32 accumulation)
# ----------------------------------------------------------------------------
def _ref_conv(x, w_oihw, stride, pad):
    w = jnp.transpose(w_oihw.astype(jnp.float32), (2, 3, 1, 0))        # HWIO
    return jax.lax.conv_general_dilated(
        x, w, window_strides=(stride, stride),
        padding=[(pad, pad), (pad, pad)],
        dimension_numbers=("NHWC", "HWIO", "NHWC"),
        preferred_element_type=jnp.float32)


def _ref_bn(y, bn, eps=BN_EPS):
    gamma, beta, mean, var = bn
    scale = gamma / jnp.sqrt(var + eps)
    return y * scale + (beta - mean * scale)


def _q(x):  # emulate the kernel's bf16 activation storage
    return x.astype(jnp.bfloat16).astype(jnp.float32)


def _ref_basic_block(x, p):
    r, s = p["raw"], p["stride"]
    xq = _q(x)
    h1 = _q(jnp.maximum(_ref_bn(_ref_conv(xq, r["w1"], s, 1), r["bn1"]), 0.0))
    if r["wd"] is not None:
        sc = _q(_ref_bn(_ref_conv(xq, r["wd"], s, 0), r["bnd"]))
    else:
        sc = xq
    y = _ref_bn(_ref_conv(h1, r["w2"], 1, 1), r["bn2"]) + sc
    return _q(jnp.maximum(y, 0.0))


def _ref_conv4(x_nchw, params):
    x = jnp.transpose(x_nchw, (0, 2, 3, 1)).astype(jnp.float32)
    for p in params:
        x = _ref_basic_block(x, p)
    return jnp.transpose(x, (0, 3, 1, 2))


# ----------------------------------------------------------------------------
if __name__ == "__main__":
    key = jax.random.PRNGKey(0)
    k_x, k_p = jax.random.split(key)

    # conv4 stage of a ResNet-18-like net: nblocks = [2, 2, 2, 2] -> 2 BasicBlocks,
    # first block stride 2 with a 1x1-conv downsample shortcut.
    nblocks = [2, 2, 2, 2]
    in_channels, out_channels = 4, 8
    x = jax.random.normal(k_x, (2, in_channels, 16, 16), jnp.float32)   # NCHW

    params = make_conv4_params(k_p, nblocks, in_channels, out_channels)
    fwd = jax.jit(lambda inp: conv4_forward(inp, params, out_channels))
    out = jax.block_until_ready(fwd(x))

    assert out.shape == (2, out_channels, 8, 8), out.shape
    assert out.dtype == jnp.float32
    assert bool(jnp.all(jnp.isfinite(out)))

    # Correctness check against a pure-JAX reference with matching bf16 rounding.
    ref = jax.block_until_ready(jax.jit(lambda inp: _ref_conv4(inp, params))(x))
    np.testing.assert_allclose(np.asarray(out), np.asarray(ref), rtol=2e-2, atol=2e-2)

    print("KERNEL_OK")
</pallas_src>

<mosaic_0001>
module attributes {stable_mosaic.version = 11 : i64} {
  func.func @_fused_conv_kernel(%arg0: i32, %arg1: i32, %arg2: memref<1x160x512xbf16, #tpu.memory_space<vmem>>, %arg3: memref<1x512x128xbf16, #tpu.memory_space<vmem>>, %arg4: memref<1x128xf32, #tpu.memory_space<vmem>>, %arg5: memref<1x128xf32, #tpu.memory_space<vmem>>, %arg6: memref<1x11x16x128xbf16, #tpu.memory_space<vmem>>) attributes {dimension_semantics = [#tpu.dimension_semantics<parallel>, #tpu.dimension_semantics<parallel>], iteration_bounds = array<i64: 2, 1>, scalar_prefetch = 0 : i64, scratch_operands = 0 : i64, tpu.core_type = #tpu.core_type<tc>, window_params = [{transform_indices = @transform_0, window_bounds = array<i64: 1, 160, 512>}, {pipeline_mode = #tpu.pipeline_mode<synchronous>, transform_indices = @transform_1, window_bounds = array<i64: 1, 512, 128>}, {pipeline_mode = #tpu.pipeline_mode<synchronous>, transform_indices = @transform_2, window_bounds = array<i64: 1, 128>}, {pipeline_mode = #tpu.pipeline_mode<synchronous>, transform_indices = @transform_3, window_bounds = array<i64: 1, 128>}, {transform_indices = @transform_4, window_bounds = array<i64: 1, 11, 16, 128>}]} {
    %c0 = arith.constant 0 : index
    %c0_0 = arith.constant 0 : index
    %0 = vector.load %arg4[%c0, %c0_0] : memref<1x128xf32, #tpu.memory_space<vmem>>, vector<1x128xf32>
    %c0_1 = arith.constant 0 : index
    %c0_2 = arith.constant 0 : index
    %1 = vector.load %arg5[%c0_1, %c0_2] : memref<1x128xf32, #tpu.memory_space<vmem>>, vector<1x128xf32>
    %cst = arith.constant 0.000000e+00 : bf16
    %2 = vector.broadcast %cst : bf16 to vector<11x16x128xbf16>
    %c0_3 = arith.constant 0 : index
    %c0_4 = arith.constant 0 : index
    %c0_5 = arith.constant 0 : index
    %c0_6 = arith.constant 0 : index
    %3 = vector.load %arg6[%c0_3, %c0_4, %c0_5, %c0_6] : memref<1x11x16x128xbf16, #tpu.memory_space<vmem>>, vector<1x11x16x128xbf16>
    %4 = vector.shape_cast %3 : vector<1x11x16x128xbf16> to vector<11x16x128xbf16>
    %5 = vector.shape_cast %2 : vector<11x16x128xbf16> to vector<1x11x16x128xbf16>
    tpu.vector_store %arg6[%c0_3, %c0_4, %c0_5, %c0_6], %5 {strides = array<i32>} : memref<1x11x16x128xbf16, #tpu.memory_space<vmem>>, vector<1x11x16x128xbf16>,
    %cst_7 = arith.constant 0.000000e+00 : f32
    %6 = vector.broadcast %cst_7 : f32 to vector<128x128xf32>
    %c0_8 = arith.constant 0 : index
    %c0_9 = arith.constant 0 : index
    %c0_10 = arith.constant 0 : index
    %7 = vector.load %arg2[%c0_8, %c0_9, %c0_10] : memref<1x160x512xbf16, #tpu.memory_space<vmem>>, vector<1x128x512xbf16>
    %8 = vector.shape_cast %7 : vector<1x128x512xbf16> to vector<128x512xbf16>
    %c0_11 = arith.constant 0 : index
    %c0_12 = arith.constant 0 : index
    %c0_13 = arith.constant 0 : index
    %9 = vector.load %arg3[%c0_11, %c0_12, %c0_13] : memref<1x512x128xbf16, #tpu.memory_space<vmem>>, vector<1x512x128xbf16>
    %10 = vector.shape_cast %9 : vector<1x512x128xbf16> to vector<512x128xbf16>
    %cst_14 = arith.constant dense<0.000000e+00> : vector<128x128xf32>
    %11 = tpu.matmul %8, %10, %cst_14 {dimension_numbers = #tpu.dot_dimension_numbers<[1], [0], [0], [1], [0, 0, 1, 1], [], []>} : vector<128x512xbf16>, vector<512x128xbf16>, vector<128x128xf32> -> vector<128x128xf32>
    %12 = arith.addf %6, %11 : vector<128x128xf32>
    %13 = vector.shape_cast %12 : vector<128x128xf32> to vector<8x16x128xf32>
    %14 = vector.extract_strided_slice %13 {offsets = [0, 0, 0], sizes = [8, 8, 128], strides = [1, 1, 1]} : vector<8x16x128xf32> to vector<8x8x128xf32>
    %15 = vector.shape_cast %0 : vector<1x128xf32> to vector<1x1x128xf32>
    %16 = vector.broadcast %15 : vector<1x1x128xf32> to vector<8x8x128xf32>
    %17 = arith.mulf %14, %16 : vector<8x8x128xf32>
    %18 = vector.shape_cast %1 : vector<1x128xf32> to vector<1x1x128xf32>
    %19 = vector.broadcast %18 : vector<1x1x128xf32> to vector<8x8x128xf32>
    %20 = arith.addf %17, %19 : vector<8x8x128xf32>
    %21 = arith.truncf %20 : vector<8x8x128xf32> to vector<8x8x128xbf16>
    %c0_15 = arith.constant 0 : index
    %c1 = arith.constant 1 : index
    %c1_16 = arith.constant 1 : index
    %c0_17 = arith.constant 0 : index
    %22 = vector.load %arg6[%c0_15, %c1, %c1_16, %c0_17] : memref<1x11x16x128xbf16, #tpu.memory_space<vmem>>, vector<1x8x8x128xbf16>
    %23 = vector.shape_cast %22 : vector<1x8x8x128xbf16> to vector<8x8x128xbf16>
    %24 = vector.shape_cast %21 : vector<8x8x128xbf16> to vector<1x8x8x128xbf16>
    tpu.vector_store %arg6[%c0_15, %c1, %c1_16, %c0_17], %24 {strides = array<i32>} : memref<1x11x16x128xbf16, #tpu.memory_space<vmem>>, vector<1x8x8x128xbf16>,
    return
  }
  func.func @transform_0(%arg0: i32, %arg1: i32) -> (i32, i32, i32) {
    %c0_i32 = arith.constant 0 : i32
    %c0_i32_0 = arith.constant 0 : i32
    %c0_i32_1 = arith.constant 0 : i32
    return %arg0, %c0_i32, %c0_i32_0 : i32, i32, i32
  }
  func.func @transform_1(%arg0: i32, %arg1: i32) -> (i32, i32, i32) {
    %c0_i32 = arith.constant 0 : i32
    %c0_i32_0 = arith.constant 0 : i32
    %c0_i32_1 = arith.constant 0 : i32
    %c0_i32_2 = arith.constant 0 : i32
    return %c0_i32, %c0_i32_0, %c0_i32_1 : i32, i32, i32
  }
  func.func @transform_2(%arg0: i32, %arg1: i32) -> (i32, i32) {
    %c0_i32 = arith.constant 0 : i32
    %c0_i32_0 = arith.constant 0 : i32
    %c0_i32_1 = arith.constant 0 : i32
    return %c0_i32, %c0_i32_0 : i32, i32
  }
  func.func @transform_3(%arg0: i32, %arg1: i32) -> (i32, i32) {
    %c0_i32 = arith.constant 0 : i32
    %c0_i32_0 = arith.constant 0 : i32
    %c0_i32_1 = arith.constant 0 : i32
    return %c0_i32, %c0_i32_0 : i32, i32
  }
  func.func @transform_4(%arg0: i32, %arg1: i32) -> (i32, i32, i32, i32) {
    %c0_i32 = arith.constant 0 : i32
    %c0_i32_0 = arith.constant 0 : i32
    %c0_i32_1 = arith.constant 0 : i32
    return %arg0, %c0_i32, %c0_i32_0, %arg1 : i32, i32, i32, i32
  }
}

module attributes {stable_mosaic.version = 11 : i64} {
  func.func @_fused_conv_kernel(%arg0: i32, %arg1: i32, %arg2: memref<1x160x512xbf16, #tpu.memory_space<vmem>>, %arg3: memref<4x512x128xbf16, #tpu.memory_space<vmem>>, %arg4: memref<1x128xf32, #tpu.memory_space<vmem>>, %arg5: memref<1x128xf32, #tpu.memory_space<vmem>>, %arg6: memref<1x11x16x128xbf16, #tpu.memory_space<vmem>>) attributes {dimension_semantics = [#tpu.dimension_semantics<parallel>, #tpu.dimension_semantics<parallel>], iteration_bounds = array<i64: 2, 1>, scalar_prefetch = 0 : i64, scratch_operands = 0 : i64, tpu.core_type = #tpu.core_type<tc>, window_params = [{transform_indices = @transform_0, window_bounds = array<i64: 1, 160, 512>}, {pipeline_mode = #tpu.pipeline_mode<synchronous>, transform_indices = @transform_1, window_bounds = array<i64: 4, 512, 128>}, {pipeline_mode = #tpu.pipeline_mode<synchronous>, transform_indices = @transform_2, window_bounds = array<i64: 1, 128>}, {pipeline_mode = #tpu.pipeline_mode<synchronous>, transform_indices = @transform_3, window_bounds = array<i64: 1, 128>}, {transform_indices = @transform_4, window_bounds = array<i64: 1, 11, 16, 128>}]} {
    %c0 = arith.constant 0 : index
    %c0_0 = arith.constant 0 : index
    %0 = vector.load %arg4[%c0, %c0_0] : memref<1x128xf32, #tpu.memory_space<vmem>>, vector<1x128xf32>
    %c0_1 = arith.constant 0 : index
    %c0_2 = arith.constant 0 : index
    %1 = vector.load %arg5[%c0_1, %c0_2] : memref<1x128xf32, #tpu.memory_space<vmem>>, vector<1x128xf32>
    %cst = arith.constant 0.000000e+00 : bf16
    %2 = vector.broadcast %cst : bf16 to vector<11x16x128xbf16>
    %c0_3 = arith.constant 0 : index
    %c0_4 = arith.constant 0 : index
    %c0_5 = arith.constant 0 : index
    %c0_6 = arith.constant 0 : index
    %3 = vector.load %arg6[%c0_3, %c0_4, %c0_5, %c0_6] : memref<1x11x16x128xbf16, #tpu.memory_space<vmem>>, vector<1x11x16x128xbf16>
    %4 = vector.shape_cast %3 : vector<1x11x16x128xbf16> to vector<11x16x128xbf16>
    %5 = vector.shape_cast %2 : vector<11x16x128xbf16> to vector<1x11x16x128xbf16>
    tpu.vector_store %arg6[%c0_3, %c0_4, %c0_5, %c0_6], %5 {strides = array<i32>} : memref<1x11x16x128xbf16, #tpu.memory_space<vmem>>, vector<1x11x16x128xbf16>,
    %cst_7 = arith.constant 0.000000e+00 : f32
    %6 = vector.broadcast %cst_7 : f32 to vector<128x128xf32>
    %c0_8 = arith.constant 0 : index
    %c0_9 = arith.constant 0 : index
    %c0_10 = arith.constant 0 : index
    %7 = vector.load %arg2[%c0_8, %c0_9, %c0_10] : memref<1x160x512xbf16, #tpu.memory_space<vmem>>, vector<1x128x512xbf16>
    %8 = vector.shape_cast %7 : vector<1x128x512xbf16> to vector<128x512xbf16>
    %c0_11 = arith.constant 0 : index
    %c0_12 = arith.constant 0 : index
    %c0_13 = arith.constant 0 : index
    %9 = vector.load %arg3[%c0_11, %c0_12, %c0_13] : memref<4x512x128xbf16, #tpu.memory_space<vmem>>, vector<1x512x128xbf16>
    %10 = vector.shape_cast %9 : vector<1x512x128xbf16> to vector<512x128xbf16>
    %cst_14 = arith.constant dense<0.000000e+00> : vector<128x128xf32>
    %11 = tpu.matmul %8, %10, %cst_14 {dimension_numbers = #tpu.dot_dimension_numbers<[1], [0], [0], [1], [0, 0, 1, 1], [], []>} : vector<128x512xbf16>, vector<512x128xbf16>, vector<128x128xf32> -> vector<128x128xf32>
    %12 = arith.addf %6, %11 : vector<128x128xf32>
    %c0_15 = arith.constant 0 : index
    %c1 = arith.constant 1 : index
    %c0_16 = arith.constant 0 : index
    %13 = vector.load %arg2[%c0_15, %c1, %c0_16] : memref<1x160x512xbf16, #tpu.memory_space<vmem>>, vector<1x128x512xbf16>
    %14 = vector.shape_cast %13 : vector<1x128x512xbf16> to vector<128x512xbf16>
    %c1_17 = arith.constant 1 : index
    %c0_18 = arith.constant 0 : index
    %c0_19 = arith.constant 0 : index
    %15 = vector.load %arg3[%c1_17, %c0_18, %c0_19] : memref<4x512x128xbf16, #tpu.memory_space<vmem>>, vector<1x512x128xbf16>
    %16 = vector.shape_cast %15 : vector<1x512x128xbf16> to vector<512x128xbf16>
    %cst_20 = arith.constant dense<0.000000e+00> : vector<128x128xf32>
    %17 = tpu.matmul %14, %16, %cst_20 {dimension_numbers = #tpu.dot_dimension_numbers<[1], [0], [0], [1], [0, 0, 1, 1], [], []>} : vector<128x512xbf16>, vector<512x128xbf16>, vector<128x128xf32> -> vector<128x128xf32>
    %18 = arith.addf %12, %17 : vector<128x128xf32>
    %c0_21 = arith.constant 0 : index
    %c16 = arith.constant 16 : index
    %c0_22 = arith.constant 0 : index
    %19 = vector.load %arg2[%c0_21, %c16, %c0_22] : memref<1x160x512xbf16, #tpu.memory_space<vmem>>, vector<1x128x512xbf16>
    %20 = vector.shape_cast %19 : vector<1x128x512xbf16> to vector<128x512xbf16>
    %c2 = arith.constant 2 : index
    %c0_23 = arith.constant 0 : index
    %c0_24 = arith.constant 0 : index
    %21 = vector.load %arg3[%c2, %c0_23, %c0_24] : memref<4x512x128xbf16, #tpu.memory_space<vmem>>, vector<1x512x128xbf16>
    %22 = vector.shape_cast %21 : vector<1x512x128xbf16> to vector<512x128xbf16>
    %cst_25 = arith.constant dense<0.000000e+00> : vector<128x128xf32>
    %23 = tpu.matmul %20, %22, %cst_25 {dimension_numbers = #tpu.dot_dimension_numbers<[1], [0], [0], [1], [0, 0, 1, 1], [], []>} : vector<128x512xbf16>, vector<512x128xbf16>, vector<128x128xf32> -> vector<128x128xf32>
    %24 = arith.addf %18, %23 : vector<128x128xf32>
    %c0_26 = arith.constant 0 : index
    %c17 = arith.constant 17 : index
    %c0_27 = arith.constant 0 : index
    %25 = vector.load %arg2[%c0_26, %c17, %c0_27] : memref<1x160x512xbf16, #tpu.memory_space<vmem>>, vector<1x128x512xbf16>
    %26 = vector.shape_cast %25 : vector<1x128x512xbf16> to vector<128x512xbf16>
    %c3 = arith.constant 3 : index
    %c0_28 = arith.constant 0 : index
    %c0_29 = arith.constant 0 : index
    %27 = vector.load %arg3[%c3, %c0_28, %c0_29] : memref<4x512x128xbf16, #tpu.memory_space<vmem>>, vector<1x512x128xbf16>
    %28 = vector.shape_cast %27 : vector<1x512x128xbf16> to vector<512x128xbf16>
    %cst_30 = arith.constant dense<0.000000e+00> : vector<128x128xf32>
    %29 = tpu.matmul %26, %28, %cst_30 {dimension_numbers = #tpu.dot_dimension_numbers<[1], [0], [0], [1], [0, 0, 1, 1], [], []>} : vector<128x512xbf16>, vector<512x128xbf16>, vector<128x128xf32> -> vector<128x128xf32>
    %30 = arith.addf %24, %29 : vector<128x128xf32>
    %31 = vector.shape_cast %30 : vector<128x128xf32> to vector<8x16x128xf32>
    %32 = vector.extract_strided_slice %31 {offsets = [0, 0, 0], sizes = [8, 8, 128], strides = [1, 1, 1]} : vector<8x16x128xf32> to vector<8x8x128xf32>
    %33 = vector.shape_cast %0 : vector<1x128xf32> to vector<1x1x128xf32>
    %34 = vector.broadcast %33 : vector<1x1x128xf32> to vector<8x8x128xf32>
    %35 = arith.mulf %32, %34 : vector<8x8x128xf32>
    %36 = vector.shape_cast %1 : vector<1x128xf32> to vector<1x1x128xf32>
    %37 = vector.broadcast %36 : vector<1x1x128xf32> to vector<8x8x128xf32>
    %38 = arith.addf %35, %37 : vector<8x8x128xf32>
    %cst_31 = arith.constant 0.000000e+00 : f32
    %39 = vector.broadcast %cst_31 : f32 to vector<8x8x128xf32>
    %40 = arith.maximumf %38, %39 : vector<8x8x128xf32>
    %41 = arith.truncf %40 : vector<8x8x128xf32> to vector<8x8x128xbf16>
    %c0_32 = arith.constant 0 : index
    %c1_33 = arith.constant 1 : index
    %c1_34 = arith.constant 1 : index
    %c0_35 = arith.constant 0 : index
    %42 = vector.load %arg6[%c0_32, %c1_33, %c1_34, %c0_35] : memref<1x11x16x128xbf16, #tpu.memory_space<vmem>>, vector<1x8x8x128xbf16>
    %43 = vector.shape_cast %42 : vector<1x8x8x128xbf16> to vector<8x8x128xbf16>
    %44 = vector.shape_cast %41 : vector<8x8x128xbf16> to vector<1x8x8x128xbf16>
    tpu.vector_store %arg6[%c0_32, %c1_33, %c1_34, %c0_35], %44 {strides = array<i32>} : memref<1x11x16x128xbf16, #tpu.memory_space<vmem>>, vector<1x8x8x128xbf16>,
    return
  }
  func.func @transform_0(%arg0: i32, %arg1: i32) -> (i32, i32, i32) {
    %c0_i32 = arith.constant 0 : i32
    %c0_i32_0 = arith.constant 0 : i32
    %c0_i32_1 = arith.constant 0 : i32
    return %arg0, %c0_i32, %c0_i32_0 : i32, i32, i32
  }
  func.func @transform_1(%arg0: i32, %arg1: i32) -> (i32, i32, i32) {
    %c0_i32 = arith.constant 0 : i32
    %c0_i32_0 = arith.constant 0 : i32
    %c0_i32_1 = arith.constant 0 : i32
    %c0_i32_2 = arith.constant 0 : i32
    return %c0_i32, %c0_i32_0, %c0_i32_1 : i32, i32, i32
  }
  func.func @transform_2(%arg0: i32, %arg1: i32) -> (i32, i32) {
    %c0_i32 = arith.constant 0 : i32
    %c0_i32_0 = arith.constant 0 : i32
    %c0_i32_1 = arith.constant 0 : i32
    return %c0_i32, %c0_i32_0 : i32, i32
  }
  func.func @transform_3(%arg0: i32, %arg1: i32) -> (i32, i32) {
    %c0_i32 = arith.constant 0 : i32
    %c0_i32_0 = arith.constant 0 : i32
    %c0_i32_1 = arith.constant 0 : i32
    return %c0_i32, %c0_i32_0 : i32, i32
  }
  func.func @transform_4(%arg0: i32, %arg1: i32) -> (i32, i32, i32, i32) {
    %c0_i32 = arith.constant 0 : i32
    %c0_i32_0 = arith.constant 0 : i32
    %c0_i32_1 = arith.constant 0 : i32
    return %arg0, %c0_i32, %c0_i32_0, %arg1 : i32, i32, i32, i32
  }
}

module attributes {stable_mosaic.version = 11 : i64} {
  func.func @_fused_conv_kernel(%arg0: i32, %arg1: i32, %arg2: memref<1x176x128xbf16, #tpu.memory_space<vmem>>, %arg3: memref<9x128x128xbf16, #tpu.memory_space<vmem>>, %arg4: memref<1x128xf32, #tpu.memory_space<vmem>>, %arg5: memref<1x128xf32, #tpu.memory_space<vmem>>, %arg6: memref<1x11x16x128xbf16, #tpu.memory_space<vmem>>, %arg7: memref<1x11x16x128xbf16, #tpu.memory_space<vmem>>) attributes {dimension_semantics = [#tpu.dimension_semantics<parallel>, #tpu.dimension_semantics<parallel>], iteration_bounds = array<i64: 2, 1>, scalar_prefetch = 0 : i64, scratch_operands = 0 : i64, tpu.core_type = #tpu.core_type<tc>, window_params = [{transform_indices = @transform_0, window_bounds = array<i64: 1, 176, 128>}, {pipeline_mode = #tpu.pipeline_mode<synchronous>, transform_indices = @transform_1, window_bounds = array<i64: 9, 128, 128>}, {pipeline_mode = #tpu.pipeline_mode<synchronous>, transform_indices = @transform_2, window_bounds = array<i64: 1, 128>}, {pipeline_mode = #tpu.pipeline_mode<synchronous>, transform_indices = @transform_3, window_bounds = array<i64: 1, 128>}, {transform_indices = @transform_4, window_bounds = array<i64: 1, 11, 16, 128>}, {transform_indices = @transform_5, window_bounds = array<i64: 1, 11, 16, 128>}]} {
    %c0 = arith.constant 0 : index
    %c0_0 = arith.constant 0 : index
    %0 = vector.load %arg4[%c0, %c0_0] : memref<1x128xf32, #tpu.memory_space<vmem>>, vector<1x128xf32>
    %c0_1 = arith.constant 0 : index
    %c0_2 = arith.constant 0 : index
    %1 = vector.load %arg5[%c0_1, %c0_2] : memref<1x128xf32, #tpu.memory_space<vmem>>, vector<1x128xf32>
    %cst = arith.constant 0.000000e+00 : bf16
    %2 = vector.broadcast %cst : bf16 to vector<11x16x128xbf16>
    %c0_3 = arith.constant 0 : index
    %c0_4 = arith.constant 0 : index
    %c0_5 = arith.constant 0 : index
    %c0_6 = arith.constant 0 : index
    %3 = vector.load %arg7[%c0_3, %c0_4, %c0_5, %c0_6] : memref<1x11x16x128xbf16, #tpu.memory_space<vmem>>, vector<1x11x16x128xbf16>
    %4 = vector.shape_cast %3 : vector<1x11x16x128xbf16> to vector<11x16x128xbf16>
    %5 = vector.shape_cast %2 : vector<11x16x128xbf16> to vector<1x11x16x128xbf16>
    tpu.vector_store %arg7[%c0_3, %c0_4, %c0_5, %c0_6], %5 {strides = array<i32>} : memref<1x11x16x128xbf16, #tpu.memory_space<vmem>>, vector<1x11x16x128xbf16>,
    %cst_7 = arith.constant 0.000000e+00 : f32
    %6 = vector.broadcast %cst_7 : f32 to vector<128x128xf32>
    %c0_8 = arith.constant 0 : index
    %c0_9 = arith.constant 0 : index
    %c0_10 = arith.constant 0 : index
    %7 = vector.load %arg2[%c0_8, %c0_9, %c0_10] : memref<1x176x128xbf16, #tpu.memory_space<vmem>>, vector<1x128x128xbf16>
    %8 = vector.shape_cast %7 : vector<1x128x128xbf16> to vector<128x128xbf16>
    %c0_11 = arith.constant 0 : index
    %c0_12 = arith.constant 0 : index
    %c0_13 = arith.constant 0 : index
    %9 = vector.load %arg3[%c0_11, %c0_12, %c0_13] : memref<9x128x128xbf16, #tpu.memory_space<vmem>>, vector<1x128x128xbf16>
    %10 = vector.shape_cast %9 : vector<1x128x128xbf16> to vector<128x128xbf16>
    %cst_14 = arith.constant dense<0.000000e+00> : vector<128x128xf32>
    %11 = tpu.matmul %8, %10, %cst_14 {dimension_numbers = #tpu.dot_dimension_numbers<[1], [0], [0], [1], [0, 0, 1, 1], [], []>} : vector<128x128xbf16>, vector<128x128xbf16>, vector<128x128xf32> -> vector<128x128xf32>
    %12 = arith.addf %6, %11 : vector<128x128xf32>
    %c0_15 = arith.constant 0 : index
    %c1 = arith.constant 1 : index
    %c0_16 = arith.constant 0 : index
    %13 = vector.load %arg2[%c0_15, %c1, %c0_16] : memref<1x176x128xbf16, #tpu.memory_space<vmem>>, vector<1x128x128xbf16>
    %14 = vector.shape_cast %13 : vector<1x128x128xbf16> to vector<128x128xbf16>
    %c1_17 = arith.constant 1 : index
    %c0_18 = arith.constant 0 : index
    %c0_19 = arith.constant 0 : index
    %15 = vector.load %arg3[%c1_17, %c0_18, %c0_19] : memref<9x128x128xbf16, #tpu.memory_space<vmem>>, vector<1x128x128xbf16>
    %16 = vector.shape_cast %15 : vector<1x128x128xbf16> to vector<128x128xbf16>
    %cst_20 = arith.constant dense<0.000000e+00> : vector<128x128xf32>
    %17 = tpu.matmul %14, %16, %cst_20 {dimension_numbers = #tpu.dot_dimension_numbers<[1], [0], [0], [1], [0, 0, 1, 1], [], []>} : vector<128x128xbf16>, vector<128x128xbf16>, vector<128x128xf32> -> vector<128x128xf32>
    %18 = arith.addf %12, %17 : vector<128x128xf32>
    %c0_21 = arith.constant 0 : index
    %c2 = arith.constant 2 : index
    %c0_22 = arith.constant 0 : index
    %19 = vector.load %arg2[%c0_21, %c2, %c0_22] : memref<1x176x128xbf16, #tpu.memory_space<vmem>>, vector<1x128x128xbf16>
    %20 = vector.shape_cast %19 : vector<1x128x128xbf16> to vector<128x128xbf16>
    %c2_23 = arith.constant 2 : index
    %c0_24 = arith.constant 0 : index
    %c0_25 = arith.constant 0 : index
    %21 = vector.load %arg3[%c2_23, %c0_24, %c0_25] : memref<9x128x128xbf16, #tpu.memory_space<vmem>>, vector<1x128x128xbf16>
    %22 = vector.shape_cast %21 : vector<1x128x128xbf16> to vector<128x128xbf16>
    %cst_26 = arith.constant dense<0.000000e+00> : vector<128x128xf32>
    %23 = tpu.matmul %20, %22, %cst_26 {dimension_numbers = #tpu.dot_dimension_numbers<[1], [0], [0], [1], [0, 0, 1, 1], [], []>} : vector<128x128xbf16>, vector<128x128xbf16>, vector<128x128xf32> -> vector<128x128xf32>
    %24 = arith.addf %18, %23 : vector<128x128xf32>
    %c0_27 = arith.constant 0 : index
    %c16 = arith.constant 16 : index
    %c0_28 = arith.constant 0 : index
    %25 = vector.load %arg2[%c0_27, %c16, %c0_28] : memref<1x176x128xbf16, #tpu.memory_space<vmem>>, vector<1x128x128xbf16>
    %26 = vector.shape_cast %25 : vector<1x128x128xbf16> to vector<128x128xbf16>
    %c3 = arith.constant 3 : index
    %c0_29 = arith.constant 0 : index
    %c0_30 = arith.constant 0 : index
    %27 = vector.load %arg3[%c3, %c0_29, %c0_30] : memref<9x128x128xbf16, #tpu.memory_space<vmem>>, vector<1x128x128xbf16>
    %28 = vector.shape_cast %27 : vector<1x128x128xbf16> to vector<128x128xbf16>
    %cst_31 = arith.constant dense<0.000000e+00> : vector<128x128xf32>
    %29 = tpu.matmul %26, %28, %cst_31 {dimension_numbers = #tpu.dot_dimension_numbers<[1], [0], [0], [1], [0, 0, 1, 1], [], []>} : vector<128x128xbf16>, vector<128x128xbf16>, vector<128x128xf32> -> vector<128x128xf32>
    %30 = arith.addf %24, %29 : vector<128x128xf32>
    %c0_32 = arith.constant 0 : index
    %c17 = arith.constant 17 : index
    %c0_33 = arith.constant 0 : index
    %31 = vector.load %arg2[%c0_32, %c17, %c0_33] : memref<1x176x128xbf16, #tpu.memory_space<vmem>>, vector<1x128x128xbf16>
    %32 = vector.shape_cast %31 : vector<1x128x128xbf16> to vector<128x128xbf16>
    %c4 = arith.constant 4 : index
    %c0_34 = arith.constant 0 : index
    %c0_35 = arith.constant 0 : index
    %33 = vector.load %arg3[%c4, %c0_34, %c0_35] : memref<9x128x128xbf16, #tpu.memory_space<vmem>>, vector<1x128x128xbf16>
    %34 = vector.shape_cast %33 : vector<1x128x128xbf16> to vector<128x128xbf16>
    %cst_36 = arith.constant dense<0.000000e+00> : vector<128x128xf32>
    %35 = tpu.matmul %32, %34, %cst_36 {dimension_numbers = #tpu.dot_dimension_numbers<[1], [0], [0], [1], [0, 0, 1, 1], [], []>} : vector<128x128xbf16>, vector<128x128xbf16>, vector<128x128xf32> -> vector<128x128xf32>
    %36 = arith.addf %30, %35 : vector<128x128xf32>
    %c0_37 = arith.constant 0 : index
    %c18 = arith.constant 18 : index
    %c0_38 = arith.constant 0 : index
    %37 = vector.load %arg2[%c0_37, %c18, %c0_38] : memref<1x176x128xbf16, #tpu.memory_space<vmem>>, vector<1x128x128xbf16>
    %38 = vector.shape_cast %37 : vector<1x128x128xbf16> to vector<128x128xbf16>
    %c5 = arith.constant 5 : index
    %c0_39 = arith.constant 0 : index
    %c0_40 = arith.constant 0 : index
    %39 = vector.load %arg3[%c5, %c0_39, %c0_40] : memref<9x128x128xbf16, #tpu.memory_space<vmem>>, vector<1x128x128xbf16>
    %40 = vector.shape_cast %39 : vector<1x128x128xbf16> to vector<128x128xbf16>
    %cst_41 = arith.constant dense<0.000000e+00> : vector<128x128xf32>
    %41 = tpu.matmul %38, %40, %cst_41 {dimension_numbers = #tpu.dot_dimension_numbers<[1], [0], [0], [1], [0, 0, 1, 1], [], []>} : vector<128x128xbf16>, vector<128x128xbf16>, vector<128x128xf32> -> vector<128x128xf32>
    %42 = arith.addf %36, %41 : vector<128x128xf32>
    %c0_42 = arith.constant 0 : index
    %c32 = arith.constant 32 : index
    %c0_43 = arith.constant 0 : index
    %43 = vector.load %arg2[%c0_42, %c32, %c0_43] : memref<1x176x128xbf16, #tpu.memory_space<vmem>>, vector<1x128x128xbf16>
    %44 = vector.shape_cast %43 : vector<1x128x128xbf16> to vector<128x128xbf16>
    %c6 = arith.constant 6 : index
    %c0_44 = arith.constant 0 : index
    %c0_45 = arith.constant 0 : index
    %45 = vector.load %arg3[%c6, %c0_44, %c0_45] : memref<9x128x128xbf16, #tpu.memory_space<vmem>>, vector<1x128x128xbf16>
    %46 = vector.shape_cast %45 : vector<1x128x128xbf16> to vector<128x128xbf16>
    %cst_46 = arith.constant dense<0.000000e+00> : vector<128x128xf32>
    %47 = tpu.matmul %44, %46, %cst_46 {dimension_numbers = #tpu.dot_dimension_numbers<[1], [0], [0], [1], [0, 0, 1, 1], [], []>} : vector<128x128xbf16>, vector<128x128xbf16>, vector<128x128xf32> -> vector<128x128xf32>
    %48 = arith.addf %42, %47 : vector<128x128xf32>
    %c0_47 = arith.constant 0 : index
    %c33 = arith.constant 33 : index
    %c0_48 = arith.constant 0 : index
    %49 = vector.load %arg2[%c0_47, %c33, %c0_48] : memref<1x176x128xbf16, #tpu.memory_space<vmem>>, vector<1x128x128xbf16>
    %50 = vector.shape_cast %49 : vector<1x128x128xbf16> to vector<128x128xbf16>
    %c7 = arith.constant 7 : index
    %c0_49 = arith.constant 0 : index
    %c0_50 = arith.constant 0 : index
    %51 = vector.load %arg3[%c7, %c0_49, %c0_50] : memref<9x128x128xbf16, #tpu.memory_space<vmem>>, vector<1x128x128xbf16>
    %52 = vector.shape_cast %51 : vector<1x128x128xbf16> to vector<128x128xbf16>
    %cst_51 = arith.constant dense<0.000000e+00> : vector<128x128xf32>
    %53 = tpu.matmul %50, %52, %cst_51 {dimension_numbers = #tpu.dot_dimension_numbers<[1], [0], [0], [1], [0, 0, 1, 1], [], []>} : vector<128x128xbf16>, vector<128x128xbf16>, vector<128x128xf32> -> vector<128x128xf32>
    %54 = arith.addf %48, %53 : vector<128x128xf32>
    %c0_52 = arith.constant 0 : index
    %c34 = arith.constant 34 : index
    %c0_53 = arith.constant 0 : index
    %55 = vector.load %arg2[%c0_52, %c34, %c0_53] : memref<1x176x128xbf16, #tpu.memory_space<vmem>>, vector<1x128x128xbf16>
    %56 = vector.shape_cast %55 : vector<1x128x128xbf16> to vector<128x128xbf16>
    %c8 = arith.constant 8 : index
    %c0_54 = arith.constant 0 : index
    %c0_55 = arith.constant 0 : index
    %57 = vector.load %arg3[%c8, %c0_54, %c0_55] : memref<9x128x128xbf16, #tpu.memory_space<vmem>>, vector<1x128x128xbf16>
    %58 = vector.shape_cast %57 : vector<1x128x128xbf16> to vector<128x128xbf16>
    %cst_56 = arith.constant dense<0.000000e+00> : vector<128x128xf32>
    %59 = tpu.matmul %56, %58, %cst_56 {dimension_numbers = #tpu.dot_dimension_numbers<[1], [0], [0], [1], [0, 0, 1, 1], [], []>} : vector<128x128xbf16>, vector<128x128xbf16>, vector<128x128xf32> -> vector<128x128xf32>
    %60 = arith.addf %54, %59 : vector<128x128xf32>
    %61 = vector.shape_cast %60 : vector<128x128xf32> to vector<8x16x128xf32>
    %62 = vector.extract_strided_slice %61 {offsets = [0, 0, 0], sizes = [8, 8, 128], strides = [1, 1, 1]} : vector<8x16x128xf32> to vector<8x8x128xf32>
    %63 = vector.shape_cast %0 : vector<1x128xf32> to vector<1x1x128xf32>
    %64 = vector.broadcast %63 : vector<1x1x128xf32> to vector<8x8x128xf32>
    %65 = arith.mulf %62, %64 : vector<8x8x128xf32>
    %66 = vector.shape_cast %1 : vector<1x128xf32> to vector<1x1x128xf32>
    %67 = vector.broadcast %66 : vector<1x1x128xf32> to vector<8x8x128xf32>
    %68 = arith.addf %65, %67 : vector<8x8x128xf32>
    %c0_57 = arith.constant 0 : index
    %c1_58 = arith.constant 1 : index
    %c1_59 = arith.constant 1 : index
    %c0_60 = arith.constant 0 : index
    %69 = vector.load %arg6[%c0_57, %c1_58, %c1_59, %c0_60] : memref<1x11x16x128xbf16, #tpu.memory_space<vmem>>, vector<1x8x8x128xbf16>
    %70 = vector.shape_cast %69 : vector<1x8x8x128xbf16> to vector<8x8x128xbf16>
    %71 = arith.extf %70 : vector<8x8x128xbf16> to vector<8x8x128xf32>
    %72 = arith.addf %68, %71 : vector<8x8x128xf32>
    %cst_61 = arith.constant 0.000000e+00 : f32
    %73 = vector.broadcast %cst_61 : f32 to vector<8x8x128xf32>
    %74 = arith.maximumf %72, %73 : vector<8x8x128xf32>
    %75 = arith.truncf %74 : vector<8x8x128xf32> to vector<8x8x128xbf16>
    %c0_62 = arith.constant 0 : index
    %c1_63 = arith.constant 1 : index
    %c1_64 = arith.constant 1 : index
    %c0_65 = arith.constant 0 : index
    %76 = vector.load %arg7[%c0_62, %c1_63, %c1_64, %c0_65] : memref<1x11x16x128xbf16, #tpu.memory_space<vmem>>, vector<1x8x8x128xbf16>
    %77 = vector.shape_cast %76 : vector<1x8x8x128xbf16> to vector<8x8x128xbf16>
    %78 = vector.shape_cast %75 : vector<8x8x128xbf16> to vector<1x8x8x128xbf16>
    tpu.vector_store %arg7[%c0_62, %c1_63, %c1_64, %c0_65], %78 {strides = array<i32>} : memref<1x11x16x128xbf16, #tpu.memory_space<vmem>>, vector<1x8x8x128xbf16>,
    return
  }
  func.func @transform_0(%arg0: i32, %arg1: i32) -> (i32, i32, i32) {
    %c0_i32 = arith.constant 0 : i32
    %c0_i32_0 = arith.constant 0 : i32
    %c0_i32_1 = arith.constant 0 : i32
    return %arg0, %c0_i32, %c0_i32_0 : i32, i32, i32
  }
  func.func @transform_1(%arg0: i32, %arg1: i32) -> (i32, i32, i32) {
    %c0_i32 = arith.constant 0 : i32
    %c0_i32_0 = arith.constant 0 : i32
    %c0_i32_1 = arith.constant 0 : i32
    %c0_i32_2 = arith.constant 0 : i32
    return %c0_i32, %c0_i32_0, %c0_i32_1 : i32, i32, i32
  }
  func.func @transform_2(%arg0: i32, %arg1: i32) -> (i32, i32) {
    %c0_i32 = arith.constant 0 : i32
    %c0_i32_0 = arith.constant 0 : i32
    %c0_i32_1 = arith.constant 0 : i32
    return %c0_i32, %c0_i32_0 : i32, i32
  }
  func.func @transform_3(%arg0: i32, %arg1: i32) -> (i32, i32) {
    %c0_i32 = arith.constant 0 : i32
    %c0_i32_0 = arith.constant 0 : i32
    %c0_i32_1 = arith.constant 0 : i32
    return %c0_i32, %c0_i32_0 : i32, i32
  }
  func.func @transform_4(%arg0: i32, %arg1: i32) -> (i32, i32, i32, i32) {
    %c0_i32 = arith.constant 0 : i32
    %c0_i32_0 = arith.constant 0 : i32
    %c0_i32_1 = arith.constant 0 : i32
    return %arg0, %c0_i32, %c0_i32_0, %arg1 : i32, i32, i32, i32
  }
  func.func @transform_5(%arg0: i32, %arg1: i32) -> (i32, i32, i32, i32) {
    %c0_i32 = arith.constant 0 : i32
    %c0_i32_0 = arith.constant 0 : i32
    %c0_i32_1 = arith.constant 0 : i32
    return %arg0, %c0_i32, %c0_i32_0, %arg1 : i32, i32, i32, i32
  }
}

module attributes {stable_mosaic.version = 11 : i64} {
  func.func @_fused_conv_kernel(%arg0: i32, %arg1: i32, %arg2: memref<1x176x128xbf16, #tpu.memory_space<vmem>>, %arg3: memref<9x128x128xbf16, #tpu.memory_space<vmem>>, %arg4: memref<1x128xf32, #tpu.memory_space<vmem>>, %arg5: memref<1x128xf32, #tpu.memory_space<vmem>>, %arg6: memref<1x11x16x128xbf16, #tpu.memory_space<vmem>>) attributes {dimension_semantics = [#tpu.dimension_semantics<parallel>, #tpu.dimension_semantics<parallel>], iteration_bounds = array<i64: 2, 1>, scalar_prefetch = 0 : i64, scratch_operands = 0 : i64, tpu.core_type = #tpu.core_type<tc>, window_params = [{transform_indices = @transform_0, window_bounds = array<i64: 1, 176, 128>}, {pipeline_mode = #tpu.pipeline_mode<synchronous>, transform_indices = @transform_1, window_bounds = array<i64: 9, 128, 128>}, {pipeline_mode = #tpu.pipeline_mode<synchronous>, transform_indices = @transform_2, window_bounds = array<i64: 1, 128>}, {pipeline_mode = #tpu.pipeline_mode<synchronous>, transform_indices = @transform_3, window_bounds = array<i64: 1, 128>}, {transform_indices = @transform_4, window_bounds = array<i64: 1, 11, 16, 128>}]} {
    %c0 = arith.constant 0 : index
    %c0_0 = arith.constant 0 : index
    %0 = vector.load %arg4[%c0, %c0_0] : memref<1x128xf32, #tpu.memory_space<vmem>>, vector<1x128xf32>
    %c0_1 = arith.constant 0 : index
    %c0_2 = arith.constant 0 : index
    %1 = vector.load %arg5[%c0_1, %c0_2] : memref<1x128xf32, #tpu.memory_space<vmem>>, vector<1x128xf32>
    %cst = arith.constant 0.000000e+00 : bf16
    %2 = vector.broadcast %cst : bf16 to vector<11x16x128xbf16>
    %c0_3 = arith.constant 0 : index
    %c0_4 = arith.constant 0 : index
    %c0_5 = arith.constant 0 : index
    %c0_6 = arith.constant 0 : index
    %3 = vector.load %arg6[%c0_3, %c0_4, %c0_5, %c0_6] : memref<1x11x16x128xbf16, #tpu.memory_space<vmem>>, vector<1x11x16x128xbf16>
    %4 = vector.shape_cast %3 : vector<1x11x16x128xbf16> to vector<11x16x128xbf16>
    %5 = vector.shape_cast %2 : vector<11x16x128xbf16> to vector<1x11x16x128xbf16>
    tpu.vector_store %arg6[%c0_3, %c0_4, %c0_5, %c0_6], %5 {strides = array<i32>} : memref<1x11x16x128xbf16, #tpu.memory_space<vmem>>, vector<1x11x16x128xbf16>,
    %cst_7 = arith.constant 0.000000e+00 : f32
    %6 = vector.broadcast %cst_7 : f32 to vector<128x128xf32>
    %c0_8 = arith.constant 0 : index
    %c0_9 = arith.constant 0 : index
    %c0_10 = arith.constant 0 : index
    %7 = vector.load %arg2[%c0_8, %c0_9, %c0_10] : memref<1x176x128xbf16, #tpu.memory_space<vmem>>, vector<1x128x128xbf16>
    %8 = vector.shape_cast %7 : vector<1x128x128xbf16> to vector<128x128xbf16>
    %c0_11 = arith.constant 0 : index
    %c0_12 = arith.constant 0 : index
    %c0_13 = arith.constant 0 : index
    %9 = vector.load %arg3[%c0_11, %c0_12, %c0_13] : memref<9x128x128xbf16, #tpu.memory_space<vmem>>, vector<1x128x128xbf16>
    %10 = vector.shape_cast %9 : vector<1x128x128xbf16> to vector<128x128xbf16>
    %cst_14 = arith.constant dense<0.000000e+00> : vector<128x128xf32>
    %11 = tpu.matmul %8, %10, %cst_14 {dimension_numbers = #tpu.dot_dimension_numbers<[1], [0], [0], [1], [0, 0, 1, 1], [], []>} : vector<128x128xbf16>, vector<128x128xbf16>, vector<128x128xf32> -> vector<128x128xf32>
    %12 = arith.addf %6, %11 : vector<128x128xf32>
    %c0_15 = arith.constant 0 : index
    %c1 = arith.constant 1 : index
    %c0_16 = arith.constant 0 : index
    %13 = vector.load %arg2[%c0_15, %c1, %c0_16] : memref<1x176x128xbf16, #tpu.memory_space<vmem>>, vector<1x128x128xbf16>
    %14 = vector.shape_cast %13 : vector<1x128x128xbf16> to vector<128x128xbf16>
    %c1_17 = arith.constant 1 : index
    %c0_18 = arith.constant 0 : index
    %c0_19 = arith.constant 0 : index
    %15 = vector.load %arg3[%c1_17, %c0_18, %c0_19] : memref<9x128x128xbf16, #tpu.memory_space<vmem>>, vector<1x128x128xbf16>
    %16 = vector.shape_cast %15 : vector<1x128x128xbf16> to vector<128x128xbf16>
    %cst_20 = arith.constant dense<0.000000e+00> : vector<128x128xf32>
    %17 = tpu.matmul %14, %16, %cst_20 {dimension_numbers = #tpu.dot_dimension_numbers<[1], [0], [0], [1], [0, 0, 1, 1], [], []>} : vector<128x128xbf16>, vector<128x128xbf16>, vector<128x128xf32> -> vector<128x128xf32>
    %18 = arith.addf %12, %17 : vector<128x128xf32>
    %c0_21 = arith.constant 0 : index
    %c2 = arith.constant 2 : index
    %c0_22 = arith.constant 0 : index
    %19 = vector.load %arg2[%c0_21, %c2, %c0_22] : memref<1x176x128xbf16, #tpu.memory_space<vmem>>, vector<1x128x128xbf16>
    %20 = vector.shape_cast %19 : vector<1x128x128xbf16> to vector<128x128xbf16>
    %c2_23 = arith.constant 2 : index
    %c0_24 = arith.constant 0 : index
    %c0_25 = arith.constant 0 : index
    %21 = vector.load %arg3[%c2_23, %c0_24, %c0_25] : memref<9x128x128xbf16, #tpu.memory_space<vmem>>, vector<1x128x128xbf16>
    %22 = vector.shape_cast %21 : vector<1x128x128xbf16> to vector<128x128xbf16>
    %cst_26 = arith.constant dense<0.000000e+00> : vector<128x128xf32>
    %23 = tpu.matmul %20, %22, %cst_26 {dimension_numbers = #tpu.dot_dimension_numbers<[1], [0], [0], [1], [0, 0, 1, 1], [], []>} : vector<128x128xbf16>, vector<128x128xbf16>, vector<128x128xf32> -> vector<128x128xf32>
    %24 = arith.addf %18, %23 : vector<128x128xf32>
    %c0_27 = arith.constant 0 : index
    %c16 = arith.constant 16 : index
    %c0_28 = arith.constant 0 : index
    %25 = vector.load %arg2[%c0_27, %c16, %c0_28] : memref<1x176x128xbf16, #tpu.memory_space<vmem>>, vector<1x128x128xbf16>
    %26 = vector.shape_cast %25 : vector<1x128x128xbf16> to vector<128x128xbf16>
    %c3 = arith.constant 3 : index
    %c0_29 = arith.constant 0 : index
    %c0_30 = arith.constant 0 : index
    %27 = vector.load %arg3[%c3, %c0_29, %c0_30] : memref<9x128x128xbf16, #tpu.memory_space<vmem>>, vector<1x128x128xbf16>
    %28 = vector.shape_cast %27 : vector<1x128x128xbf16> to vector<128x128xbf16>
    %cst_31 = arith.constant dense<0.000000e+00> : vector<128x128xf32>
    %29 = tpu.matmul %26, %28, %cst_31 {dimension_numbers = #tpu.dot_dimension_numbers<[1], [0], [0], [1], [0, 0, 1, 1], [], []>} : vector<128x128xbf16>, vector<128x128xbf16>, vector<128x128xf32> -> vector<128x128xf32>
    %30 = arith.addf %24, %29 : vector<128x128xf32>
    %c0_32 = arith.constant 0 : index
    %c17 = arith.constant 17 : index
    %c0_33 = arith.constant 0 : index
    %31 = vector.load %arg2[%c0_32, %c17, %c0_33] : memref<1x176x128xbf16, #tpu.memory_space<vmem>>, vector<1x128x128xbf16>
    %32 = vector.shape_cast %31 : vector<1x128x128xbf16> to vector<128x128xbf16>
    %c4 = arith.constant 4 : index
    %c0_34 = arith.constant 0 : index
    %c0_35 = arith.constant 0 : index
    %33 = vector.load %arg3[%c4, %c0_34, %c0_35] : memref<9x128x128xbf16, #tpu.memory_space<vmem>>, vector<1x128x128xbf16>
    %34 = vector.shape_cast %33 : vector<1x128x128xbf16> to vector<128x128xbf16>
    %cst_36 = arith.constant dense<0.000000e+00> : vector<128x128xf32>
    %35 = tpu.matmul %32, %34, %cst_36 {dimension_numbers = #tpu.dot_dimension_numbers<[1], [0], [0], [1], [0, 0, 1, 1], [], []>} : vector<128x128xbf16>, vector<128x128xbf16>, vector<128x128xf32> -> vector<128x128xf32>
    %36 = arith.addf %30, %35 : vector<128x128xf32>
    %c0_37 = arith.constant 0 : index
    %c18 = arith.constant 18 : index
    %c0_38 = arith.constant 0 : index
    %37 = vector.load %arg2[%c0_37, %c18, %c0_38] : memref<1x176x128xbf16, #tpu.memory_space<vmem>>, vector<1x128x128xbf16>
    %38 = vector.shape_cast %37 : vector<1x128x128xbf16> to vector<128x128xbf16>
    %c5 = arith.constant 5 : index
    %c0_39 = arith.constant 0 : index
    %c0_40 = arith.constant 0 : index
    %39 = vector.load %arg3[%c5, %c0_39, %c0_40] : memref<9x128x128xbf16, #tpu.memory_space<vmem>>, vector<1x128x128xbf16>
    %40 = vector.shape_cast %39 : vector<1x128x128xbf16> to vector<128x128xbf16>
    %cst_41 = arith.constant dense<0.000000e+00> : vector<128x128xf32>
    %41 = tpu.matmul %38, %40, %cst_41 {dimension_numbers = #tpu.dot_dimension_numbers<[1], [0], [0], [1], [0, 0, 1, 1], [], []>} : vector<128x128xbf16>, vector<128x128xbf16>, vector<128x128xf32> -> vector<128x128xf32>
    %42 = arith.addf %36, %41 : vector<128x128xf32>
    %c0_42 = arith.constant 0 : index
    %c32 = arith.constant 32 : index
    %c0_43 = arith.constant 0 : index
    %43 = vector.load %arg2[%c0_42, %c32, %c0_43] : memref<1x176x128xbf16, #tpu.memory_space<vmem>>, vector<1x128x128xbf16>
    %44 = vector.shape_cast %43 : vector<1x128x128xbf16> to vector<128x128xbf16>
    %c6 = arith.constant 6 : index
    %c0_44 = arith.constant 0 : index
    %c0_45 = arith.constant 0 : index
    %45 = vector.load %arg3[%c6, %c0_44, %c0_45] : memref<9x128x128xbf16, #tpu.memory_space<vmem>>, vector<1x128x128xbf16>
    %46 = vector.shape_cast %45 : vector<1x128x128xbf16> to vector<128x128xbf16>
    %cst_46 = arith.constant dense<0.000000e+00> : vector<128x128xf32>
    %47 = tpu.matmul %44, %46, %cst_46 {dimension_numbers = #tpu.dot_dimension_numbers<[1], [0], [0], [1], [0, 0, 1, 1], [], []>} : vector<128x128xbf16>, vector<128x128xbf16>, vector<128x128xf32> -> vector<128x128xf32>
    %48 = arith.addf %42, %47 : vector<128x128xf32>
    %c0_47 = arith.constant 0 : index
    %c33 = arith.constant 33 : index
    %c0_48 = arith.constant 0 : index
    %49 = vector.load %arg2[%c0_47, %c33, %c0_48] : memref<1x176x128xbf16, #tpu.memory_space<vmem>>, vector<1x128x128xbf16>
    %50 = vector.shape_cast %49 : vector<1x128x128xbf16> to vector<128x128xbf16>
    %c7 = arith.constant 7 : index
    %c0_49 = arith.constant 0 : index
    %c0_50 = arith.constant 0 : index
    %51 = vector.load %arg3[%c7, %c0_49, %c0_50] : memref<9x128x128xbf16, #tpu.memory_space<vmem>>, vector<1x128x128xbf16>
    %52 = vector.shape_cast %51 : vector<1x128x128xbf16> to vector<128x128xbf16>
    %cst_51 = arith.constant dense<0.000000e+00> : vector<128x128xf32>
    %53 = tpu.matmul %50, %52, %cst_51 {dimension_numbers = #tpu.dot_dimension_numbers<[1], [0], [0], [1], [0, 0, 1, 1], [], []>} : vector<128x128xbf16>, vector<128x128xbf16>, vector<128x128xf32> -> vector<128x128xf32>
    %54 = arith.addf %48, %53 : vector<128x128xf32>
    %c0_52 = arith.constant 0 : index
    %c34 = arith.constant 34 : index
    %c0_53 = arith.constant 0 : index
    %55 = vector.load %arg2[%c0_52, %c34, %c0_53] : memref<1x176x128xbf16, #tpu.memory_space<vmem>>, vector<1x128x128xbf16>
    %56 = vector.shape_cast %55 : vector<1x128x128xbf16> to vector<128x128xbf16>
    %c8 = arith.constant 8 : index
    %c0_54 = arith.constant 0 : index
    %c0_55 = arith.constant 0 : index
    %57 = vector.load %arg3[%c8, %c0_54, %c0_55] : memref<9x128x128xbf16, #tpu.memory_space<vmem>>, vector<1x128x128xbf16>
    %58 = vector.shape_cast %57 : vector<1x128x128xbf16> to vector<128x128xbf16>
    %cst_56 = arith.constant dense<0.000000e+00> : vector<128x128xf32>
    %59 = tpu.matmul %56, %58, %cst_56 {dimension_numbers = #tpu.dot_dimension_numbers<[1], [0], [0], [1], [0, 0, 1, 1], [], []>} : vector<128x128xbf16>, vector<128x128xbf16>, vector<128x128xf32> -> vector<128x128xf32>
    %60 = arith.addf %54, %59 : vector<128x128xf32>
    %61 = vector.shape_cast %60 : vector<128x128xf32> to vector<8x16x128xf32>
    %62 = vector.extract_strided_slice %61 {offsets = [0, 0, 0], sizes = [8, 8, 128], strides = [1, 1, 1]} : vector<8x16x128xf32> to vector<8x8x128xf32>
    %63 = vector.shape_cast %0 : vector<1x128xf32> to vector<1x1x128xf32>
    %64 = vector.broadcast %63 : vector<1x1x128xf32> to vector<8x8x128xf32>
    %65 = arith.mulf %62, %64 : vector<8x8x128xf32>
    %66 = vector.shape_cast %1 : vector<1x128xf32> to vector<1x1x128xf32>
    %67 = vector.broadcast %66 : vector<1x1x128xf32> to vector<8x8x128xf32>
    %68 = arith.addf %65, %67 : vector<8x8x128xf32>
    %cst_57 = arith.constant 0.000000e+00 : f32
    %69 = vector.broadcast %cst_57 : f32 to vector<8x8x128xf32>
    %70 = arith.maximumf %68, %69 : vector<8x8x128xf32>
    %71 = arith.truncf %70 : vector<8x8x128xf32> to vector<8x8x128xbf16>
    %c0_58 = arith.constant 0 : index
    %c1_59 = arith.constant 1 : index
    %c1_60 = arith.constant 1 : index
    %c0_61 = arith.constant 0 : index
    %72 = vector.load %arg6[%c0_58, %c1_59, %c1_60, %c0_61] : memref<1x11x16x128xbf16, #tpu.memory_space<vmem>>, vector<1x8x8x128xbf16>
    %73 = vector.shape_cast %72 : vector<1x8x8x128xbf16> to vector<8x8x128xbf16>
    %74 = vector.shape_cast %71 : vector<8x8x128xbf16> to vector<1x8x8x128xbf16>
    tpu.vector_store %arg6[%c0_58, %c1_59, %c1_60, %c0_61], %74 {strides = array<i32>} : memref<1x11x16x128xbf16, #tpu.memory_space<vmem>>, vector<1x8x8x128xbf16>,
    return
  }
  func.func @transform_0(%arg0: i32, %arg1: i32) -> (i32, i32, i32) {
    %c0_i32 = arith.constant 0 : i32
    %c0_i32_0 = arith.constant 0 : i32
    %c0_i32_1 = arith.constant 0 : i32
    return %arg0, %c0_i32, %c0_i32_0 : i32, i32, i32
  }
  func.func @transform_1(%arg0: i32, %arg1: i32) -> (i32, i32, i32) {
    %c0_i32 = arith.constant 0 : i32
    %c0_i32_0 = arith.constant 0 : i32
    %c0_i32_1 = arith.constant 0 : i32
    %c0_i32_2 = arith.constant 0 : i32
    return %c0_i32, %c0_i32_0, %c0_i32_1 : i32, i32, i32
  }
  func.func @transform_2(%arg0: i32, %arg1: i32) -> (i32, i32) {
    %c0_i32 = arith.constant 0 : i32
    %c0_i32_0 = arith.constant 0 : i32
    %c0_i32_1 = arith.constant 0 : i32
    return %c0_i32, %c0_i32_0 : i32, i32
  }
  func.func @transform_3(%arg0: i32, %arg1: i32) -> (i32, i32) {
    %c0_i32 = arith.constant 0 : i32
    %c0_i32_0 = arith.constant 0 : i32
    %c0_i32_1 = arith.constant 0 : i32
    return %c0_i32, %c0_i32_0 : i32, i32
  }
  func.func @transform_4(%arg0: i32, %arg1: i32) -> (i32, i32, i32, i32) {
    %c0_i32 = arith.constant 0 : i32
    %c0_i32_0 = arith.constant 0 : i32
    %c0_i32_1 = arith.constant 0 : i32
    return %arg0, %c0_i32, %c0_i32_0, %arg1 : i32, i32, i32, i32
  }
}

</mosaic_0001>

<bundles_post_ra>
// kernel: _lambda_.5
= control target key start
LH: loop header
LB: loop body
LE: loop exit
PB: predicated region body
PF: predicated region fallthrough
CT: control target
= control target key end

     0   :  { %s1549_s15 = smov 0   ;;  %s1551_s16 = smov 0   ;;  %s1842_s0 = inlined_call_operand.vmem [shape: bf16[2,160,512], index: 0, kind: input, shape index: {}]   ;;  %s1843_s1 = inlined_call_operand.vmem [shape: bf16[1,512,128], index: 1, kind: input, shape index: {}]   ;;  %s1844_s2 = inlined_call_operand.vmem [shape: f32[1,128], index: 2, kind: input, shape index: {}]   ;;  %s1845_s3 = inlined_call_operand.vmem [shape: f32[1,128], index: 3, kind: input, shape index: {}]   ;;  %s1846_s4 = inlined_call_operand.vmem [shape: bf16[2,11,16,128], index: 4, kind: output, shape index: {}]  }
   0x1   :  { %s1553_s17 = smov 0  }
   0x2 LB: > { %s26_s18 = sadd.s32 1, %s1517_s16  ;;  %p1145_p0 = scmp.ge.s32.totalorder %s1521_s17, 1  ;;  %s1521_s17 = sphi %s1553_s17, %s14_s17   ;;  %s1517_s16 = sphi %s1551_s16, %s1852_s16   ;;  %s1513_s15 = sphi %s1549_s15, %s1851_s15  }
   0x3   : > { %p28_p1 = scmp.ge.s32.totalorder %s26_s18, 2  ;;  %p176_p2 = scmp.lt.s32.totalorder %s1521_s17, 3 }
   0x5   : > { %s1854_s18 = smov (%p28_p1, %s26_s18), 0  ;;  %p177_p3 = pnand %p1145_p0, %p176_p2 }
   0x6   : > { %v1419_v0 = vld [vmem:[%s1843_s1 + $0x40] sm:$0xff] (!%p177_p3)   ;;  %v1423_v4 = vld [vmem:[%s1843_s1 + $0x48] sm:$0xff] (!%p177_p3)   ;;  %v1427_v8 = vld [vmem:[%s1843_s1 + $0x50] sm:$0xff] (!%p177_p3)   ;;  %p205_p4 = scmp.lt.s32.totalorder (!%p177_p3), %s1513_s15, 1  ;;  %vm1010_vm0 = vcmask (!%p177_p3), 1043456   ;;  %vm1016_vm2 = vcmask (!%p177_p3), 1040384  }
   0x7   : > { %180 = sbr.rel (%p177_p3) target bundleno = 328 (0x148), region = 36  ;;  %v1420_v1 = vld [vmem:[%s1843_s1 + $0xc0] sm:$0xff] (!%p177_p3)   ;;  %1264 = vmatprep.subr.bf16.mxu0 (!%p177_p3), %v1419_v0  ;;  %v1424_v5 = vld [vmem:[%s1843_s1 + $0xc8] sm:$0xff] (!%p177_p3)   ;;  %v1428_v9 = vld [vmem:[%s1843_s1 + $0xd0] sm:$0xff] (!%p177_p3)   ;;  %v1523_v0 = vmov (!%p177_p3), 0  }
   0x8   : > { %v1421_v2 = vld [vmem:[%s1843_s1] sm:$0xff] (!%p177_p3)   ;;  %1328 = vmatprep.subr.bf16.mxu1 (!%p177_p3), %v1420_v1  ;;  %v1425_v6 = vld [vmem:[%s1843_s1 + $0x8] sm:$0xff] (!%p177_p3)   ;;  %v1429_v10 = vld [vmem:[%s1843_s1 + $0x10] sm:$0xff] (!%p177_p3)   ;;  %vm1011_vm1 = vsmask.f32 (!%p177_p3), 7938 }
   0x9   : > { %v1422_v3 = vld [vmem:[%s1843_s1 + $0x80] sm:$0xff] (!%p177_p3)   ;;  %1265 = vmatpush3.bf16.msra.mxu0 (!%p177_p3), %v1421_v2  ;;  %v1426_v7 = vld [vmem:[%s1843_s1 + $0x88] sm:$0xff] (!%p177_p3)   ;;  %v1430_v11 = vld [vmem:[%s1843_s1 + $0x90] sm:$0xff] (!%p177_p3)   ;;  %vm1017_vm3 = vsmask.f32 (!%p177_p3), 256 }
   0xa   : > { %1329 = vmatpush3.bf16.msra.mxu1 (!%p177_p3), %v1422_v3  ;;  %1266 = vmatprep.subr.bf16.mxu0 (!%p177_p3), %v1423_v4  ;;  %v1431_v12 = vld [vmem:[%s1843_s1 + $0x58] sm:$0xff] (!%p177_p3)   ;;  %v1435_v16 = vld [vmem:[%s1843_s1 + $0x60] sm:$0xff] (!%p177_p3)   ;;  %v1439_v20 = vld [vmem:[%s1843_s1 + $0x68] sm:$0xff] (!%p177_p3)  }
   0xb   : > { %1330 = vmatprep.subr.bf16.mxu1 (!%p177_p3), %v1424_v5  ;;  %v1432_v13 = vld [vmem:[%s1843_s1 + $0xd8] sm:$0xff] (!%p177_p3)   ;;  %v1436_v17 = vld [vmem:[%s1843_s1 + $0xe0] sm:$0xff] (!%p177_p3)   ;;  %v1440_v21 = vld [vmem:[%s1843_s1 + $0xe8] sm:$0xff] (!%p177_p3)  }
   0xc   : > { %v1433_v14 = vld [vmem:[%s1843_s1 + $0x18] sm:$0xff] (!%p177_p3)   ;;  %v1437_v18 = vld [vmem:[%s1843_s1 + $0x20] sm:$0xff] (!%p177_p3)   ;;  %v1441_v22 = vld [vmem:[%s1843_s1 + $0x28] sm:$0xff] (!%p177_p3)  }
   0xd   : > { %1267 = vmatpush3.bf16.msra.mxu0 (!%p177_p3), %v1425_v6  ;;  %v1434_v15 = vld [vmem:[%s1843_s1 + $0x98] sm:$0xff] (!%p177_p3)   ;;  %v1438_v19 = vld [vmem:[%s1843_s1 + $0xa0] sm:$0xff] (!%p177_p3)   ;;  %v1442_v23 = vld [vmem:[%s1843_s1 + $0xa8] sm:$0xff] (!%p177_p3)  }
   0xe   : > { %1331 = vmatpush3.bf16.msra.mxu1 %v1426_v7  ;;  %1268 = vmatprep.subr.bf16.mxu0 %v1427_v8  ;;  %s1856_s15 = smov (!%p205_p4, %s1513_s15), 1  ;;  %v1443_v24 = vld [vmem:[%s1843_s1 + $0x70] sm:$0xff]   ;;  %v1447_v28 = vld [vmem:[%s1843_s1 + $0x78] sm:$0xff]   ;;  %vm1747_vm4 = vmand %vm1010_vm0, %vm1011_vm1 }
   0xf   : > { %1332 = vmatprep.subr.bf16.mxu1 %v1428_v9  ;;  %v1444_v25 = vld [vmem:[%s1843_s1 + $0xf0] sm:$0xff]   ;;  %s1392_s27 = smul.u32 320, %s1856_s15  ;;  %v1448_v29 = vld [vmem:[%s1843_s1 + $0xf8] sm:$0xff]   ;;  %vm1753_vm5 = vmand %vm1016_vm2, %vm1017_vm3 }
  0x10   : > { %v1445_v26 = vld [vmem:[%s1843_s1 + $0x30] sm:$0xff]   ;;  %v1449_v30 = vld [vmem:[%s1843_s1 + $0x38] sm:$0xff]   ;;  %s1393_s21 = smul.u32 88, %s1856_s15 }
  0x11   : > { %1269 = vmatpush3.bf16.msra.mxu0 %v1429_v10  ;;  %v1446_v27 = vld [vmem:[%s1843_s1 + $0xb0] sm:$0xff]   ;;  %s1667_s12 = scalar_lea.vmem %s1842_s0, %s1392_s27  ;;  %v1450_v31 = vld [vmem:[%s1843_s1 + $0xb8] sm:$0xff]   ;;  %v1738_v10 = vld [vmem:[%s1844_s2] ss:$0 sm:$0xff] }
  0x12   : > { %1333 = vmatpush3.bf16.msra.mxu1 %v1430_v11  ;;  %1270 = vmatprep.subr.bf16.mxu0 %v1431_v12  ;;  %v1451_v32 = vld [vmem:[%s1667_s12] ss:$16 sps:$4 sm:$0xff]   ;;  %v1453_v33 = vld [vmem:[%s1667_s12 + $0x4] ss:$16 sps:$4 sm:$0xff]   ;;  %v1454_v34 = vld [vmem:[%s1667_s12 + $0x8] ss:$16 sps:$4 sm:$0xff]   ;;  %s1711_s24 = scalar_lea.vmem %s1846_s4, %s1393_s21 }
  0x13   : > { %1334 = vmatprep.subr.bf16.mxu1 %v1432_v13  ;;  %v1456_v35 = vld [vmem:[%s1667_s12 + $0xc] ss:$16 sps:$4 sm:$0xff]   ;;  %723 = vmatprep.mubr.bf16.mxu0 %v1453_v33  ;;  %v1457_v36 = vld [vmem:[%s1667_s12 + $0x24] ss:$16 sps:$4 sm:$0xff]   ;;  %v1461_v38 = vld [vmem:[%s1667_s12 + $0x20] ss:$16 sps:$4 sm:$0xff]  }
  0x14   : > { %812 = vmatprep.mubr.bf16.mxu1 %v1456_v35  ;;  %v1459_v37 = vld [vmem:[%s1667_s12 + $0x2c] ss:$16 sps:$4 sm:$0xff]   ;;  %v1462_v39 = vld [vmem:[%s1667_s12 + $0x28] ss:$16 sps:$4 sm:$0xff]   ;;  %v1463_v40 = vld [vmem:[%s1667_s12 + $0x44] ss:$16 sps:$4 sm:$0xff]  }
  0x15   : > { %1271 = vmatpush3.bf16.msra.mxu0 %v1433_v14  ;;  %v1465_v41 = vld [vmem:[%s1667_s12 + $0x4c] ss:$16 sps:$4 sm:$0xff]   ;;  %v1467_v42 = vld [vmem:[%s1667_s12 + $0x40] ss:$16 sps:$4 sm:$0xff]   ;;  %v1468_v43 = vld [vmem:[%s1667_s12 + $0x48] ss:$16 sps:$4 sm:$0xff]  }
  0x16   : > { %1335 = vmatpush3.bf16.msra.mxu1 %v1434_v15  ;;  %1272 = vmatprep.subr.bf16.mxu0 %v1435_v16  ;;  %v1469_v44 = vld [vmem:[%s1667_s12 + $0x64] ss:$16 sps:$4 sm:$0xff]   ;;  %v1471_v45 = vld [vmem:[%s1667_s12 + $0x6c] ss:$16 sps:$4 sm:$0xff]   ;;  %v1473_v46 = vld [vmem:[%s1667_s12 + $0x60] ss:$16 sps:$4 sm:$0xff]  }
  0x17   : > { %1336 = vmatprep.subr.bf16.mxu1 %v1436_v17  ;;  %v1474_v47 = vld [vmem:[%s1667_s12 + $0x68] ss:$16 sps:$4 sm:$0xff]   ;;  %v1475_v48 = vld [vmem:[%s1667_s12 + $0x84] ss:$16 sps:$4 sm:$0xff]   ;;  %v1477_v49 = vld [vmem:[%s1667_s12 + $0x8c] ss:$16 sps:$4 sm:$0xff]  }
  0x18   : > { %v1479_v50 = vld [vmem:[%s1667_s12 + $0x80] ss:$16 sps:$4 sm:$0xff]   ;;  %v1480_v51 = vld [vmem:[%s1667_s12 + $0x88] ss:$16 sps:$4 sm:$0xff]   ;;  %v1481_v52 = vld [vmem:[%s1667_s12 + $0xa4] ss:$16 sps:$4 sm:$0xff]  }
  0x19   : > { %1273 = vmatpush3.bf16.msra.mxu0 %v1437_v18  ;;  %v1483_v53 = vld [vmem:[%s1667_s12 + $0xac] ss:$16 sps:$4 sm:$0xff]   ;;  %v1485_v54 = vld [vmem:[%s1667_s12 + $0xa0] ss:$16 sps:$4 sm:$0xff]   ;;  %v1486_v55 = vld [vmem:[%s1667_s12 + $0xa8] ss:$16 sps:$4 sm:$0xff]  }
  0x1a   : > { %1337 = vmatpush3.bf16.msra.mxu1 %v1438_v19  ;;  %1274 = vmatprep.subr.bf16.mxu0 %v1439_v20  ;;  %v1487_v56 = vld [vmem:[%s1667_s12 + $0xc4] ss:$16 sps:$4 sm:$0xff]   ;;  %v1489_v57 = vld [vmem:[%s1667_s12 + $0xcc] ss:$16 sps:$4 sm:$0xff]   ;;  %v1491_v58 = vld [vmem:[%s1667_s12 + $0xc0] ss:$16 sps:$4 sm:$0xff]  }
  0x1b   : > { %1338 = vmatprep.subr.bf16.mxu1 %v1440_v21  ;;  %v1492_v59 = vld [vmem:[%s1667_s12 + $0xc8] ss:$16 sps:$4 sm:$0xff]   ;;  %v1493_v60 = vld [vmem:[%s1667_s12 + $0xe4] ss:$16 sps:$4 sm:$0xff]   ;;  %v1495_v61 = vld [vmem:[%s1667_s12 + $0xec] ss:$16 sps:$4 sm:$0xff]  }
  0x1c   : > { %v1497_v62 = vld [vmem:[%s1667_s12 + $0xe0] ss:$16 sps:$4 sm:$0xff]   ;;  %v1498_v63 = vld [vmem:[%s1667_s12 + $0xe8] ss:$16 sps:$4 sm:$0xff]   ;;  %223 = vst [vmem:[%s1711_s24 + $0x8] sm:$0xf] %v1523_v0 }
  0x1d   : > { %1275 = vmatpush3.bf16.msra.mxu0 %v1441_v22  ;;  %224 = vst [vmem:[%s1711_s24 + $0xc] sm:$0xf] %v1523_v0  ;;  %221 = vst [vmem:[%s1711_s24] sm:$0xf] %v1523_v0  ;;  %v1743_v13 = vld [vmem:[%s1845_s3] ss:$0 sm:$0xff] }
  0x1e   : > { %1339 = vmatpush3.bf16.msra.mxu1 %v1442_v23  ;;  %1276 = vmatprep.subr.bf16.mxu0 %v1443_v24  ;;  %222 = vst [vmem:[%s1711_s24 + $0x4] sm:$0xf] %v1523_v0  ;;  %225 = vst [vmem:[%s1711_s24 + $0x10] sm:$0xf] %v1523_v0 }
  0x1f   : > { %1340 = vmatprep.subr.bf16.mxu1 %v1444_v25  ;;  %226 = vst [vmem:[%s1711_s24 + $0x14] sm:$0xf] %v1523_v0  ;;  %227 = vst [vmem:[%s1711_s24 + $0x18] sm:$0xf] %v1523_v0 }
  0x20   : > { %228 = vst [vmem:[%s1711_s24 + $0x1c] sm:$0xf] %v1523_v0  ;;  %229 = vst [vmem:[%s1711_s24 + $0x20] sm:$0xf] %v1523_v0 }
  0x21   : > { %1277 = vmatpush3.bf16.msra.mxu0 %v1445_v26  ;;  %230 = vst [vmem:[%s1711_s24 + $0x24] sm:$0xf] %v1523_v0  ;;  %231 = vst [vmem:[%s1711_s24 + $0x28] sm:$0xf] %v1523_v0 }
  0x22   : > { %1341 = vmatpush3.bf16.msra.mxu1 %v1446_v27  ;;  %1278 = vmatprep.subr.bf16.mxu0 %v1447_v28  ;;  %232 = vst [vmem:[%s1711_s24 + $0x2c] sm:$0xf] %v1523_v0  ;;  %233 = vst [vmem:[%s1711_s24 + $0x30] sm:$0xf] %v1523_v0 }
  0x23   : > { %1342 = vmatprep.subr.bf16.mxu1 %v1448_v29  ;;  %234 = vst [vmem:[%s1711_s24 + $0x34] sm:$0xf] %v1523_v0  ;;  %235 = vst [vmem:[%s1711_s24 + $0x38] sm:$0xf] %v1523_v0  ;;  %v1222_v33 = vld [vmem:[%s1711_s24 + $0x8] sm:$0xf] }
  0x24   : > { %236 = vst [vmem:[%s1711_s24 + $0x3c] sm:$0xf] %v1523_v0  ;;  %237 = vst [vmem:[%s1711_s24 + $0x40] sm:$0xf] %v1523_v0  ;;  %v1224_v35 = vld [vmem:[%s1711_s24 + $0xc] sm:$0x1] }
  0x25   : > { %1279 = vmatpush3.bf16.msra.mxu0 %v1449_v30  ;;  %238 = vst [vmem:[%s1711_s24 + $0x44] sm:$0xf] %v1523_v0  ;;  %239 = vst [vmem:[%s1711_s24 + $0x48] sm:$0xf] %v1523_v0 }
  0x26   : > { %1343 = vmatpush3.bf16.msra.mxu1 %v1450_v31  ;;  %240 = vst [vmem:[%s1711_s24 + $0x4c] sm:$0xf] %v1523_v0  ;;  %241 = vst [vmem:[%s1711_s24 + $0x50] sm:$0xf] %v1523_v0 }
  0x27   : > { %242 = vst [vmem:[%s1711_s24 + $0x54] sm:$0xf] %v1523_v0 }
  0x28   : > { %724 = vmatmul.mubr.bf16.vlgmr.msra.gmra.mrb[0].mxu0 %v1451_v32 }
  0x29   : > { %813 = vmatmul.mubr.bf16.vlgmr.msra.gmra.mrb[0].mxu1 %v1454_v34  ;;  %730 = vmatprep.mubr.bf16.mxu0 %v1457_v36 }
  0x2a   : > { %819 = vmatprep.mubr.bf16.mxu1 %v1459_v37 }
  0x30   : > { %731 = vmatmul.mubr.bf16.gmra.mrb[4].mxu0 %v1461_v38 }
  0x31   : > { %820 = vmatmul.mubr.bf16.gmra.mrb[4].mxu1 %v1462_v39  ;;  %737 = vmatprep.mubr.bf16.mxu0 %v1463_v40 }
  0x32   : > { %826 = vmatprep.mubr.bf16.mxu1 %v1465_v41 }
  0x38   : > { %738 = vmatmul.mubr.bf16.gmra.mrb[8].mxu0 %v1467_v42 }
  0x39   : > { %827 = vmatmul.mubr.bf16.gmra.mrb[8].mxu1 %v1468_v43  ;;  %744 = vmatprep.mubr.bf16.mxu0 %v1469_v44 }
  0x3a   : > { %833 = vmatprep.mubr.bf16.mxu1 %v1471_v45 }
  0x40   : > { %745 = vmatmul.mubr.bf16.gmra.mrb[12].mxu0 %v1473_v46 }
  0x41   : > { %834 = vmatmul.mubr.bf16.gmra.mrb[12].mxu1 %v1474_v47  ;;  %751 = vmatprep.mubr.bf16.mxu0 %v1475_v48 }
  0x42   : > { %840 = vmatprep.mubr.bf16.mxu1 %v1477_v49 }
  0x48   : > { %752 = vmatmul.mubr.bf16.gmra.mrb[16].mxu0 %v1479_v50 }
  0x49   : > { %841 = vmatmul.mubr.bf16.gmra.mrb[16].mxu1 %v1480_v51  ;;  %758 = vmatprep.mubr.bf16.mxu0 %v1481_v52 }
  0x4a   : > { %847 = vmatprep.mubr.bf16.mxu1 %v1483_v53 }
  0x50   : > { %759 = vmatmul.mubr.bf16.gmra.mrb[20].mxu0 %v1485_v54 }
  0x51   : > { %848 = vmatmul.mubr.bf16.gmra.mrb[20].mxu1 %v1486_v55  ;;  %765 = vmatprep.mubr.bf16.mxu0 %v1487_v56 }
  0x52   : > { %854 = vmatprep.mubr.bf16.mxu1 %v1489_v57  ;;  %v1226_v57 = vld [vmem:[%s1711_s24 + $0x10] sm:$0xf] }
  0x58   : > { %766 = vmatmul.mubr.bf16.gmra.mrb[24].mxu0 %v1491_v58  ;;  %v1228_v58 = vld [vmem:[%s1711_s24 + $0x14] sm:$0x1] }
  0x59   : > { %855 = vmatmul.mubr.bf16.gmra.mrb[24].mxu1 %v1492_v59  ;;  %772 = vmatprep.mubr.bf16.mxu0 %v1493_v60 }
  0x5a   : > { %861 = vmatprep.mubr.bf16.mxu1 %v1495_v61 }
  0x60   : > { %773 = vmatmul.mubr.bf16.gmra.mrb[28].mxu0 %v1497_v62 }
  0x61   : > { %862 = vmatmul.mubr.bf16.gmra.mrb[28].mxu1 %v1498_v63 }
  0xfb   : > { %v1280_v1 = vpop.f32.mrb[0].mxu0 }
  0xfc   : > { %v1344_v2 = vpop.f32.mrb[0].mxu1  ;;  %v1281_v3 = vpop.f32.mrb[1].mxu0 }
  0xfd   : > { %v1282_v4 = vadd.f32 %v1281_v3, %v1280_v1  ;;  %v1345_v5 = vpop.f32.mrb[1].mxu1  ;;  %v1283_v6 = vpop.f32.mrb[2].mxu0 }
  0xfe   : > { %v1346_v7 = vadd.f32 %v1345_v5, %v1344_v2  ;;  %v1347_v8 = vpop.f32.mrb[2].mxu1  ;;  %v1284_v9 = vpop.f32.mrb[3].mxu0 }
  0xff   : > { %v1348_v11 = vpop.f32.mrb[3].mxu1 }
 0x100   : > { %v815_v12 = vadd.f32 %v1346_v7, %v1282_v4 }
 0x102   : > { %v875_v14 = vmul.f32 %v1738_v10, %v815_v12 }
 0x103   : > { %v1286_v15 = vpop.f32.mrb[4].mxu0 }
 0x104   : > { %v889_v16 = vadd.f32 %v1743_v13, %v875_v14  ;;  %v1350_v17 = vpop.f32.mrb[4].mxu1  ;;  %v1287_v18 = vpop.f32.mrb[5].mxu0 }
 0x105   : > { %v1288_v19 = vadd.f32 %v1287_v18, %v1286_v15  ;;  %v1351_v20 = vpop.f32.mrb[5].mxu1  ;;  %v1289_v21 = vpop.f32.mrb[6].mxu0  ;;  %v1230_v18 = vld [vmem:[%s1711_s24 + $0x18] sm:$0xf] }
 0x106   : > { %v1256_v22 = vpack.c.bf16 %v889_v16, %v889_v16  ;;  %v1352_v23 = vadd.f32 %v1351_v20, %v1350_v17  ;;  %v1353_v24 = vpop.f32.mrb[6].mxu1  ;;  %v1290_v25 = vpop.f32.mrb[7].mxu0 }
 0x107   : > { %v1354_v26 = vpop.f32.mrb[7].mxu1 }
 0x108   : > { %v930_v27 = vshrl.u32 %v1256_v22, 16  ;;  %v822_v28 = vadd.f32 %v1352_v23, %v1288_v19  ;;  %v933_v30 = vshll.u32 %v1256_v22, 16  ;;  %v1232_v19 = vld [vmem:[%s1711_s24 + $0x1c] sm:$0x1] }
 0x10a   : > { %v932_v29 = vrot.slane %v930_v27, 7  ;;  %v876_v32 = vmul.f32 %v1738_v10, %v822_v28 }
 0x10b   : > { %v1292_v36 = vpop.f32.mrb[8].mxu0 }
 0x10c   : > { %v935_v37 = vor.u32 %v933_v30, %v932_v29  ;;  %v936_v38 = vrot.slane %v932_v29, 4  ;;  %v890_v39 = vadd.f32 %v1743_v13, %v876_v32  ;;  %v1356_v40 = vpop.f32.mrb[8].mxu1  ;;  %v1293_v41 = vpop.f32.mrb[9].mxu0 }
 0x10d   : > { %v1294_v42 = vadd.f32 %v1293_v41, %v1292_v36  ;;  %v1357_v43 = vpop.f32.mrb[9].mxu1  ;;  %v1295_v44 = vpop.f32.mrb[10].mxu0 }
 0x10e   : > { %v1014_v45 = vsel %vm1747_vm4, %v935_v37, %v1222_v33  ;;  %v1020_v46 = vsel %vm1753_vm5, %v936_v38, %v1224_v35  ;;  %v1257_v47 = vpack.c.bf16 %v890_v39, %v890_v39  ;;  %v1358_v48 = vadd.f32 %v1357_v43, %v1356_v40  ;;  %v1359_v49 = vpop.f32.mrb[10].mxu1  ;;  %v1296_v50 = vpop.f32.mrb[11].mxu0  ;;  %v1234_v43 = vld [vmem:[%s1711_s24 + $0x20] sm:$0xf]  ;;  %v1236_v44 = vld [vmem:[%s1711_s24 + $0x24] sm:$0x1] }
 0x10f   : > { %1223 = vst [vmem:[%s1711_s24 + $0x8] sm:$0xf] %v1014_v45  ;;  %1225 = vst [vmem:[%s1711_s24 + $0xc] sm:$0x1] %v1020_v46  ;;  %v1360_v51 = vpop.f32.mrb[11].mxu1 }
 0x110   : > { %v938_v52 = vshrl.u32 %v1257_v47, 16  ;;  %v829_v53 = vadd.f32 %v1358_v48, %v1294_v42  ;;  %v941_v55 = vshll.u32 %v1257_v47, 16 }
 0x112   : > { %v940_v54 = vrot.slane %v938_v52, 7  ;;  %v877_v56 = vmul.f32 %v1738_v10, %v829_v53 }
 0x113   : > { %v1298_v59 = vpop.f32.mrb[12].mxu0 }
 0x114   : > { %v943_v60 = vor.u32 %v941_v55, %v940_v54  ;;  %v944_v61 = vrot.slane %v940_v54, 4  ;;  %v891_v62 = vadd.f32 %v1743_v13, %v877_v56  ;;  %v1362_v63 = vpop.f32.mrb[12].mxu1  ;;  %v1299_v0 = vpop.f32.mrb[13].mxu0 }
 0x115   : > { %v1300_v1 = vadd.f32 %v1299_v0, %v1298_v59  ;;  %v1363_v2 = vpop.f32.mrb[13].mxu1  ;;  %v1301_v3 = vpop.f32.mrb[14].mxu0 }
 0x116   : > { %v1023_v4 = vsel %vm1747_vm4, %v943_v60, %v1226_v57  ;;  %v1026_v5 = vsel %vm1753_vm5, %v944_v61, %v1228_v58  ;;  %v1258_v6 = vpack.c.bf16 %v891_v62, %v891_v62  ;;  %v1364_v7 = vadd.f32 %v1363_v2, %v1362_v63  ;;  %v1365_v8 = vpop.f32.mrb[14].mxu1  ;;  %v1302_v9 = vpop.f32.mrb[15].mxu0  ;;  %v1238_v2 = vld [vmem:[%s1711_s24 + $0x28] sm:$0xf]  ;;  %v1240_v3 = vld [vmem:[%s1711_s24 + $0x2c] sm:$0x1] }
 0x117   : > { %1227 = vst [vmem:[%s1711_s24 + $0x10] sm:$0xf] %v1023_v4  ;;  %1229 = vst [vmem:[%s1711_s24 + $0x14] sm:$0x1] %v1026_v5  ;;  %v1366_v11 = vpop.f32.mrb[15].mxu1 }
 0x118   : > { %v946_v12 = vshrl.u32 %v1258_v6, 16  ;;  %v836_v14 = vadd.f32 %v1364_v7, %v1300_v1  ;;  %v949_v16 = vshll.u32 %v1258_v6, 16 }
 0x11a   : > { %v948_v15 = vrot.slane %v946_v12, 7  ;;  %v878_v17 = vmul.f32 %v1738_v10, %v836_v14 }
 0x11b   : > { %v1304_v20 = vpop.f32.mrb[16].mxu0 }
 0x11c   : > { %v951_v21 = vor.u32 %v949_v16, %v948_v15  ;;  %v952_v22 = vrot.slane %v948_v15, 4  ;;  %v892_v23 = vadd.f32 %v1743_v13, %v878_v17  ;;  %v1368_v24 = vpop.f32.mrb[16].mxu1  ;;  %v1305_v25 = vpop.f32.mrb[17].mxu0 }
 0x11d   : > { %v1306_v26 = vadd.f32 %v1305_v25, %v1304_v20  ;;  %v1369_v27 = vpop.f32.mrb[17].mxu1  ;;  %v1307_v28 = vpop.f32.mrb[18].mxu0 }
 0x11e   : > { %v1029_v29 = vsel %vm1747_vm4, %v951_v21, %v1230_v18  ;;  %v1032_v30 = vsel %vm1753_vm5, %v952_v22, %v1232_v19  ;;  %v1259_v32 = vpack.c.bf16 %v892_v23, %v892_v23  ;;  %v1370_v33 = vadd.f32 %v1369_v27, %v1368_v24  ;;  %v1371_v35 = vpop.f32.mrb[18].mxu1  ;;  %v1308_v36 = vpop.f32.mrb[19].mxu0  ;;  %v1242_v27 = vld [vmem:[%s1711_s24 + $0x30] sm:$0xf]  ;;  %v1244_v28 = vld [vmem:[%s1711_s24 + $0x34] sm:$0x1] }
 0x11f   : > { %1231 = vst [vmem:[%s1711_s24 + $0x18] sm:$0xf] %v1029_v29  ;;  %1233 = vst [vmem:[%s1711_s24 + $0x1c] sm:$0x1] %v1032_v30  ;;  %v1372_v37 = vpop.f32.mrb[19].mxu1 }
 0x120   : > { %v954_v38 = vshrl.u32 %v1259_v32, 16  ;;  %v843_v39 = vadd.f32 %v1370_v33, %v1306_v26  ;;  %v957_v41 = vshll.u32 %v1259_v32, 16 }
 0x122   : > { %v956_v40 = vrot.slane %v954_v38, 7  ;;  %v879_v42 = vmul.f32 %v1738_v10, %v843_v39 }
 0x123   : > { %v1310_v45 = vpop.f32.mrb[20].mxu0 }
 0x124   : > { %v959_v46 = vor.u32 %v957_v41, %v956_v40  ;;  %v960_v47 = vrot.slane %v956_v40, 4  ;;  %v893_v48 = vadd.f32 %v1743_v13, %v879_v42  ;;  %v1374_v49 = vpop.f32.mrb[20].mxu1  ;;  %v1311_v50 = vpop.f32.mrb[21].mxu0 }
 0x125   : > { %v1312_v51 = vadd.f32 %v1311_v50, %v1310_v45  ;;  %v1375_v52 = vpop.f32.mrb[21].mxu1  ;;  %v1313_v53 = vpop.f32.mrb[22].mxu0 }
 0x126   : > { %v1035_v54 = vsel %vm1747_vm4, %v959_v46, %v1234_v43  ;;  %v1038_v55 = vsel %vm1753_vm5, %v960_v47, %v1236_v44  ;;  %v1260_v56 = vpack.c.bf16 %v893_v48, %v893_v48  ;;  %v1376_v57 = vadd.f32 %v1375_v52, %v1374_v49  ;;  %v1377_v58 = vpop.f32.mrb[22].mxu1  ;;  %v1314_v59 = vpop.f32.mrb[23].mxu0  ;;  %v1246_v52 = vld [vmem:[%s1711_s24 + $0x38] sm:$0xf]  ;;  %v1248_v53 = vld [vmem:[%s1711_s24 + $0x3c] sm:$0x1] }
 0x127   : > { %1235 = vst [vmem:[%s1711_s24 + $0x20] sm:$0xf] %v1035_v54  ;;  %1237 = vst [vmem:[%s1711_s24 + $0x24] sm:$0x1] %v1038_v55  ;;  %v1378_v60 = vpop.f32.mrb[23].mxu1 }
 0x128   : > { %v962_v61 = vshrl.u32 %v1260_v56, 16  ;;  %v850_v62 = vadd.f32 %v1376_v57, %v1312_v51  ;;  %v965_v0 = vshll.u32 %v1260_v56, 16 }
 0x12a   : > { %v964_v63 = vrot.slane %v962_v61, 7  ;;  %v880_v1 = vmul.f32 %v1738_v10, %v850_v62  ;;  %v1250_v62 = vld [vmem:[%s1711_s24 + $0x40] sm:$0xf] }
 0x12b   : > { %v1316_v4 = vpop.f32.mrb[24].mxu0 }
 0x12c   : > { %v967_v5 = vor.u32 %v965_v0, %v964_v63  ;;  %v968_v6 = vrot.slane %v964_v63, 4  ;;  %v894_v7 = vadd.f32 %v1743_v13, %v880_v1  ;;  %v1380_v8 = vpop.f32.mrb[24].mxu1  ;;  %v1317_v9 = vpop.f32.mrb[25].mxu0  ;;  %v1252_v63 = vld [vmem:[%s1711_s24 + $0x44] sm:$0x1] }
 0x12d   : > { %v1318_v11 = vadd.f32 %v1317_v9, %v1316_v4  ;;  %v1381_v12 = vpop.f32.mrb[25].mxu1  ;;  %v1319_v14 = vpop.f32.mrb[26].mxu0 }
 0x12e   : > { %v1041_v15 = vsel %vm1747_vm4, %v967_v5, %v1238_v2  ;;  %v1044_v16 = vsel %vm1753_vm5, %v968_v6, %v1240_v3  ;;  %v1261_v17 = vpack.c.bf16 %v894_v7, %v894_v7  ;;  %v1382_v18 = vadd.f32 %v1381_v12, %v1380_v8  ;;  %v1383_v19 = vpop.f32.mrb[26].mxu1  ;;  %v1320_v20 = vpop.f32.mrb[27].mxu0 }
 0x12f   : > { %1239 = vst [vmem:[%s1711_s24 + $0x28] sm:$0xf] %v1041_v15  ;;  %1241 = vst [vmem:[%s1711_s24 + $0x2c] sm:$0x1] %v1044_v16  ;;  %v1384_v21 = vpop.f32.mrb[27].mxu1 }
 0x130   : > { %v970_v22 = vshrl.u32 %v1261_v17, 16  ;;  %v857_v23 = vadd.f32 %v1382_v18, %v1318_v11  ;;  %v973_v25 = vshll.u32 %v1261_v17, 16 }
 0x132   : > { %v972_v24 = vrot.slane %v970_v22, 7  ;;  %v881_v26 = vmul.f32 %v1738_v10, %v857_v23 }
 0x133   : > { %v1322_v29 = vpop.f32.mrb[28].mxu0 }
 0x134   : > { %v975_v30 = vor.u32 %v973_v25, %v972_v24  ;;  %v976_v32 = vrot.slane %v972_v24, 4  ;;  %v895_v33 = vadd.f32 %v1743_v13, %v881_v26  ;;  %v1386_v35 = vpop.f32.mrb[28].mxu1  ;;  %v1323_v36 = vpop.f32.mrb[29].mxu0 }
 0x135   : > { %v1324_v37 = vadd.f32 %v1323_v36, %v1322_v29  ;;  %v1387_v38 = vpop.f32.mrb[29].mxu1  ;;  %v1325_v39 = vpop.f32.mrb[30].mxu0 }
 0x136   : > { %v1047_v40 = vsel %vm1747_vm4, %v975_v30, %v1242_v27  ;;  %v1050_v41 = vsel %vm1753_vm5, %v976_v32, %v1244_v28  ;;  %v1262_v42 = vpack.c.bf16 %v895_v33, %v895_v33  ;;  %v1388_v43 = vadd.f32 %v1387_v38, %v1386_v35  ;;  %v1389_v44 = vpop.f32.mrb[30].mxu1  ;;  %v1326_v45 = vpop.f32.mrb[31].mxu0 }
 0x137   : > { %1243 = vst [vmem:[%s1711_s24 + $0x30] sm:$0xf] %v1047_v40  ;;  %1245 = vst [vmem:[%s1711_s24 + $0x34] sm:$0x1] %v1050_v41  ;;  %v1390_v46 = vpop.f32.mrb[31].mxu1 }
 0x138   : > { %v978_v47 = vshrl.u32 %v1262_v42, 16  ;;  %v864_v48 = vadd.f32 %v1388_v43, %v1324_v37  ;;  %v981_v50 = vshll.u32 %v1262_v42, 16 }
 0x13a   : > { %v980_v49 = vrot.slane %v978_v47, 7  ;;  %v882_v51 = vmul.f32 %v1738_v10, %v864_v48 }
 0x13c   : > { %v983_v54 = vor.u32 %v981_v50, %v980_v49  ;;  %v984_v55 = vrot.slane %v980_v49, 4  ;;  %v896_v56 = vadd.f32 %v1743_v13, %v882_v51 }
 0x13e   : > { %v1053_v57 = vsel %vm1747_vm4, %v983_v54, %v1246_v52  ;;  %v1056_v58 = vsel %vm1753_vm5, %v984_v55, %v1248_v53  ;;  %v1263_v59 = vpack.c.bf16 %v896_v56, %v896_v56 }
 0x13f   : > { %1247 = vst [vmem:[%s1711_s24 + $0x38] sm:$0xf] %v1053_v57  ;;  %1249 = vst [vmem:[%s1711_s24 + $0x3c] sm:$0x1] %v1056_v58 }
 0x140   : > { %v986_v60 = vshrl.u32 %v1263_v59, 16  ;;  %v989_v10 = vshll.u32 %v1263_v59, 16 }
 0x142   : > { %v988_v61 = vrot.slane %v986_v60, 7 }
 0x144   : > { %v991_v0 = vor.u32 %v989_v10, %v988_v61  ;;  %v992_v1 = vrot.slane %v988_v61, 4 }
 0x146   : > { %v1059_v13 = vsel %vm1747_vm4, %v991_v0, %v1250_v62  ;;  %v1062_v2 = vsel %vm1753_vm5, %v992_v1, %v1252_v63 }
 0x147   : > { %1251 = vst [vmem:[%s1711_s24 + $0x40] sm:$0xf] %v1059_v13  ;;  %1253 = vst [vmem:[%s1711_s24 + $0x44] sm:$0x1] %v1062_v2 }
 0x148 PF: > { %s14_s17 = sadd.s32 1, %s1521_s17   ;;  %s1851_s15 = smov %s1517_s16 }
 0x149   : > { %p11_p5 = scmp.ge.s32.totalorder %s14_s17, 4   ;;  %s1852_s16 = smov %s1854_s18 }
 0x14b   :  { %13 = sbr.rel (!%p11_p5) target bundleno = 2 (0x2), region = 67 }

// kernel: _lambda_.6
= control target key start
LH: loop header
LB: loop body
LE: loop exit
PB: predicated region body
PF: predicated region fallthrough
CT: control target
= control target key end

     0   :  { %s4771_s15 = smov 0   ;;  %s4773_s16 = smov 0   ;;  %s5818_s0 = inlined_call_operand.vmem [shape: bf16[2,160,512], index: 0, kind: input, shape index: {}]   ;;  %s5819_s1 = inlined_call_operand.vmem [shape: bf16[4,512,128], index: 1, kind: input, shape index: {}]   ;;  %s5820_s2 = inlined_call_operand.vmem [shape: f32[1,128], index: 2, kind: input, shape index: {}]   ;;  %s5821_s3 = inlined_call_operand.vmem [shape: f32[1,128], index: 3, kind: input, shape index: {}]   ;;  %s5822_s4 = inlined_call_operand.vmem [shape: bf16[2,11,16,128], index: 4, kind: output, shape index: {}]  }
   0x1   :  { %s4775_s17 = smov 0  }
   0x2 LB: > { %s26_s18 = sadd.s32 1, %s4739_s16  ;;  %p3459_p0 = scmp.ge.s32.totalorder %s4743_s17, 1  ;;  %s4743_s17 = sphi %s4775_s17, %s14_s17   ;;  %s4739_s16 = sphi %s4773_s16, %s5828_s16   ;;  %s4735_s15 = sphi %s4771_s15, %s5827_s15  }
   0x3   : > { %p28_p1 = scmp.ge.s32.totalorder %s26_s18, 2  ;;  %p176_p2 = scmp.lt.s32.totalorder %s4743_s17, 3 }
   0x5   : > { %s5830_s18 = smov (%p28_p1, %s26_s18), 0  ;;  %p177_p3 = pnand %p3459_p0, %p176_p2 }
   0x6   : > { %v4477_v0 = vld [vmem:[%s5819_s1 + $0x140] sm:$0xff] (!%p177_p3)   ;;  %v4481_v4 = vld [vmem:[%s5819_s1 + $0x148] sm:$0xff] (!%p177_p3)   ;;  %v4485_v8 = vld [vmem:[%s5819_s1 + $0x150] sm:$0xff] (!%p177_p3)   ;;  %p205_p4 = scmp.lt.s32.totalorder (!%p177_p3), %s4735_s15, 1  ;;  %vm544_vm0 = vsmask.f32 (!%p177_p3), 7424 }
   0x7   : > { %180 = sbr.rel (%p177_p3) target bundleno = 524 (0x20c), region = 36  ;;  %v4478_v1 = vld [vmem:[%s5819_s1 + $0x1c0] sm:$0xff] (!%p177_p3)   ;;  %3938 = vmatprep.subr.bf16.mxu0 (!%p177_p3), %v4477_v0  ;;  %v4482_v5 = vld [vmem:[%s5819_s1 + $0x1c8] sm:$0xff] (!%p177_p3)   ;;  %v4486_v9 = vld [vmem:[%s5819_s1 + $0x1d0] sm:$0xff] (!%p177_p3)   ;;  %vm3324_vm1 = vcmask (!%p177_p3), 1043456   ;;  %vm3330_vm3 = vcmask (!%p177_p3), 1040384  }
   0x8   : > { %v4479_v2 = vld [vmem:[%s5819_s1 + $0x100] sm:$0xff] (!%p177_p3)   ;;  %4002 = vmatprep.subr.bf16.mxu1 (!%p177_p3), %v4478_v1  ;;  %v4483_v6 = vld [vmem:[%s5819_s1 + $0x108] sm:$0xff] (!%p177_p3)   ;;  %v4487_v10 = vld [vmem:[%s5819_s1 + $0x110] sm:$0xff] (!%p177_p3)   ;;  %vm3325_vm2 = vsmask.f32 (!%p177_p3), 7938 }
   0x9   : > { %v4480_v3 = vld [vmem:[%s5819_s1 + $0x180] sm:$0xff] (!%p177_p3)   ;;  %3939 = vmatpush3.bf16.msra.mxu0 (!%p177_p3), %v4479_v2  ;;  %v4484_v7 = vld [vmem:[%s5819_s1 + $0x188] sm:$0xff] (!%p177_p3)   ;;  %v4488_v11 = vld [vmem:[%s5819_s1 + $0x190] sm:$0xff] (!%p177_p3)   ;;  %vm3331_vm4 = vsmask.f32 (!%p177_p3), 256 }
   0xa   : > { %4003 = vmatpush3.bf16.msra.mxu1 (!%p177_p3), %v4480_v3  ;;  %3940 = vmatprep.subr.bf16.mxu0 (!%p177_p3), %v4481_v4  ;;  %v4489_v12 = vld [vmem:[%s5819_s1 + $0x158] sm:$0xff] (!%p177_p3)   ;;  %v4493_v16 = vld [vmem:[%s5819_s1 + $0x160] sm:$0xff] (!%p177_p3)   ;;  %v4497_v20 = vld [vmem:[%s5819_s1 + $0x168] sm:$0xff] (!%p177_p3)  }
   0xb   : > { %4004 = vmatprep.subr.bf16.mxu1 (!%p177_p3), %v4482_v5  ;;  %v4490_v13 = vld [vmem:[%s5819_s1 + $0x1d8] sm:$0xff] (!%p177_p3)   ;;  %v4494_v17 = vld [vmem:[%s5819_s1 + $0x1e0] sm:$0xff] (!%p177_p3)   ;;  %v4498_v21 = vld [vmem:[%s5819_s1 + $0x1e8] sm:$0xff] (!%p177_p3)  }
   0xc   : > { %v4491_v14 = vld [vmem:[%s5819_s1 + $0x118] sm:$0xff] (!%p177_p3)   ;;  %v4495_v18 = vld [vmem:[%s5819_s1 + $0x120] sm:$0xff] (!%p177_p3)   ;;  %v4499_v22 = vld [vmem:[%s5819_s1 + $0x128] sm:$0xff] (!%p177_p3)  }
   0xd   : > { %3941 = vmatpush3.bf16.msra.mxu0 (!%p177_p3), %v4483_v6  ;;  %v4492_v15 = vld [vmem:[%s5819_s1 + $0x198] sm:$0xff] (!%p177_p3)   ;;  %v4496_v19 = vld [vmem:[%s5819_s1 + $0x1a0] sm:$0xff] (!%p177_p3)   ;;  %v4500_v23 = vld [vmem:[%s5819_s1 + $0x1a8] sm:$0xff] (!%p177_p3)  }
   0xe   : > { %4005 = vmatpush3.bf16.msra.mxu1 %v4484_v7  ;;  %3942 = vmatprep.subr.bf16.mxu0 %v4485_v8  ;;  %s5832_s15 = smov (!%p205_p4, %s4735_s15), 1  ;;  %v4501_v24 = vld [vmem:[%s5819_s1 + $0x170] sm:$0xff]   ;;  %v4505_v28 = vld [vmem:[%s5819_s1 + $0x178] sm:$0xff]   ;;  %v4521_v55 = vld [vmem:[%s5819_s1 + $0x40] sm:$0xff]  }
   0xf   : > { %4006 = vmatprep.subr.bf16.mxu1 %v4486_v9  ;;  %v4502_v25 = vld [vmem:[%s5819_s1 + $0x1f0] sm:$0xff]   ;;  %s4450_s29 = smul.u32 320, %s5832_s15  ;;  %v4506_v29 = vld [vmem:[%s5819_s1 + $0x1f8] sm:$0xff]   ;;  %v4522_v63 = vld [vmem:[%s5819_s1 + $0xc0] sm:$0xff]  }
  0x10   : > { %v4503_v26 = vld [vmem:[%s5819_s1 + $0x130] sm:$0xff]   ;;  %v4507_v30 = vld [vmem:[%s5819_s1 + $0x138] sm:$0xff]   ;;  %v4523_v2 = vld [vmem:[%s5819_s1] sm:$0xff]  }
  0x11   : > { %3943 = vmatpush3.bf16.msra.mxu0 %v4487_v10  ;;  %v4504_v27 = vld [vmem:[%s5819_s1 + $0x1b0] sm:$0xff]   ;;  %s4892_s14 = scalar_lea.vmem %s5818_s0, %s4450_s29  ;;  %v4508_v31 = vld [vmem:[%s5819_s1 + $0x1b8] sm:$0xff]   ;;  %v4524_v5 = vld [vmem:[%s5819_s1 + $0x80] sm:$0xff]  }
  0x12   : > { %4007 = vmatpush3.bf16.msra.mxu1 %v4488_v11  ;;  %3944 = vmatprep.subr.bf16.mxu0 %v4489_v12  ;;  %v4898_v32 = vld [vmem:[%s4892_s14 + $0x4] ss:$16 sps:$4 sm:$0xff]   ;;  %v4907_v37 = vld [vmem:[%s4892_s14 + $0xc] ss:$16 sps:$4 sm:$0xff]   ;;  %v4913_v39 = vld [vmem:[%s4892_s14] ss:$16 sps:$4 sm:$0xff]  }
  0x13   : > { %4008 = vmatprep.subr.bf16.mxu1 %v4490_v13  ;;  %v4901_v33 = vld [vmem:[%s4892_s14 + $0x24] ss:$16 sps:$4 sm:$0xff]   ;;  %v558_v34 = vshrl.u32 %v4898_v32, 16  ;;  %v560_v35 = vshll.u32 %v4898_v32, 16  ;;  %v4910_v38 = vld [vmem:[%s4892_s14 + $0x2c] ss:$16 sps:$4 sm:$0xff]   ;;  %vm5716_vm5 = vmand %vm3324_vm1, %vm3325_vm2 }
  0x14   : > { %v565_v36 = vshll.u32 %v4901_v33, 16  ;;  %v4916_v40 = vld [vmem:[%s4892_s14 + $0x20] ss:$16 sps:$4 sm:$0xff]   ;;  %v582_v43 = vshrl.u32 %v4907_v37, 16  ;;  %v584_v44 = vshll.u32 %v4907_v37, 16  ;;  %v589_v46 = vshll.u32 %v4910_v38, 16  ;;  %vm5724_vm6 = vmand %vm3330_vm3, %vm3331_vm4 }
  0x15   : > { %3945 = vmatpush3.bf16.msra.mxu0 %v4491_v14  ;;  %v562_v41 = vrot.slane %v560_v35, 1  ;;  %v4921_v45 = vld [vmem:[%s4892_s14 + $0x8] ss:$16 sps:$4 sm:$0xff]   ;;  %v546_v47 = vshrl.u32 %v4913_v39, 16  ;;  %v548_v48 = vshll.u32 %v4913_v39, 16  ;;  %v553_v49 = vshll.u32 %v4916_v40, 16 }
  0x16   : > { %4009 = vmatpush3.bf16.msra.mxu1 %v4492_v15  ;;  %3946 = vmatprep.subr.bf16.mxu0 %v4493_v16  ;;  %v567_v42 = vrot.slane %v565_v36, 1  ;;  %v4928_v50 = vld [vmem:[%s4892_s14 + $0x28] ss:$16 sps:$4 sm:$0xff]   ;;  %v586_v52 = vrot.slane %v584_v44, 1  ;;  %v570_v53 = vshrl.u32 %v4921_v45, 16  ;;  %v572_v54 = vshll.u32 %v4921_v45, 16 }
  0x17   : > { %4010 = vmatprep.subr.bf16.mxu1 %v4494_v17  ;;  %v563_v51 = vor.u32 %v562_v41, %v558_v34  ;;  %v591_v56 = vrot.slane %v589_v46, 1  ;;  %v550_v57 = vrot.slane %v548_v48, 1  ;;  %v555_v58 = vrot.slane %v553_v49, 1  ;;  %v4950_v8 = vld [vmem:[%s4892_s14 + $0x44] ss:$16 sps:$4 sm:$0xff]  }
  0x18   : > { %v577_v59 = vshll.u32 %v4928_v50, 16  ;;  %v587_v61 = vor.u32 %v586_v52, %v582_v43  ;;  %v574_v62 = vrot.slane %v572_v54, 1  ;;  %v601_v6 = vshrl.u32 %v4901_v33, 16  ;;  %v4956_v12 = vld [vmem:[%s4892_s14 + $0x4c] ss:$16 sps:$4 sm:$0xff]  }
  0x19   : > { %3947 = vmatpush3.bf16.msra.mxu0 %v4495_v18  ;;  %v568_v60 = vsel %vm544_vm0, %v563_v51, %v567_v42  ;;  %v551_v0 = vor.u32 %v550_v57, %v546_v47  ;;  %v617_v9 = vshrl.u32 %v4910_v38, 16  ;;  %v593_v10 = vshrl.u32 %v4916_v40, 16  ;;  %v4961_v16 = vld [vmem:[%s4892_s14 + $0x40] ss:$16 sps:$4 sm:$0xff]   ;;  %v4964_v17 = vld [vmem:[%s4892_s14 + $0x48] ss:$16 sps:$4 sm:$0xff]  }
  0x1a   : > { %4011 = vmatpush3.bf16.msra.mxu1 %v4496_v19  ;;  %3948 = vmatprep.subr.bf16.mxu0 %v4497_v20  ;;  %v579_v1 = vrot.slane %v577_v59, 1  ;;  %v592_v3 = vsel %vm544_vm0, %v587_v61, %v591_v56  ;;  %v575_v4 = vor.u32 %v574_v62, %v570_v53  ;;  %v609_v13 = vshrl.u32 %v4928_v50, 16  ;;  %v4531_v18 = vld [vmem:[%s5819_s1 + $0x48] sm:$0xff]   ;;  %v4988_v44 = vld [vmem:[%s4892_s14 + $0x64] ss:$16 sps:$4 sm:$0xff]  }
  0x1b   : > { %4012 = vmatprep.subr.bf16.mxu1 %v4498_v21  ;;  %1073 = vmatprep.mubr.bf16.mxu0 %v568_v60  ;;  %v556_v7 = vsel %vm544_vm0, %v551_v0, %v555_v58  ;;  %v603_v14 = vor.u32 %v601_v6, %v567_v42  ;;  %v605_v15 = vshll.u32 %v4950_v8, 16  ;;  %v619_v19 = vor.u32 %v617_v9, %v591_v56  ;;  %v4993_v48 = vld [vmem:[%s4892_s14 + $0x6c] ss:$16 sps:$4 sm:$0xff]   ;;  %v4996_v49 = vld [vmem:[%s4892_s14 + $0x60] ss:$16 sps:$4 sm:$0xff]  }
  0x1c   : > { %1162 = vmatprep.mubr.bf16.mxu1 %v592_v3  ;;  %v580_v11 = vsel %vm544_vm0, %v575_v4, %v579_v1  ;;  %v621_v20 = vshll.u32 %v4956_v12, 16  ;;  %v595_v21 = vor.u32 %v593_v10, %v555_v58  ;;  %v633_v36 = vshrl.u32 %v4950_v8, 16  ;;  %v4999_v51 = vld [vmem:[%s4892_s14 + $0x68] ss:$16 sps:$4 sm:$0xff]   ;;  %v4541_v56 = vld [vmem:[%s5819_s1 + $0x50] sm:$0xff]  }
  0x1d   : > { %3949 = vmatpush3.bf16.msra.mxu0 %v4499_v22  ;;  %v4532_v22 = vld [vmem:[%s5819_s1 + $0xc8] sm:$0xff]   ;;  %v649_v41 = vshrl.u32 %v4956_v12, 16  ;;  %v625_v46 = vshrl.u32 %v4961_v16, 16  ;;  %v641_v47 = vshrl.u32 %v4964_v17, 16  ;;  %v637_v53 = vshll.u32 %v4988_v44, 16  ;;  %v4542_v61 = vld [vmem:[%s5819_s1 + $0xd0] sm:$0xff]  }
  0x1e   : > { %4013 = vmatpush3.bf16.msra.mxu1 %v4500_v23  ;;  %3950 = vmatprep.subr.bf16.mxu0 %v4501_v24  ;;  %v607_v23 = vrot.slane %v605_v15, 1  ;;  %v597_v24 = vshll.u32 %v4961_v16, 16  ;;  %v653_v57 = vshll.u32 %v4993_v48, 16  ;;  %v629_v58 = vshll.u32 %v4996_v49, 16  ;;  %v4544_v3 = vld [vmem:[%s5819_s1 + $0x90] sm:$0xff]  }
  0x1f   : > { %4014 = vmatprep.subr.bf16.mxu1 %v4502_v25  ;;  %v611_v25 = vor.u32 %v609_v13, %v579_v1  ;;  %v645_v60 = vshll.u32 %v4999_v51, 16  ;;  %v639_v62 = vrot.slane %v637_v53, 1  ;;  %v5023_v10 = vld [vmem:[%s4892_s14 + $0x84] ss:$16 sps:$4 sm:$0xff]   ;;  %v5027_v13 = vld [vmem:[%s4892_s14 + $0x8c] ss:$16 sps:$4 sm:$0xff]  }
  0x20   : > { %v635_v52 = vor.u32 %v633_v36, %v607_v23  ;;  %v655_v0 = vrot.slane %v653_v57, 1  ;;  %v631_v1 = vrot.slane %v629_v58, 1  ;;  %v657_v15 = vshrl.u32 %v4996_v49, 16  ;;  %v5065_v57 = vld [vmem:[%s4892_s14 + $0xac] ss:$16 sps:$4 sm:$0xff]  }
  0x21   : > { %3951 = vmatpush3.bf16.msra.mxu0 %v4503_v26  ;;  %v613_v26 = vshll.u32 %v4964_v17, 16  ;;  %v5068_v58 = vld [vmem:[%s4892_s14 + $0xa0] ss:$16 sps:$4 sm:$0xff]  }
  0x22   : > { %4015 = vmatpush3.bf16.msra.mxu1 %v4504_v27  ;;  %3952 = vmatprep.subr.bf16.mxu0 %v4505_v28  ;;  %v4533_v27 = vld [vmem:[%s5819_s1 + $0x8] sm:$0xff]   ;;  %v623_v28 = vrot.slane %v621_v20, 1  ;;  %v640_v4 = vsel %vm544_vm0, %v635_v52, %v639_v62  ;;  %v713_v52 = vshrl.u32 %v5027_v13, 16 }
  0x23   : > { %4016 = vmatprep.subr.bf16.mxu1 %v4506_v29  ;;  %v4534_v29 = vld [vmem:[%s5819_s1 + $0x88] sm:$0xff]   ;;  %v615_v34 = vrot.slane %v613_v26, 1  ;;  %v4551_v26 = vld [vmem:[%s5819_s1 + $0x58] sm:$0xff]  }
  0x24   : > { %v624_v35 = vsel %vm544_vm0, %v619_v19, %v623_v28  ;;  %v651_v54 = vor.u32 %v649_v41, %v623_v28  ;;  %v669_v19 = vshll.u32 %v5023_v10, 16  ;;  %v5035_v20 = vld [vmem:[%s4892_s14 + $0x88] ss:$16 sps:$4 sm:$0xff]  }
  0x25   : > { %3953 = vmatpush3.bf16.msra.mxu0 %v4507_v30  ;;  %v608_v30 = vsel %vm544_vm0, %v603_v14, %v607_v23  ;;  %v616_v43 = vsel %vm544_vm0, %v611_v25, %v615_v34  ;;  %v643_v59 = vor.u32 %v641_v47, %v615_v34  ;;  %v5030_v14 = vld [vmem:[%s4892_s14 + $0x80] ss:$16 sps:$4 sm:$0xff]   ;;  %v685_v23 = vshll.u32 %v5027_v13, 16  ;;  %v4553_v41 = vld [vmem:[%s5819_s1 + $0x18] sm:$0xff]  }
  0x26   : > { %4017 = vmatpush3.bf16.msra.mxu1 %v4508_v31  ;;  %4066 = vmatprep.subr.bf16.mxu0 %v4521_v55  ;;  %v599_v31 = vrot.slane %v597_v24, 1  ;;  %v656_v6 = vsel %vm544_vm0, %v651_v54, %v655_v0  ;;  %v659_v24 = vor.u32 %v657_v15, %v631_v1  ;;  %v661_v25 = vshll.u32 %v5030_v14, 16  ;;  %v5060_v54 = vld [vmem:[%s4892_s14 + $0xa4] ss:$16 sps:$4 sm:$0xff]  }
  0x27   : > { %4130 = vmatprep.subr.bf16.mxu1 %v4522_v63  ;;  %v4543_v63 = vld [vmem:[%s5819_s1 + $0x10] sm:$0xff]   ;;  %v671_v28 = vrot.slane %v669_v19, 1  ;;  %v697_v47 = vshrl.u32 %v5023_v10, 16 }
  0x28   : > { %1074 = vmatmul.mubr.bf16.vlgmr.msra.gmra.mrb[0].mxu0 %v556_v7  ;;  %v600_v42 = vsel %vm544_vm0, %v595_v21, %v599_v31  ;;  %v627_v55 = vor.u32 %v625_v46, %v599_v31  ;;  %v673_v21 = vshrl.u32 %v4999_v51, 16  ;;  %v687_v31 = vrot.slane %v685_v23, 1  ;;  %v4554_v46 = vld [vmem:[%s5819_s1 + $0x98] sm:$0xff]  }
  0x29   : > { %1163 = vmatmul.mubr.bf16.vlgmr.msra.gmra.mrb[0].mxu1 %v580_v11  ;;  %4067 = vmatpush3.bf16.msra.mxu0 %v4523_v2  ;;  %v647_v2 = vrot.slane %v645_v60, 1  ;;  %v681_v11 = vshrl.u32 %v4993_v48, 16  ;;  %v663_v34 = vrot.slane %v661_v25, 1  ;;  %v699_v60 = vor.u32 %v697_v47, %v671_v28 }
  0x2a   : > { %4131 = vmatpush3.bf16.msra.mxu1 %v4524_v5  ;;  %4068 = vmatprep.subr.bf16.mxu0 %v4531_v18  ;;  %v665_v5 = vshrl.u32 %v4988_v44, 16  ;;  %v632_v7 = vsel %vm544_vm0, %v627_v55, %v631_v1  ;;  %v689_v55 = vshrl.u32 %v5030_v14, 16  ;;  %v745_v25 = vshrl.u32 %v5065_v57, 16 }
  0x2b   : > { %4132 = vmatprep.subr.bf16.mxu1 %v4532_v22  ;;  %1080 = vmatprep.mubr.bf16.mxu0 %v608_v30  ;;  %v648_v9 = vsel %vm544_vm0, %v643_v59, %v647_v2  ;;  %v683_v22 = vor.u32 %v681_v11, %v655_v0  ;;  %v677_v30 = vshll.u32 %v5035_v20, 16  ;;  %v5071_v59 = vld [vmem:[%s4892_s14 + $0xa8] ss:$16 sps:$4 sm:$0xff]   ;;  %v717_v0 = vshll.u32 %v5065_v57, 16 }
  0x2c   : > { %1169 = vmatprep.mubr.bf16.mxu1 %v624_v35  ;;  %v667_v18 = vor.u32 %v665_v5, %v639_v62  ;;  %v715_v62 = vor.u32 %v713_v52, %v687_v31  ;;  %v691_v1 = vor.u32 %v689_v55, %v663_v34 }
  0x2d   : > { %4069 = vmatpush3.bf16.msra.mxu0 %v4533_v27  ;;  %v4552_v27 = vld [vmem:[%s5819_s1 + $0xd8] sm:$0xff]   ;;  %v679_v36 = vrot.slane %v677_v30, 1 }
  0x2e   : > { %4133 = vmatpush3.bf16.msra.mxu1 %v4534_v29  ;;  %4070 = vmatprep.subr.bf16.mxu0 %v4541_v56  ;;  %v675_v29 = vor.u32 %v673_v21, %v647_v2  ;;  %v672_v35 = vsel %vm544_vm0, %v667_v18, %v671_v28  ;;  %v705_v56 = vshrl.u32 %v5035_v20, 16  ;;  %v693_v2 = vshll.u32 %v5068_v58, 16  ;;  %v4564_v18 = vld [vmem:[%s5819_s1 + $0xa0] sm:$0xff]  }
  0x2f   : > { %4134 = vmatprep.subr.bf16.mxu1 %v4542_v61  ;;  %v701_v61 = vshll.u32 %v5060_v54, 16  ;;  %v729_v21 = vshrl.u32 %v5060_v54, 16  ;;  %v5102_v28 = vld [vmem:[%s4892_s14 + $0xc0] ss:$16 sps:$4 sm:$0xff]  }
  0x30   : > { %1081 = vmatmul.mubr.bf16.gmra.mrb[4].mxu0 %v600_v42  ;;  %v688_v42 = vsel %vm544_vm0, %v683_v22, %v687_v31  ;;  %v680_v53 = vsel %vm544_vm0, %v675_v29, %v679_v36  ;;  %v695_v11 = vrot.slane %v693_v2, 1  ;;  %v721_v29 = vshrl.u32 %v5068_v58, 16 }
  0x31   : > { %1170 = vmatmul.mubr.bf16.gmra.mrb[4].mxu1 %v616_v43  ;;  %4071 = vmatpush3.bf16.msra.mxu0 %v4543_v63  ;;  %v664_v43 = vsel %vm544_vm0, %v659_v24, %v663_v34  ;;  %v4561_v63 = vld [vmem:[%s5819_s1 + $0x60] sm:$0xff]   ;;  %v703_v5 = vrot.slane %v701_v61, 1  ;;  %v5107_v34 = vld [vmem:[%s4892_s14 + $0xc8] ss:$16 sps:$4 sm:$0xff]  }
  0x32   : > { %1087 = vmatprep.mubr.bf16.mxu0 %v640_v4  ;;  %4135 = vmatpush3.bf16.msra.mxu1 %v4544_v3  ;;  %v709_v3 = vshll.u32 %v5071_v59, 16  ;;  %v4562_v4 = vld [vmem:[%s5819_s1 + $0xe0] sm:$0xff]   ;;  %v696_v23 = vsel %vm544_vm0, %v691_v1, %v695_v11  ;;  %v723_v52 = vor.u32 %v721_v29, %v695_v11  ;;  %v4574_v1 = vld [vmem:[%s5819_s1 + $0xa8] sm:$0xff]  }
  0x33   : > { %1176 = vmatprep.mubr.bf16.mxu1 %v656_v6  ;;  %4072 = vmatprep.subr.bf16.mxu0 %v4551_v26  ;;  %v707_v6 = vor.u32 %v705_v56, %v679_v36  ;;  %v704_v19 = vsel %vm544_vm0, %v699_v60, %v703_v5  ;;  %v5094_v24 = vld [vmem:[%s4892_s14 + $0xc4] ss:$16 sps:$4 sm:$0xff]   ;;  %v731_v30 = vor.u32 %v729_v21, %v703_v5  ;;  %v5137_v11 = vld [vmem:[%s4892_s14 + $0xec] ss:$16 sps:$4 sm:$0xff]  }
  0x34   : > { %4136 = vmatprep.subr.bf16.mxu1 %v4552_v27  ;;  %v711_v15 = vrot.slane %v709_v3, 1  ;;  %v5099_v27 = vld [vmem:[%s4892_s14 + $0xcc] ss:$16 sps:$4 sm:$0xff]   ;;  %v733_v31 = vshll.u32 %v5094_v24, 16  ;;  %v761_v2 = vshrl.u32 %v5094_v24, 16 }
  0x35   : > { %4073 = vmatpush3.bf16.msra.mxu0 %v4553_v41  ;;  %v749_v41 = vshll.u32 %v5099_v27, 16  ;;  %v777_v3 = vshrl.u32 %v5099_v27, 16  ;;  %v5131_v5 = vld [vmem:[%s4892_s14 + $0xe4] ss:$16 sps:$4 sm:$0xff]  }
  0x36   : > { %4137 = vmatpush3.bf16.msra.mxu1 %v4554_v46  ;;  %4074 = vmatprep.subr.bf16.mxu0 %v4561_v63  ;;  %v712_v26 = vsel %vm544_vm0, %v707_v6, %v711_v15  ;;  %v4572_v46 = vld [vmem:[%s5819_s1 + $0xe8] sm:$0xff]   ;;  %v735_v47 = vrot.slane %v733_v31, 1  ;;  %v753_v6 = vshrl.u32 %v5102_v28, 16  ;;  %v765_v21 = vshll.u32 %v5131_v5, 16 }
  0x37   : > { %4138 = vmatprep.subr.bf16.mxu1 %v4562_v4  ;;  %v751_v55 = vrot.slane %v749_v41, 1  ;;  %v4573_v63 = vld [vmem:[%s5819_s1 + $0x28] sm:$0xff]   ;;  %v4583_v41 = vld [vmem:[%s5819_s1 + $0x30] sm:$0xff]  }
  0x38   : > { %1088 = vmatmul.mubr.bf16.gmra.mrb[8].mxu0 %v632_v7  ;;  %v4563_v7 = vld [vmem:[%s5819_s1 + $0x20] sm:$0xff]   ;;  %v736_v61 = vsel %vm544_vm0, %v731_v30, %v735_v47 }
  0x39   : > { %1177 = vmatmul.mubr.bf16.gmra.mrb[8].mxu1 %v648_v9  ;;  %1094 = vmatprep.mubr.bf16.mxu0 %v672_v35  ;;  %v719_v9 = vrot.slane %v717_v0, 1  ;;  %v737_v35 = vshrl.u32 %v5071_v59, 16 }
  0x3a   : > { %1183 = vmatprep.mubr.bf16.mxu1 %v688_v42  ;;  %4075 = vmatpush3.bf16.msra.mxu0 %v4563_v7  ;;  %v725_v42 = vshll.u32 %v5102_v28, 16  ;;  %v769_v7 = vshrl.u32 %v5107_v34, 16 }
  0x3b   : > { %v720_v22 = vsel %vm544_vm0, %v715_v62, %v719_v9  ;;  %4139 = vmatpush3.bf16.msra.mxu1 %v4564_v18  ;;  %v747_v36 = vor.u32 %v745_v25, %v719_v9  ;;  %v739_v60 = vor.u32 %v737_v35, %v711_v15  ;;  %v5140_v15 = vld [vmem:[%s4892_s14 + $0xe0] ss:$16 sps:$4 sm:$0xff]   ;;  %v5143_v18 = vld [vmem:[%s4892_s14 + $0xe8] ss:$16 sps:$4 sm:$0xff]  }
  0x3c   : > { %v727_v56 = vrot.slane %v725_v42, 1  ;;  %4140 = vmatprep.subr.bf16.mxu1 %v4572_v46  ;;  %v4581_v25 = vld [vmem:[%s5819_s1 + $0x70] sm:$0xff]   ;;  %v757_v29 = vshll.u32 %v5140_v15, 16  ;;  %v773_v31 = vshll.u32 %v5143_v18, 16 }
  0x3d   : > { %v752_v0 = vsel %vm544_vm0, %v747_v36, %v751_v55  ;;  %v4582_v35 = vld [vmem:[%s5819_s1 + $0xf0] sm:$0xff]   ;;  %v767_v36 = vrot.slane %v765_v21, 1 }
  0x3e   : > { %v728_v4 = vsel %vm544_vm0, %v723_v52, %v727_v56  ;;  %v775_v46 = vrot.slane %v773_v31, 1 }
  0x3f   : > { %4141 = vmatpush3.bf16.msra.mxu1 %v4574_v1 }
  0x40   : > { %1095 = vmatmul.mubr.bf16.gmra.mrb[12].mxu0 %v664_v43  ;;  %v4571_v43 = vld [vmem:[%s5819_s1 + $0x68] sm:$0xff]   ;;  %4142 = vmatprep.subr.bf16.mxu1 %v4582_v35 }
  0x41   : > { %1184 = vmatmul.mubr.bf16.gmra.mrb[12].mxu1 %v680_v53  ;;  %1101 = vmatprep.mubr.bf16.mxu0 %v704_v19  ;;  %v741_v53 = vshll.u32 %v5107_v34, 16  ;;  %v763_v19 = vor.u32 %v761_v2, %v735_v47  ;;  %v4584_v47 = vld [vmem:[%s5819_s1 + $0xb0] sm:$0xff]   ;;  %v809_v2 = vshrl.u32 %v5137_v11, 16 }
  0x42   : > { %1190 = vmatprep.mubr.bf16.mxu1 %v720_v22  ;;  %4076 = vmatprep.subr.bf16.mxu0 %v4571_v43  ;;  %v779_v22 = vor.u32 %v777_v3, %v751_v55  ;;  %v759_v43 = vrot.slane %v757_v29, 1 }
  0x43   : > { %v743_v62 = vrot.slane %v741_v53, 1  ;;  %4077 = vmatpush3.bf16.msra.mxu0 %v4573_v63  ;;  %v768_v52 = vsel %vm544_vm0, %v763_v19, %v767_v36  ;;  %v339_v53 = vld [vmem:[%s4892_s14 + $0x100] sm:$0x11]  ;;  %4143 = vmatpush3.bf16.msra.mxu1 %v4584_v47  ;;  %v4589_v63 = vld [vmem:[%s5819_s1 + $0x78] sm:$0xff]   ;;  %v801_v19 = vshrl.u32 %v5143_v18, 16 }
  0x44   : > { %4078 = vmatprep.subr.bf16.mxu0 %v4581_v25  ;;  %v3558_v3 = vcombine.low %v339_v53, %v339_v53 }
  0x45   : > { %v744_v9 = vsel %vm544_vm0, %v739_v60, %v743_v62  ;;  %v771_v30 = vor.u32 %v769_v7, %v743_v62  ;;  %v340_v62 = vld [vmem:[%s4892_s14 + $0x108] sm:$0x11]  ;;  %v785_v7 = vshrl.u32 %v5140_v15, 16  ;;  %v803_v47 = vor.u32 %v801_v19, %v775_v46  ;;  %v4621_v19 = vld [vmem:[%s5819_s1 + $0x278] sm:$0xff]  }
  0x46   : > { %v3561_v1 = vcombine.high %v340_v62, %v340_v62  ;;  %v789_v25 = vshll.u32 %v3558_v3, 16  ;;  %v4608_v3 = vld [vmem:[%s5819_s1 + $0x298] sm:$0xff]  }
  0x47   : > { %4079 = vmatpush3.bf16.msra.mxu0 %v4583_v41  ;;  %v776_v60 = vsel %vm544_vm0, %v771_v30, %v775_v46  ;;  %v4592_v30 = vld [vmem:[%s5819_s1 + $0xb8] sm:$0xff]   ;;  %v4595_v46 = vld [vmem:[%s5819_s1 + $0x200] sm:$0xff]  }
  0x48   : > { %1102 = vmatmul.mubr.bf16.gmra.mrb[16].mxu0 %v696_v23  ;;  %v755_v23 = vor.u32 %v753_v6, %v727_v56  ;;  %4080 = vmatprep.subr.bf16.mxu0 %v4589_v63  ;;  %v791_v41 = vrot.slane %v789_v25, 1  ;;  %v4598_v63 = vld [vmem:[%s5819_s1 + $0x2c8] sm:$0xff]  }
  0x49   : > { %1191 = vmatmul.mubr.bf16.gmra.mrb[16].mxu1 %v712_v26  ;;  %1108 = vmatprep.mubr.bf16.mxu0 %v736_v61  ;;  %v781_v26 = vshll.u32 %v5137_v11, 16  ;;  %v793_v61 = vshrl.u32 %v5131_v5, 16  ;;  %v4641_v25 = vld [vmem:[%s5819_s1 + $0x348] sm:$0xff]  }
  0x4a   : > { %1197 = vmatprep.mubr.bf16.mxu1 %v752_v0  ;;  %v760_v56 = vsel %vm544_vm0, %v755_v23, %v759_v43  ;;  %v3559_v0 = vcombine.high %v339_v53, %v339_v53  ;;  %v813_v23 = vshll.u32 %v3561_v1, 16  ;;  %v4594_v53 = vld [vmem:[%s5819_s1 + $0x2c0] sm:$0xff]   ;;  %v4606_v1 = vld [vmem:[%s5819_s1 + $0x2d8] sm:$0xff]  }
  0x4b   : > { %v783_v42 = vrot.slane %v781_v26, 1  ;;  %v795_v6 = vor.u32 %v793_v61, %v767_v36  ;;  %v4591_v26 = vld [vmem:[%s5819_s1 + $0x38] sm:$0xff]   ;;  %v787_v36 = vor.u32 %v785_v7, %v759_v43  ;;  %v4596_v61 = vld [vmem:[%s5819_s1 + $0x280] sm:$0xff]   ;;  %v4615_v7 = vld [vmem:[%s5819_s1 + $0x228] sm:$0xff]  }
  0x4c   : > { %v797_v21 = vshll.u32 %v3559_v0, 16  ;;  %v815_v35 = vrot.slane %v813_v23, 1  ;;  %4081 = vmatpush3.bf16.msra.mxu0 %v4591_v26  ;;  %v4601_v0 = vld [vmem:[%s5819_s1 + $0x250] sm:$0xff]   ;;  %v4631_v23 = vld [vmem:[%s5819_s1 + $0x340] sm:$0xff]   ;;  %v4642_v26 = vld [vmem:[%s5819_s1 + $0x3c8] sm:$0xff]  }
  0x4d   : > { %v784_v55 = vsel %vm544_vm0, %v779_v22, %v783_v42  ;;  %v811_v22 = vor.u32 %v809_v2, %v783_v42  ;;  %v4593_v42 = vld [vmem:[%s5819_s1 + $0x240] sm:$0xff]   ;;  %v792_v43 = vsel %vm544_vm0, %v787_v36, %v791_v41  ;;  %v4607_v2 = vld [vmem:[%s5819_s1 + $0x218] sm:$0xff]  }
  0x4e   : > { %v799_v31 = vrot.slane %v797_v21, 1  ;;  %4194 = vmatprep.subr.bf16.mxu0 %v4593_v42  ;;  %v4622_v21 = vld [vmem:[%s5819_s1 + $0x2f8] sm:$0xff]   ;;  %v5370_v36 = vld [vmem:[%s4892_s14 + $0x40] ss:$16 sps:$4 sm:$0xff]  }
  0x4f   : > { %v5373_v41 = vld [vmem:[%s4892_s14 + $0x48] ss:$16 sps:$4 sm:$0xff]   ;;  %v4647_v42 = vld [vmem:[%s5819_s1 + $0x310] sm:$0xff]  }
  0x50   : > { %1109 = vmatmul.mubr.bf16.gmra.mrb[20].mxu0 %v728_v4  ;;  %v4590_v4 = vld [vmem:[%s5819_s1 + $0xf8] sm:$0xff]  }
  0x51   : > { %1198 = vmatmul.mubr.bf16.gmra.mrb[20].mxu1 %v744_v9  ;;  %1115 = vmatprep.mubr.bf16.mxu0 %v768_v52  ;;  %v3560_v9 = vcombine.low %v340_v62, %v340_v62  ;;  %v4597_v62 = vld [vmem:[%s5819_s1 + $0x248] sm:$0xff]  }
  0x52   : > { %1204 = vmatprep.mubr.bf16.mxu1 %v784_v55  ;;  %4144 = vmatprep.subr.bf16.mxu1 %v4590_v4  ;;  %v800_v55 = vsel %vm544_vm0, %v795_v6, %v799_v31  ;;  %v4613_v4 = vld [vmem:[%s5819_s1 + $0x268] sm:$0xff]   ;;  %v4645_v31 = vld [vmem:[%s5819_s1 + $0x350] sm:$0xff]  }
  0x53   : > { %v805_v29 = vshll.u32 %v3560_v9, 16  ;;  %4145 = vmatpush3.bf16.msra.mxu1 %v4592_v30  ;;  %v4614_v6 = vld [vmem:[%s5819_s1 + $0x2e8] sm:$0xff]   ;;  %v4617_v9 = vld [vmem:[%s5819_s1 + $0x270] sm:$0xff]  }
  0x54   : > { %4258 = vmatprep.subr.bf16.mxu1 %v4594_v53  ;;  %v4644_v30 = vld [vmem:[%s5819_s1 + $0x388] sm:$0xff]   ;;  %v4650_v53 = vld [vmem:[%s5819_s1 + $0x3d8] sm:$0xff]  }
  0x55   : > { %v807_v52 = vrot.slane %v805_v29, 1  ;;  %v4643_v29 = vld [vmem:[%s5819_s1 + $0x308] sm:$0xff]  }
  0x58   : > { %1116 = vmatmul.mubr.bf16.gmra.mrb[24].mxu0 %v760_v56  ;;  %v816_v56 = vsel %vm544_vm0, %v811_v22, %v815_v35  ;;  %v4623_v22 = vld [vmem:[%s5819_s1 + $0x238] sm:$0xff]   ;;  %v4646_v35 = vld [vmem:[%s5819_s1 + $0x3d0] sm:$0xff]  }
  0x59   : > { %1205 = vmatmul.mubr.bf16.gmra.mrb[24].mxu1 %v776_v60  ;;  %1122 = vmatprep.mubr.bf16.mxu0 %v800_v55  ;;  %v808_v60 = vsel %vm544_vm0, %v803_v47, %v807_v52  ;;  %v4648_v47 = vld [vmem:[%s5819_s1 + $0x390] sm:$0xff]   ;;  %v4649_v52 = vld [vmem:[%s5819_s1 + $0x358] sm:$0xff]  }
  0x5a   : > { %1211 = vmatprep.mubr.bf16.mxu1 %v816_v56  ;;  %v4709_v55 = vld [vmem:[%s4892_s14 + $0x64] ss:$16 sps:$4 sm:$0xff]   ;;  %v4710_v56 = vld [vmem:[%s4892_s14 + $0x6c] ss:$16 sps:$4 sm:$0xff]  }
  0x60   : > { %1123 = vmatmul.mubr.bf16.gmra.mrb[28].mxu0 %v792_v43  ;;  %v4651_v43 = vld [vmem:[%s5819_s1 + $0x318] sm:$0xff]  }
  0x61   : > { %1212 = vmatmul.mubr.bf16.gmra.mrb[28].mxu1 %v808_v60  ;;  %1475 = vmatprep.mubr.bf16.mxu0 %v4898_v32  ;;  %v4599_v32 = vld [vmem:[%s5819_s1 + $0x208] sm:$0xff]   ;;  %v4652_v60 = vld [vmem:[%s5819_s1 + $0x398] sm:$0xff]  }
  0x62   : > { %1564 = vmatprep.mubr.bf16.mxu1 %v4907_v37  ;;  %v4600_v37 = vld [vmem:[%s5819_s1 + $0x288] sm:$0xff]  }
  0x68   : > { %1476 = vmatmul.mubr.bf16.vlgmr.msra.gmra.mrb[32].mxu0 %v4913_v39  ;;  %v4602_v39 = vld [vmem:[%s5819_s1 + $0x2d0] sm:$0xff]  }
  0x69   : > { %1565 = vmatmul.mubr.bf16.vlgmr.msra.gmra.mrb[32].mxu1 %v4921_v45  ;;  %4195 = vmatpush3.bf16.msra.mxu0 %v4595_v46  ;;  %v4603_v45 = vld [vmem:[%s5819_s1 + $0x210] sm:$0xff]   ;;  %v4653_v46 = vld [vmem:[%s5819_s1 + $0x360] sm:$0xff]  }
  0x6a   : > { %4259 = vmatpush3.bf16.msra.mxu1 %v4596_v61  ;;  %1482 = vmatprep.mubr.bf16.mxu0 %v4901_v33  ;;  %v4604_v33 = vld [vmem:[%s5819_s1 + $0x290] sm:$0xff]   ;;  %v4654_v61 = vld [vmem:[%s5819_s1 + $0x3e0] sm:$0xff]  }
  0x6b   : > { %1571 = vmatprep.mubr.bf16.mxu1 %v4910_v38  ;;  %4196 = vmatprep.subr.bf16.mxu0 %v4597_v62  ;;  %v4605_v38 = vld [vmem:[%s5819_s1 + $0x258] sm:$0xff]   ;;  %v4655_v62 = vld [vmem:[%s5819_s1 + $0x320] sm:$0xff]  }
  0x6c   : > { %4260 = vmatprep.subr.bf16.mxu1 %v4598_v63  ;;  %v4656_v63 = vld [vmem:[%s5819_s1 + $0x3a0] sm:$0xff]  }
  0x6d   : > { %4197 = vmatpush3.bf16.msra.mxu0 %v4599_v32  ;;  %v4657_v32 = vld [vmem:[%s5819_s1 + $0x368] sm:$0xff]  }
  0x6e   : > { %4261 = vmatpush3.bf16.msra.mxu1 %v4600_v37  ;;  %4198 = vmatprep.subr.bf16.mxu0 %v4601_v0  ;;  %v4711_v37 = vld [vmem:[%s4892_s14 + $0x60] ss:$16 sps:$4 sm:$0xff]   ;;  %v4658_v0 = vld [vmem:[%s5819_s1 + $0x3e8] sm:$0xff]  }
  0x6f   : > { %4262 = vmatprep.subr.bf16.mxu1 %v4602_v39  ;;  %v4712_v39 = vld [vmem:[%s4892_s14 + $0x68] ss:$16 sps:$4 sm:$0xff]  }
  0x70   : > { %1483 = vmatmul.mubr.bf16.gmra.mrb[36].mxu0 %v4916_v40  ;;  %v4609_v40 = vld [vmem:[%s5819_s1 + $0x260] sm:$0xff]  }
  0x71   : > { %1572 = vmatmul.mubr.bf16.gmra.mrb[36].mxu1 %v4928_v50  ;;  %1489 = vmatprep.mubr.bf16.mxu0 %v4950_v8  ;;  %v4610_v50 = vld [vmem:[%s5819_s1 + $0x2e0] sm:$0xff]  }
  0x72   : > { %1578 = vmatprep.mubr.bf16.mxu1 %v4956_v12  ;;  %4199 = vmatpush3.bf16.msra.mxu0 %v4603_v45  ;;  %v4611_v8 = vld [vmem:[%s5819_s1 + $0x220] sm:$0xff]  }
  0x73   : > { %4263 = vmatpush3.bf16.msra.mxu1 %v4604_v33  ;;  %4200 = vmatprep.subr.bf16.mxu0 %v4605_v38  ;;  %v4612_v12 = vld [vmem:[%s5819_s1 + $0x2a0] sm:$0xff]   ;;  %v4714_v33 = vld [vmem:[%s4892_s14 + $0x8c] ss:$16 sps:$4 sm:$0xff]  }
  0x74   : > { %4264 = vmatprep.subr.bf16.mxu1 %v4606_v1  ;;  %v4713_v45 = vld [vmem:[%s4892_s14 + $0x84] ss:$16 sps:$4 sm:$0xff]   ;;  %v4659_v38 = vld [vmem:[%s5819_s1 + $0x328] sm:$0xff]  }
  0x75   : > { %v4660_v1 = vld [vmem:[%s5819_s1 + $0x3a8] sm:$0xff]  }
  0x76   : > { %4201 = vmatpush3.bf16.msra.mxu0 %v4607_v2  ;;  %v4661_v2 = vld [vmem:[%s5819_s1 + $0x370] sm:$0xff]  }
  0x77   : > { %4265 = vmatpush3.bf16.msra.mxu1 %v4608_v3  ;;  %4202 = vmatprep.subr.bf16.mxu0 %v4609_v40  ;;  %v4662_v3 = vld [vmem:[%s5819_s1 + $0x3f0] sm:$0xff]  }
  0x78   : > { %1490 = vmatmul.mubr.bf16.gmra.mrb[40].mxu0 %v4961_v16  ;;  %4266 = vmatprep.subr.bf16.mxu1 %v4610_v50  ;;  %v4616_v16 = vld [vmem:[%s5819_s1 + $0x2a8] sm:$0xff]   ;;  %v4663_v40 = vld [vmem:[%s5819_s1 + $0x330] sm:$0xff]  }
  0x79   : > { %1579 = vmatmul.mubr.bf16.gmra.mrb[40].mxu1 %v4964_v17  ;;  %1496 = vmatprep.mubr.bf16.mxu0 %v4988_v44  ;;  %v4618_v17 = vld [vmem:[%s5819_s1 + $0x2f0] sm:$0xff]  }
  0x7a   : > { %1585 = vmatprep.mubr.bf16.mxu1 %v4993_v48  ;;  %4203 = vmatpush3.bf16.msra.mxu0 %v4611_v8  ;;  %v4619_v44 = vld [vmem:[%s5819_s1 + $0x230] sm:$0xff]   ;;  %v4671_v8 = vld [vmem:[%s5819_s1 + $0x378] sm:$0xff]  }
  0x7b   : > { %4267 = vmatpush3.bf16.msra.mxu1 %v4612_v12  ;;  %4204 = vmatprep.subr.bf16.mxu0 %v4613_v4  ;;  %v4620_v48 = vld [vmem:[%s5819_s1 + $0x2b0] sm:$0xff]   ;;  %v4672_v4 = vld [vmem:[%s5819_s1 + $0x3f8] sm:$0xff]  }
  0x7c   : > { %4268 = vmatprep.subr.bf16.mxu1 %v4614_v6  ;;  %v4664_v50 = vld [vmem:[%s5819_s1 + $0x3b0] sm:$0xff]   ;;  %v4716_v6 = vld [vmem:[%s4892_s14 + $0x88] ss:$16 sps:$4 sm:$0xff]  }
  0x7d   : > { %v4715_v12 = vld [vmem:[%s4892_s14 + $0x80] ss:$16 sps:$4 sm:$0xff]  }
  0x7e   : > { %4205 = vmatpush3.bf16.msra.mxu0 %v4615_v7  ;;  %v4717_v7 = vld [vmem:[%s4892_s14 + $0xa4] ss:$16 sps:$4 sm:$0xff]  }
  0x7f   : > { %4269 = vmatpush3.bf16.msra.mxu1 %v4616_v16  ;;  %4206 = vmatprep.subr.bf16.mxu0 %v4617_v9  ;;  %v4718_v16 = vld [vmem:[%s4892_s14 + $0xac] ss:$16 sps:$4 sm:$0xff]  }
  0x80   : > { %1497 = vmatmul.mubr.bf16.gmra.mrb[44].mxu0 %v4996_v49  ;;  %4270 = vmatprep.subr.bf16.mxu1 %v4618_v17  ;;  %v4624_v49 = vld [vmem:[%s5819_s1 + $0x2b8] sm:$0xff]  }
  0x81   : > { %1586 = vmatmul.mubr.bf16.gmra.mrb[44].mxu1 %v4999_v51  ;;  %1503 = vmatprep.mubr.bf16.mxu0 %v5023_v10  ;;  %v4632_v51 = vld [vmem:[%s5819_s1 + $0x3c0] sm:$0xff]   ;;  %v4673_v9 = vld [vmem:[%s5819_s1 + $0x338] sm:$0xff]  }
  0x82   : > { %1592 = vmatprep.mubr.bf16.mxu1 %v5027_v13  ;;  %4207 = vmatpush3.bf16.msra.mxu0 %v4619_v44  ;;  %v5320_v10 = vld [vmem:[%s4892_s14 + $0x24] ss:$16 sps:$4 sm:$0xff]   ;;  %v5323_v13 = vld [vmem:[%s4892_s14 + $0x2c] ss:$16 sps:$4 sm:$0xff]   ;;  %v4719_v44 = vld [vmem:[%s4892_s14 + $0xa0] ss:$16 sps:$4 sm:$0xff]  }
  0x83   : > { %4271 = vmatpush3.bf16.msra.mxu1 %v4620_v48  ;;  %4208 = vmatprep.subr.bf16.mxu0 %v4621_v19  ;;  %v4674_v17 = vld [vmem:[%s5819_s1 + $0x3b8] sm:$0xff]   ;;  %v2508_v19 = vshll.u32 %v5320_v10, 16 }
  0x84   : > { %4272 = vmatprep.subr.bf16.mxu1 %v4622_v21  ;;  %v4720_v48 = vld [vmem:[%s4892_s14 + $0xa8] ss:$16 sps:$4 sm:$0xff]   ;;  %v2532_v21 = vshll.u32 %v5323_v13, 16 }
  0x86   : > { %4209 = vmatpush3.bf16.msra.mxu0 %v4623_v22  ;;  %v5464_v22 = vld [vmem:[%s4892_s14 + $0x104] ss:$16 sps:$4 sm:$0xff]  }
  0x87   : > { %4273 = vmatpush3.bf16.msra.mxu1 %v4624_v49  ;;  %4322 = vmatprep.subr.bf16.mxu0 %v4631_v23  ;;  %v2506_v49 = vshrl.u32 %v5320_v10, 16 }
  0x88   : > { %1504 = vmatmul.mubr.bf16.gmra.mrb[48].mxu0 %v5030_v14  ;;  %4386 = vmatprep.subr.bf16.mxu1 %v4632_v51  ;;  %v5330_v14 = vld [vmem:[%s4892_s14 + $0x20] ss:$16 sps:$4 sm:$0xff]  }
  0x89   : > { %1593 = vmatmul.mubr.bf16.gmra.mrb[48].mxu1 %v5035_v20  ;;  %1510 = vmatprep.mubr.bf16.mxu0 %v5060_v54  ;;  %v5333_v20 = vld [vmem:[%s4892_s14 + $0x28] ss:$16 sps:$4 sm:$0xff]   ;;  %v4633_v54 = vld [vmem:[%s5819_s1 + $0x300] sm:$0xff]  }
  0x8a   : > { %1599 = vmatprep.mubr.bf16.mxu1 %v5065_v57  ;;  %v4634_v57 = vld [vmem:[%s5819_s1 + $0x380] sm:$0xff]  }
  0x90   : > { %1511 = vmatmul.mubr.bf16.gmra.mrb[52].mxu0 %v5068_v58  ;;  %v5342_v58 = vld [vmem:[%s4892_s14 + $0x44] ss:$16 sps:$4 sm:$0xff]  }
  0x91   : > { %1600 = vmatmul.mubr.bf16.gmra.mrb[52].mxu1 %v5071_v59  ;;  %1517 = vmatprep.mubr.bf16.mxu0 %v5094_v24  ;;  %v5345_v59 = vld [vmem:[%s4892_s14 + $0x4c] ss:$16 sps:$4 sm:$0xff]  }
  0x92   : > { %1606 = vmatprep.mubr.bf16.mxu1 %v5099_v27  ;;  %v2537_v23 = vshll.u32 %v5345_v59, 16 }
  0x98   : > { %1518 = vmatmul.mubr.bf16.gmra.mrb[56].mxu0 %v5102_v28 }
  0x99   : > { %1607 = vmatmul.mubr.bf16.gmra.mrb[56].mxu1 %v5107_v34  ;;  %1524 = vmatprep.mubr.bf16.mxu0 %v5131_v5 }
  0x9a   : > { %1613 = vmatprep.mubr.bf16.mxu1 %v5137_v11 }
  0xa0   : > { %1525 = vmatmul.mubr.bf16.gmra.mrb[60].mxu0 %v5140_v15 }
  0xa1   : > { %1614 = vmatmul.mubr.bf16.gmra.mrb[60].mxu1 %v5143_v18  ;;  %2102 = vmatprep.mubr.bf16.mxu0 %v5320_v10 }
  0xa2   : > { %2191 = vmatprep.mubr.bf16.mxu1 %v5323_v13 }
  0xa8   : > { %2103 = vmatmul.mubr.bf16.vlgmr.msra.gmra.mrb[64].mxu0 %v5330_v14 }
  0xa9   : > { %2192 = vmatmul.mubr.bf16.vlgmr.msra.gmra.mrb[64].mxu1 %v5333_v20  ;;  %4323 = vmatpush3.bf16.msra.mxu0 %v4633_v54  ;;  %v2520_v54 = vshll.u32 %v5333_v20, 16 }
  0xaa   : > { %4387 = vmatpush3.bf16.msra.mxu1 %v4634_v57  ;;  %2109 = vmatprep.mubr.bf16.mxu0 %v5342_v58  ;;  %v4675_v57 = vld [vmem:[%s4892_s14 + $0x64] ss:$16 sps:$4 sm:$0xff]  }
  0xab   : > { %2198 = vmatprep.mubr.bf16.mxu1 %v5345_v59  ;;  %4324 = vmatprep.subr.bf16.mxu0 %v4641_v25  ;;  %v2539_v25 = vrot.slane %v2537_v23, 1 }
  0xac   : > { %4388 = vmatprep.subr.bf16.mxu1 %v4642_v26  ;;  %v4677_v26 = vld [vmem:[%s4892_s14 + $0x6c] ss:$16 sps:$4 sm:$0xff]  }
  0xad   : > { %4325 = vmatpush3.bf16.msra.mxu0 %v4643_v29  ;;  %v5482_v29 = vld [vmem:[%s4892_s14 + $0x100] ss:$16 sps:$4 sm:$0xff]  }
  0xae   : > { %4389 = vmatpush3.bf16.msra.mxu1 %v4644_v30  ;;  %4326 = vmatprep.subr.bf16.mxu0 %v4645_v31  ;;  %v2501_v31 = vshll.u32 %v5370_v36, 16 }
  0xaf   : > { %4390 = vmatprep.subr.bf16.mxu1 %v4646_v35 }
  0xb0   : > { %2110 = vmatmul.mubr.bf16.gmra.mrb[68].mxu0 %v5370_v36 }
  0xb1   : > { %2199 = vmatmul.mubr.bf16.gmra.mrb[68].mxu1 %v5373_v41  ;;  %2116 = vmatprep.mubr.bf16.mxu0 %v4709_v55  ;;  %v2553_v55 = vshll.u32 %v4675_v57, 16 }
  0xb2   : > { %2205 = vmatprep.mubr.bf16.mxu1 %v4710_v56  ;;  %4327 = vmatpush3.bf16.msra.mxu0 %v4647_v42  ;;  %v2518_v42 = vshrl.u32 %v5333_v20, 16  ;;  %v2565_v56 = vshrl.u32 %v5345_v59, 16  ;;  %v4679_v20 = vld [vmem:[%s4892_s14 + $0x60] ss:$16 sps:$4 sm:$0xff]   ;;  %v4683_v59 = vld [vmem:[%s4892_s14 + $0x8c] ss:$16 sps:$4 sm:$0xff]  }
  0xb3   : > { %4391 = vmatpush3.bf16.msra.mxu1 %v4648_v47  ;;  %4328 = vmatprep.subr.bf16.mxu0 %v4649_v52  ;;  %v2522_v47 = vrot.slane %v2520_v54, 1  ;;  %v2525_v52 = vshll.u32 %v5373_v41, 16 }
  0xb4   : > { %4392 = vmatprep.subr.bf16.mxu1 %v4650_v53  ;;  %v2549_v53 = vshrl.u32 %v5342_v58, 16 }
  0xb6   : > { %4329 = vmatpush3.bf16.msra.mxu0 %v4651_v43  ;;  %v2569_v43 = vshll.u32 %v4677_v26, 16 }
  0xb7   : > { %4393 = vmatpush3.bf16.msra.mxu1 %v4652_v60  ;;  %4330 = vmatprep.subr.bf16.mxu0 %v4653_v46  ;;  %v2503_v46 = vrot.slane %v2501_v31, 1 }
  0xb8   : > { %2117 = vmatmul.mubr.bf16.gmra.mrb[72].mxu0 %v4711_v37  ;;  %4394 = vmatprep.subr.bf16.mxu1 %v4654_v61  ;;  %v4680_v61 = vld [vmem:[%s4892_s14 + $0x68] ss:$16 sps:$4 sm:$0xff]   ;;  %v2555_v37 = vrot.slane %v2553_v55, 1  ;;  %v5522_v55 = vld [vmem:[%s4892_s14 + $0xc4] ss:$16 sps:$4 sm:$0xff]  }
  0xb9   : > { %2206 = vmatmul.mubr.bf16.gmra.mrb[72].mxu1 %v4712_v39  ;;  %2123 = vmatprep.mubr.bf16.mxu0 %v4713_v45  ;;  %v2571_v39 = vrot.slane %v2569_v43, 1  ;;  %v5525_v43 = vld [vmem:[%s4892_s14 + $0xcc] ss:$16 sps:$4 sm:$0xff]  }
  0xba   : > { %2212 = vmatprep.mubr.bf16.mxu1 %v4714_v33  ;;  %4331 = vmatpush3.bf16.msra.mxu0 %v4655_v62  ;;  %v4681_v62 = vld [vmem:[%s4892_s14 + $0x84] ss:$16 sps:$4 sm:$0xff]   ;;  %v2541_v33 = vshrl.u32 %v5370_v36, 16 }
  0xbb   : > { %4395 = vmatpush3.bf16.msra.mxu1 %v4656_v63  ;;  %4332 = vmatprep.subr.bf16.mxu0 %v4657_v32  ;;  %v2523_v63 = vor.u32 %v2522_v47, %v2518_v42  ;;  %v2613_v54 = vshrl.u32 %v4681_v62, 16 }
  0xbc   : > { %4396 = vmatprep.subr.bf16.mxu1 %v4658_v0  ;;  %v2567_v0 = vor.u32 %v2565_v56, %v2539_v25  ;;  %v2543_v36 = vor.u32 %v2541_v33, %v2503_v46 }
  0xbe   : > { %4333 = vmatpush3.bf16.msra.mxu0 %v4659_v38  ;;  %v2557_v38 = vshrl.u32 %v5373_v41, 16 }
  0xbf   : > { %4397 = vmatpush3.bf16.msra.mxu1 %v4660_v1  ;;  %4334 = vmatprep.subr.bf16.mxu0 %v4661_v2  ;;  %v2545_v1 = vshll.u32 %v4679_v20, 16  ;;  %v2561_v2 = vshll.u32 %v4680_v61, 16 }
  0xc0   : > { %2124 = vmatmul.mubr.bf16.gmra.mrb[76].mxu0 %v4715_v12  ;;  %4398 = vmatprep.subr.bf16.mxu1 %v4662_v3  ;;  %v2581_v3 = vshrl.u32 %v4675_v57, 16  ;;  %v2572_v12 = vsel %vm544_vm0, %v2567_v0, %v2571_v39 }
  0xc1   : > { %2213 = vmatmul.mubr.bf16.gmra.mrb[76].mxu1 %v4716_v6  ;;  %2130 = vmatprep.mubr.bf16.mxu0 %v4717_v7  ;;  %v2601_v6 = vshll.u32 %v4683_v59, 16  ;;  %v2547_v41 = vrot.slane %v2545_v1, 1 }
  0xc2   : > { %2219 = vmatprep.mubr.bf16.mxu1 %v4718_v16  ;;  %4335 = vmatpush3.bf16.msra.mxu0 %v4663_v40  ;;  %v2585_v40 = vshll.u32 %v4681_v62, 16  ;;  %v2563_v16 = vrot.slane %v2561_v2, 1 }
  0xc3   : > { %4399 = vmatpush3.bf16.msra.mxu1 %v4664_v50  ;;  %4336 = vmatprep.subr.bf16.mxu0 %v4671_v8 }
  0xc4   : > { %4400 = vmatprep.subr.bf16.mxu1 %v4672_v4  ;;  %v2597_v4 = vshrl.u32 %v4677_v26, 16 }
  0xc6   : > { %4337 = vmatpush3.bf16.msra.mxu0 %v4673_v9  ;;  %v2583_v9 = vor.u32 %v2581_v3, %v2555_v37  ;;  %v5539_v3 = vld [vmem:[%s4892_s14 + $0xc8] ss:$16 sps:$4 sm:$0xff]  }
  0xc7   : > { %4401 = vmatpush3.bf16.msra.mxu1 %v4674_v17  ;;  %v2587_v17 = vrot.slane %v2585_v40, 1 }
  0xc8   : > { %2131 = vmatmul.mubr.bf16.gmra.mrb[80].mxu0 %v4719_v44  ;;  %v4685_v44 = vld [vmem:[%s4892_s14 + $0x80] ss:$16 sps:$4 sm:$0xff]  }
  0xc9   : > { %2220 = vmatmul.mubr.bf16.gmra.mrb[80].mxu1 %v4720_v48  ;;  %2137 = vmatprep.mubr.bf16.mxu0 %v5094_v24  ;;  %v2510_v24 = vrot.slane %v2508_v19, 1  ;;  %v4686_v48 = vld [vmem:[%s4892_s14 + $0x88] ss:$16 sps:$4 sm:$0xff]   ;;  %v4687_v19 = vld [vmem:[%s4892_s14 + $0xa4] ss:$16 sps:$4 sm:$0xff]   ;;  %v2588_v23 = vsel %vm544_vm0, %v2583_v9, %v2587_v17 }
  0xca   : > { %2226 = vmatprep.mubr.bf16.mxu1 %v5099_v27  ;;  %v2513_v27 = vshll.u32 %v5342_v58, 16  ;;  %v2527_v58 = vrot.slane %v2525_v52, 1  ;;  %v2617_v57 = vshll.u32 %v4687_v19, 16  ;;  %v2615_v52 = vor.u32 %v2613_v54, %v2587_v17 }
  0xcb   : > { %v2511_v51 = vor.u32 %v2510_v24, %v2506_v49  ;;  %v2603_v49 = vrot.slane %v2601_v6, 1  ;;  %v4689_v24 = vld [vmem:[%s4892_s14 + $0xac] ss:$16 sps:$4 sm:$0xff]  }
  0xcc   : > { %v2515_v10 = vrot.slane %v2513_v27, 1  ;;  %v2528_v50 = vsel %vm544_vm0, %v2523_v63, %v2527_v58  ;;  %v2559_v7 = vor.u32 %v2557_v38, %v2527_v58  ;;  %v2573_v27 = vshrl.u32 %v4679_v20, 16  ;;  %v5536_v38 = vld [vmem:[%s4892_s14 + $0xc0] ss:$16 sps:$4 sm:$0xff]  }
  0xcd   : > { %v2633_v26 = vshll.u32 %v4689_v24, 16  ;;  %v2641_v17 = vshll.u32 %v5536_v38, 16 }
  0xce   : > { %v2516_v35 = vsel %vm544_vm0, %v2511_v51, %v2515_v10  ;;  %v2551_v32 = vor.u32 %v2549_v53, %v2515_v10  ;;  %v2589_v51 = vshrl.u32 %v4680_v61, 16  ;;  %v2593_v10 = vshll.u32 %v4686_v48, 16 }
  0xcf   : > { %v2619_v53 = vrot.slane %v2617_v57, 1  ;;  %v2635_v56 = vrot.slane %v2633_v26, 1  ;;  %v2621_v61 = vshrl.u32 %v4686_v48, 16  ;;  %v2693_v57 = vshrl.u32 %v5525_v43, 16 }
  0xd0   : > { %2138 = vmatmul.mubr.bf16.gmra.mrb[84].mxu0 %v5102_v28  ;;  %v5469_v28 = vld [vmem:[%s4892_s14 + $0x10c] ss:$16 sps:$4 sm:$0xff]   ;;  %v2556_v8 = vsel %vm544_vm0, %v2551_v32, %v2555_v37  ;;  %v2591_v42 = vor.u32 %v2589_v51, %v2563_v16  ;;  %v2595_v47 = vrot.slane %v2593_v10, 1  ;;  %v2645_v32 = vshrl.u32 %v4687_v19, 16 }
  0xd1   : > { %2227 = vmatmul.mubr.bf16.gmra.mrb[84].mxu1 %v5107_v34  ;;  %2144 = vmatprep.mubr.bf16.mxu0 %v5131_v5  ;;  %v2530_v34 = vshrl.u32 %v5323_v13, 16  ;;  %v2534_v5 = vrot.slane %v2532_v21, 1  ;;  %v2599_v21 = vor.u32 %v2597_v4, %v2571_v39  ;;  %v2620_v58 = vsel %vm544_vm0, %v2615_v52, %v2619_v53  ;;  %v5565_v52 = vld [vmem:[%s4892_s14 + $0xe8] ss:$16 sps:$4 sm:$0xff]  }
  0xd2   : > { %2233 = vmatprep.mubr.bf16.mxu1 %v5137_v11  ;;  %v2496_v11 = vshll.u32 %v5330_v14, 16  ;;  %v2596_v63 = vsel %vm544_vm0, %v2591_v42, %v2595_v47  ;;  %v2649_v37 = vshll.u32 %v5522_v55, 16  ;;  %v2661_v39 = vshrl.u32 %v4689_v24, 16 }
  0xd3   : > { %v2535_v13 = vor.u32 %v2534_v5, %v2530_v34  ;;  %v2548_v34 = vsel %vm544_vm0, %v2543_v36, %v2547_v41  ;;  %v2564_v5 = vsel %vm544_vm0, %v2559_v7, %v2563_v16  ;;  %v2623_v1 = vor.u32 %v2621_v61, %v2595_v47  ;;  %v5545_v36 = vld [vmem:[%s4892_s14 + $0xec] ss:$16 sps:$4 sm:$0xff]  }
  0xd4   : > { %v2498_v30 = vrot.slane %v2496_v11, 1  ;;  %v2577_v11 = vshll.u32 %v4685_v44, 16  ;;  %v2647_v40 = vor.u32 %v2645_v32, %v2619_v53  ;;  %v2663_v4 = vor.u32 %v2661_v39, %v2635_v56 }
  0xd5   : > { %v2657_v24 = vshll.u32 %v5539_v3, 16 }
  0xd6   : > { %v2579_v31 = vrot.slane %v2577_v11, 1  ;;  %v2677_v11 = vshrl.u32 %v5522_v55, 16 }
  0xd8   : > { %2145 = vmatmul.mubr.bf16.gmra.mrb[88].mxu0 %v5140_v15  ;;  %v2494_v15 = vshrl.u32 %v5330_v14, 16  ;;  %v2540_v14 = vsel %vm544_vm0, %v2535_v13, %v2539_v25  ;;  %v2604_v13 = vsel %vm544_vm0, %v2599_v21, %v2603_v49  ;;  %v2629_v25 = vshrl.u32 %v4683_v59, 16 }
  0xd9   : > { %2234 = vmatmul.mubr.bf16.gmra.mrb[88].mxu1 %v5143_v18  ;;  %2151 = vmatprep.mubr.bf16.mxu0 %v5464_v22  ;;  %v5487_v18 = vld [vmem:[%s4892_s14 + $0x108] ss:$16 sps:$4 sm:$0xff]   ;;  %v2665_v59 = vshll.u32 %v5525_v43, 16 }
  0xda   : > { %2240 = vmatprep.mubr.bf16.mxu1 %v5469_v28  ;;  %v2499_v60 = vor.u32 %v2498_v30, %v2494_v15  ;;  %v5516_v15 = vld [vmem:[%s4892_s14 + $0xa0] ss:$16 sps:$4 sm:$0xff]   ;;  %v2575_v30 = vor.u32 %v2573_v27, %v2547_v41 }
  0xdb   : > { %v2667_v6 = vrot.slane %v2665_v59, 1  ;;  %v2637_v9 = vshrl.u32 %v5516_v15, 16 }
  0xdc   : > { %v2504_v45 = vsel %vm544_vm0, %v2499_v60, %v2503_v46  ;;  %v2605_v60 = vshrl.u32 %v4685_v44, 16  ;;  %v2609_v46 = vshll.u32 %v5516_v15, 16  ;;  %v2580_v20 = vsel %vm544_vm0, %v2575_v30, %v2579_v31 }
  0xdd   : > { %v2668_v54 = vsel %vm544_vm0, %v2663_v4, %v2667_v6  ;;  %v2643_v15 = vrot.slane %v2641_v17, 1  ;;  %v2695_v55 = vor.u32 %v2693_v57, %v2667_v6 }
  0xde   : > { %v2611_v33 = vrot.slane %v2609_v46, 1  ;;  %v2669_v46 = vshrl.u32 %v5536_v38, 16 }
  0xe0   : > { %2152 = vmatmul.mubr.bf16.gmra.mrb[92].mxu0 %v5482_v29  ;;  %v2639_v26 = vor.u32 %v2637_v9, %v2611_v33  ;;  %v2671_v6 = vor.u32 %v2669_v46, %v2643_v15 }
  0xe1   : > { %2241 = vmatmul.mubr.bf16.gmra.mrb[92].mxu1 %v5487_v18  ;;  %3021 = vmatprep.mubr.bf16.mxu0 %v2516_v35  ;;  %v5519_v35 = vld [vmem:[%s4892_s14 + $0xa8] ss:$16 sps:$4 sm:$0xff]  }
  0xe2   : > { %3110 = vmatprep.mubr.bf16.mxu1 %v2540_v14  ;;  %v2631_v14 = vor.u32 %v2629_v25, %v2603_v49  ;;  %v2625_v62 = vshll.u32 %v5519_v35, 16  ;;  %v2653_v49 = vshrl.u32 %v5519_v35, 16  ;;  %v5562_v35 = vld [vmem:[%s4892_s14 + $0xe0] ss:$16 sps:$4 sm:$0xff]  }
  0xe3   : > { %v2673_v32 = vshll.u32 %v5562_v35, 16 }
  0xe4   : > { %v2636_v0 = vsel %vm544_vm0, %v2631_v14, %v2635_v56  ;;  %v2627_v2 = vrot.slane %v2625_v62, 1 }
  0xe6   : > { %v2628_v21 = vsel %vm544_vm0, %v2623_v1, %v2627_v2  ;;  %v2655_v30 = vor.u32 %v2653_v49, %v2627_v2 }
  0xe8   : > { %3022 = vmatmul.mubr.bf16.vlgmr.msra.gmra.mrb[96].mxu0 %v2504_v45  ;;  %v2607_v45 = vor.u32 %v2605_v60, %v2579_v31  ;;  %v2659_v31 = vrot.slane %v2657_v24, 1  ;;  %v2644_v60 = vsel %vm544_vm0, %v2639_v26, %v2643_v15  ;;  %v2705_v24 = vshll.u32 %v5482_v29, 16 }
  0xe9   : > { %3111 = vmatmul.mubr.bf16.vlgmr.msra.gmra.mrb[96].mxu1 %v2528_v50  ;;  %3028 = vmatprep.mubr.bf16.mxu0 %v2556_v8  ;;  %v2651_v50 = vrot.slane %v2649_v37, 1  ;;  %v5542_v8 = vld [vmem:[%s4892_s14 + $0xe4] ss:$16 sps:$4 sm:$0xff]   ;;  %v2685_v37 = vshrl.u32 %v5539_v3, 16  ;;  %v5585_v3 = vld [vmem:[%s4892_s14 + $0x128] sm:$0x11] }
  0xea   : > { %3117 = vmatprep.mubr.bf16.mxu1 %v2572_v12  ;;  %v2612_v16 = vsel %vm544_vm0, %v2607_v45, %v2611_v33  ;;  %v2681_v51 = vshll.u32 %v5542_v8, 16  ;;  %v2689_v33 = vshll.u32 %v5565_v52, 16  ;;  %v2709_v38 = vshrl.u32 %v5542_v8, 16 }
  0xeb   : > { %v2679_v42 = vor.u32 %v2677_v11, %v2651_v50  ;;  %v2687_v8 = vor.u32 %v2685_v37, %v2659_v31 }
  0xec   : > { %v2683_v47 = vrot.slane %v2681_v51, 1 }
  0xee   : > { %v2684_v45 = vsel %vm544_vm0, %v2679_v42, %v2683_v47  ;;  %v2711_v9 = vor.u32 %v2709_v38, %v2683_v47  ;;  %v2757_v47 = vshrl.u32 %v5469_v28, 16 }
  0xf0   : > { %3029 = vmatmul.mubr.bf16.gmra.mrb[100].mxu0 %v2548_v34 }
  0xf1   : > { %3118 = vmatmul.mubr.bf16.gmra.mrb[100].mxu1 %v2564_v5  ;;  %3035 = vmatprep.mubr.bf16.mxu0 %v2588_v23  ;;  %v2652_v23 = vsel %vm544_vm0, %v2647_v40, %v2651_v50  ;;  %v2725_v40 = vshrl.u32 %v5545_v36, 16  ;;  %v2729_v50 = vshll.u32 %v5469_v28, 16 }
  0xf2   : > { %3124 = vmatprep.mubr.bf16.mxu1 %v2604_v13  ;;  %v2697_v13 = vshll.u32 %v5545_v36, 16 }
  0xf4   : > { %v2699_v14 = vrot.slane %v2697_v13, 1 }
  0xf6   : > { %v2700_v2 = vsel %vm544_vm0, %v2695_v55, %v2699_v14 }
  0xf8   : > { %3036 = vmatmul.mubr.bf16.gmra.mrb[104].mxu0 %v2580_v20  ;;  %v2713_v20 = vshll.u32 %v5464_v22, 16 }
  0xf9   : > { %3125 = vmatmul.mubr.bf16.gmra.mrb[104].mxu1 %v2596_v63  ;;  %3042 = vmatprep.mubr.bf16.mxu0 %v2620_v58  ;;  %v2660_v58 = vsel %vm544_vm0, %v2655_v30, %v2659_v31 }
  0xfa   : > { %3131 = vmatprep.mubr.bf16.mxu1 %v2636_v0 }
  0xfb   : > { %v3954_v12 = vpop.f32.mrb[0].mxu0 }
  0xfc   : > { %v4018_v7 = vpop.f32.mrb[0].mxu1  ;;  %v3955_v41 = vpop.f32.mrb[1].mxu0 }
  0xfd   : > { %v3956_v44 = vadd.f32 %v3955_v41, %v3954_v12  ;;  %v4019_v48 = vpop.f32.mrb[1].mxu1  ;;  %v3957_v19 = vpop.f32.mrb[2].mxu0  ;;  %v5580_v12 = vld [vmem:[%s4892_s14 + $0x120] sm:$0x11]  ;;  %v2715_v41 = vrot.slane %v2713_v20, 1  ;;  %v3852_v20 = vcombine.low %v5585_v3, %v5585_v3  ;;  %s4451_s14 = smul.u32 88, %s5832_s15 }
  0xfe   : > { %v4020_v27 = vadd.f32 %v4019_v48, %v4018_v7  ;;  %v4021_v34 = vpop.f32.mrb[2].mxu1  ;;  %v3958_v5 = vpop.f32.mrb[3].mxu0  ;;  %v2675_v7 = vrot.slane %v2673_v32, 1  ;;  %v3851_v36 = vcombine.high %v5580_v12, %v5580_v12  ;;  %v2731_v48 = vrot.slane %v2729_v50, 1 }
  0xff   : > { %v4022_v10 = vpop.f32.mrb[3].mxu1  ;;  %v3853_v19 = vcombine.high %v5585_v3, %v5585_v3  ;;  %v2741_v34 = vshrl.u32 %v5464_v22, 16  ;;  %v2716_v30 = vsel %vm544_vm0, %v2711_v9, %v2715_v41  ;;  %v2733_v32 = vshrl.u32 %v5482_v29, 16  ;;  %s5630_s26 = scalar_lea.vmem %s5822_s4, %s4451_s14 }
 0x100   : > { %v5559_v25 = vadd.f32 %v4020_v27, %v3956_v44  ;;  %3043 = vmatmul.mubr.bf16.gmra.mrb[108].mxu0 %v2612_v16  ;;  %v2691_v16 = vrot.slane %v2689_v33, 1  ;;  %v2727_v44 = vor.u32 %v2725_v40, %v2699_v14  ;;  %v2721_v27 = vshll.u32 %v5487_v18, 16 }
 0x101   : > { %3132 = vmatmul.mubr.bf16.gmra.mrb[108].mxu1 %v2628_v21  ;;  %3049 = vmatprep.mubr.bf16.mxu0 %v2652_v23  ;;  %v2676_v51 = vsel %vm544_vm0, %v2671_v6, %v2675_v7  ;;  %v2701_v10 = vshrl.u32 %v5562_v35, 16  ;;  %v2745_v31 = vshll.u32 %v3851_v36, 16  ;;  %v2707_v35 = vrot.slane %v2705_v24, 1 }
 0x102   : > { %3138 = vmatprep.mubr.bf16.mxu1 %v2668_v54  ;;  %v2717_v54 = vshrl.u32 %v5565_v52, 16  ;;  %v2692_v15 = vsel %vm544_vm0, %v2687_v8, %v2691_v16  ;;  %v2732_v22 = vsel %vm544_vm0, %v2727_v44, %v2731_v48  ;;  %v2749_v50 = vshrl.u32 %v5487_v18, 16 }
 0x103   : > { %v3960_v53 = vpop.f32.mrb[4].mxu0  ;;  %v2703_v52 = vor.u32 %v2701_v10, %v2675_v7  ;;  %v2747_v46 = vrot.slane %v2745_v31, 1  ;;  %v2735_v7 = vor.u32 %v2733_v32, %v2707_v35 }
 0x104   : > { %v4024_v56 = vpop.f32.mrb[4].mxu1  ;;  %v3961_v43 = vpop.f32.mrb[5].mxu0  ;;  %v2719_v14 = vor.u32 %v2717_v54, %v2691_v16 }
 0x105   : > { %v3962_v61 = vadd.f32 %v3961_v43, %v3960_v53  ;;  %v4025_v62 = vpop.f32.mrb[5].mxu1  ;;  %v3963_v63 = vpop.f32.mrb[6].mxu0  ;;  %v2761_v53 = vshll.u32 %v3853_v19, 16  ;;  %v3850_v43 = vcombine.low %v5580_v12, %v5580_v12  ;;  %v2753_v12 = vshll.u32 %v3852_v20, 16 }
 0x106   : > { %v4026_v0 = vadd.f32 %v4025_v62, %v4024_v56  ;;  %v4027_v39 = vpop.f32.mrb[6].mxu1  ;;  %v3964_v59 = vpop.f32.mrb[7].mxu0  ;;  %v2723_v56 = vrot.slane %v2721_v27, 1 }
 0x107   : > { %v4028_v1 = vpop.f32.mrb[7].mxu1  ;;  %v2763_v62 = vrot.slane %v2761_v53, 1  ;;  %v2708_v59 = vsel %vm544_vm0, %v2703_v52, %v2707_v35  ;;  %v2737_v33 = vshll.u32 %v3850_v43, 16  ;;  %v2755_v16 = vrot.slane %v2753_v12, 1 }
 0x108   : > { %v5582_v4 = vadd.f32 %v4026_v0, %v3962_v61  ;;  %3050 = vmatmul.mubr.bf16.gmra.mrb[112].mxu0 %v2644_v60  ;;  %v2743_v60 = vor.u32 %v2741_v34, %v2715_v41  ;;  %v2759_v61 = vor.u32 %v2757_v47, %v2731_v48  ;;  %v2751_v8 = vor.u32 %v2749_v50, %v2723_v56 }
 0x109   : > { %3139 = vmatmul.mubr.bf16.gmra.mrb[112].mxu1 %v2660_v58  ;;  %3056 = vmatprep.mubr.bf16.mxu0 %v2684_v45  ;;  %v2724_v45 = vsel %vm544_vm0, %v2719_v14, %v2723_v56  ;;  %v2739_v41 = vrot.slane %v2737_v33, 1 }
 0x10a   : > { %3145 = vmatprep.mubr.bf16.mxu1 %v2700_v2  ;;  %v2748_v40 = vsel %vm544_vm0, %v2743_v60, %v2747_v46  ;;  %v2764_v6 = vsel %vm544_vm0, %v2759_v61, %v2763_v62  ;;  %v2756_v27 = vsel %vm544_vm0, %v2751_v8, %v2755_v16 }
 0x10b   : > { %v3966_v17 = vpop.f32.mrb[8].mxu0  ;;  %v2740_v19 = vsel %vm544_vm0, %v2735_v7, %v2739_v41 }
 0x10c   : > { %v4030_v21 = vpop.f32.mrb[8].mxu1  ;;  %v3967_v49 = vpop.f32.mrb[9].mxu0 }
 0x10d   : > { %v3968_v5 = vadd.f32 %v3967_v49, %v3966_v17  ;;  %v4031_v23 = vpop.f32.mrb[9].mxu1  ;;  %v3969_v11 = vpop.f32.mrb[10].mxu0 }
 0x10e   : > { %v4032_v57 = vadd.f32 %v4031_v23, %v4030_v21  ;;  %v4033_v13 = vpop.f32.mrb[10].mxu1  ;;  %v3970_v26 = vpop.f32.mrb[11].mxu0 }
 0x10f   : > { %v4034_v42 = vpop.f32.mrb[11].mxu1 }
 0x110   : > { %v5601_v55 = vadd.f32 %v4032_v57, %v3968_v5  ;;  %3057 = vmatmul.mubr.bf16.gmra.mrb[116].mxu0 %v2676_v51 }
 0x111   : > { %3146 = vmatmul.mubr.bf16.gmra.mrb[116].mxu1 %v2692_v15  ;;  %3063 = vmatprep.mubr.bf16.mxu0 %v2716_v30 }
 0x112   : > { %3152 = vmatprep.mubr.bf16.mxu1 %v2732_v22 }
 0x113   : > { %v3972_v28 = vpop.f32.mrb[12].mxu0 }
 0x114   : > { %v4036_v63 = vpop.f32.mrb[12].mxu1  ;;  %v3973_v58 = vpop.f32.mrb[13].mxu0 }
 0x115   : > { %v3974_v37 = vadd.f32 %v3973_v58, %v3972_v28  ;;  %v4037_v0 = vpop.f32.mrb[13].mxu1  ;;  %v3975_v39 = vpop.f32.mrb[14].mxu0 }
 0x116   : > { %v4038_v38 = vadd.f32 %v4037_v0, %v4036_v63  ;;  %v4039_v1 = vpop.f32.mrb[14].mxu1  ;;  %v3976_v2 = vpop.f32.mrb[15].mxu0 }
 0x117   : > { %v4040_v3 = vpop.f32.mrb[15].mxu1 }
 0x118   : > { %v5613_v29 = vadd.f32 %v4038_v38, %v3974_v37  ;;  %3064 = vmatmul.mubr.bf16.gmra.mrb[120].mxu0 %v2708_v59 }
 0x119   : > { %3153 = vmatmul.mubr.bf16.gmra.mrb[120].mxu1 %v2724_v45  ;;  %3070 = vmatprep.mubr.bf16.mxu0 %v2748_v40 }
 0x11a   : > { %3159 = vmatprep.mubr.bf16.mxu1 %v2764_v6 }
 0x11b   : > { %v3978_v9 = vpop.f32.mrb[16].mxu0 }
 0x11c   : > { %v4042_v36 = vpop.f32.mrb[16].mxu1  ;;  %v3979_v17 = vpop.f32.mrb[17].mxu0 }
 0x11d   : > { %v3980_v44 = vadd.f32 %v3979_v17, %v3978_v9  ;;  %v4043_v48 = vpop.f32.mrb[17].mxu1  ;;  %v3981_v18 = vpop.f32.mrb[18].mxu0 }
 0x11e   : > { %v4044_v21 = vadd.f32 %v4043_v48, %v4042_v36  ;;  %v4045_v49 = vpop.f32.mrb[18].mxu1  ;;  %v3982_v24 = vpop.f32.mrb[19].mxu0 }
 0x11f   : > { %v4046_v34 = vpop.f32.mrb[19].mxu1 }
 0x120   : > { %v5617_v5 = vadd.f32 %v4044_v21, %v3980_v44  ;;  %3071 = vmatmul.mubr.bf16.gmra.mrb[124].mxu0 %v2740_v19 }
 0x121   : > { %3160 = vmatmul.mubr.bf16.gmra.mrb[124].mxu1 %v2756_v27 }
 0x123   : > { %v3984_v23 = vpop.f32.mrb[20].mxu0 }
 0x124   : > { %v4048_v11 = vpop.f32.mrb[20].mxu1  ;;  %v3985_v51 = vpop.f32.mrb[21].mxu0 }
 0x125   : > { %v3986_v10 = vadd.f32 %v3985_v51, %v3984_v23  ;;  %v4049_v54 = vpop.f32.mrb[21].mxu1  ;;  %v3987_v57 = vpop.f32.mrb[22].mxu0 }
 0x126   : > { %v4050_v13 = vadd.f32 %v4049_v54, %v4048_v11  ;;  %v4051_v26 = vpop.f32.mrb[22].mxu1  ;;  %v3988_v15 = vpop.f32.mrb[23].mxu0 }
 0x127   : > { %v4052_v30 = vpop.f32.mrb[23].mxu1 }
 0x128   : > { %v5619_v31 = vadd.f32 %v4050_v13, %v3986_v10 }
 0x12b   : > { %v3990_v42 = vpop.f32.mrb[24].mxu0 }
 0x12c   : > { %v4054_v22 = vpop.f32.mrb[24].mxu1  ;;  %v3991_v47 = vpop.f32.mrb[25].mxu0 }
 0x12d   : > { %v3992_v53 = vadd.f32 %v3991_v47, %v3990_v42  ;;  %v4055_v35 = vpop.f32.mrb[25].mxu1  ;;  %v3993_v52 = vpop.f32.mrb[26].mxu0 }
 0x12e   : > { %v4056_v14 = vadd.f32 %v4055_v35, %v4054_v22  ;;  %v4057_v56 = vpop.f32.mrb[26].mxu1  ;;  %v3994_v43 = vpop.f32.mrb[27].mxu0 }
 0x12f   : > { %v4058_v60 = vpop.f32.mrb[27].mxu1 }
 0x130   : > { %v5621_v46 = vadd.f32 %v4056_v14, %v3992_v53 }
 0x133   : > { %v3996_v20 = vpop.f32.mrb[28].mxu0 }
 0x134   : > { %v4060_v28 = vpop.f32.mrb[28].mxu1  ;;  %v3997_v61 = vpop.f32.mrb[29].mxu0 }
 0x135   : > { %v3998_v62 = vadd.f32 %v3997_v61, %v3996_v20  ;;  %v4061_v63 = vpop.f32.mrb[29].mxu1  ;;  %v3999_v58 = vpop.f32.mrb[30].mxu0 }
 0x136   : > { %v4062_v32 = vadd.f32 %v4061_v63, %v4060_v28  ;;  %v4063_v37 = vpop.f32.mrb[30].mxu1  ;;  %v4000_v0 = vpop.f32.mrb[31].mxu0 }
 0x137   : > { %v4064_v39 = vpop.f32.mrb[31].mxu1 }
 0x138   : > { %v5623_v59 = vadd.f32 %v4062_v32, %v3998_v62 }
 0x13b   : > { %v4082_v45 = vpop.f32.mrb[32].mxu0 }
 0x13c   : > { %v4146_v33 = vpop.f32.mrb[32].mxu1  ;;  %v4083_v38 = vpop.f32.mrb[33].mxu0 }
 0x13d   : > { %v4084_v1 = vadd.f32 %v4083_v38, %v4082_v45  ;;  %v4147_v2 = vpop.f32.mrb[33].mxu1  ;;  %v4085_v40 = vpop.f32.mrb[34].mxu0 }
 0x13e   : > { %v4148_v50 = vadd.f32 %v4147_v2, %v4146_v33  ;;  %v4149_v12 = vpop.f32.mrb[34].mxu1  ;;  %v4086_v3 = vpop.f32.mrb[35].mxu0 }
 0x13f   : > { %v1478_v6 = vadd.f32 %v4084_v1, %v5559_v25  ;;  %v4150_v7 = vpop.f32.mrb[35].mxu1  ;;  %v4745_v25 = vmov 0  }
 0x140   : > { %223 = vst [vmem:[%s5630_s26 + $0x8] sm:$0xf] %v4745_v25  ;;  %224 = vst [vmem:[%s5630_s26 + $0xc] sm:$0xf] %v4745_v25 }
 0x141   : > { %221 = vst [vmem:[%s5630_s26] sm:$0xf] %v4745_v25  ;;  %222 = vst [vmem:[%s5630_s26 + $0x4] sm:$0xf] %v4745_v25  ;;  %v5654_v41 = vadd.f32 %v4148_v50, %v1478_v6 }
 0x142   : > { %225 = vst [vmem:[%s5630_s26 + $0x10] sm:$0xf] %v4745_v25  ;;  %226 = vst [vmem:[%s5630_s26 + $0x14] sm:$0xf] %v4745_v25 }
 0x143   : > { %227 = vst [vmem:[%s5630_s26 + $0x18] sm:$0xf] %v4745_v25  ;;  %228 = vst [vmem:[%s5630_s26 + $0x1c] sm:$0xf] %v4745_v25  ;;  %v4088_v8 = vpop.f32.mrb[36].mxu0 }
 0x144   : > { %229 = vst [vmem:[%s5630_s26 + $0x20] sm:$0xf] %v4745_v25  ;;  %230 = vst [vmem:[%s5630_s26 + $0x24] sm:$0xf] %v4745_v25  ;;  %v4152_v16 = vpop.f32.mrb[36].mxu1  ;;  %v4089_v9 = vpop.f32.mrb[37].mxu0 }
 0x145   : > { %231 = vst [vmem:[%s5630_s26 + $0x28] sm:$0xf] %v4745_v25  ;;  %232 = vst [vmem:[%s5630_s26 + $0x2c] sm:$0xf] %v4745_v25  ;;  %v4090_v36 = vadd.f32 %v4089_v9, %v4088_v8  ;;  %v4153_v17 = vpop.f32.mrb[37].mxu1  ;;  %v4091_v44 = vpop.f32.mrb[38].mxu0 }
 0x146   : > { %233 = vst [vmem:[%s5630_s26 + $0x30] sm:$0xf] %v4745_v25  ;;  %234 = vst [vmem:[%s5630_s26 + $0x34] sm:$0xf] %v4745_v25  ;;  %v4154_v48 = vadd.f32 %v4153_v17, %v4152_v16  ;;  %v4155_v18 = vpop.f32.mrb[38].mxu1  ;;  %v4092_v19 = vpop.f32.mrb[39].mxu0 }
 0x147   : > { %235 = vst [vmem:[%s5630_s26 + $0x38] sm:$0xf] %v4745_v25  ;;  %236 = vst [vmem:[%s5630_s26 + $0x3c] sm:$0xf] %v4745_v25  ;;  %v1485_v21 = vadd.f32 %v4090_v36, %v5582_v4  ;;  %v4156_v49 = vpop.f32.mrb[39].mxu1 }
 0x148   : > { %237 = vst [vmem:[%s5630_s26 + $0x40] sm:$0xf] %v4745_v25  ;;  %238 = vst [vmem:[%s5630_s26 + $0x44] sm:$0xf] %v4745_v25 }
 0x149   : > { %239 = vst [vmem:[%s5630_s26 + $0x48] sm:$0xf] %v4745_v25  ;;  %240 = vst [vmem:[%s5630_s26 + $0x4c] sm:$0xf] %v4745_v25  ;;  %v5657_v24 = vadd.f32 %v4154_v48, %v1485_v21 }
 0x14a   : > { %241 = vst [vmem:[%s5630_s26 + $0x50] sm:$0xf] %v4745_v25  ;;  %242 = vst [vmem:[%s5630_s26 + $0x54] sm:$0xf] %v4745_v25 }
 0x14b   : > { %v4094_v27 = vpop.f32.mrb[40].mxu0 }
 0x14c   : > { %v4158_v34 = vpop.f32.mrb[40].mxu1  ;;  %v4095_v23 = vpop.f32.mrb[41].mxu0 }
 0x14d   : > { %v4096_v11 = vadd.f32 %v4095_v23, %v4094_v27  ;;  %v4159_v51 = vpop.f32.mrb[41].mxu1  ;;  %v4097_v10 = vpop.f32.mrb[42].mxu0 }
 0x14e   : > { %v4160_v54 = vadd.f32 %v4159_v51, %v4158_v34  ;;  %v4161_v57 = vpop.f32.mrb[42].mxu1  ;;  %v4098_v13 = vpop.f32.mrb[43].mxu0 }
 0x14f   : > { %v1492_v26 = vadd.f32 %v4096_v11, %v5601_v55  ;;  %v4162_v15 = vpop.f32.mrb[43].mxu1 }
 0x151   : > { %v5660_v30 = vadd.f32 %v4160_v54, %v1492_v26 }
 0x153   : > { %v4100_v42 = vpop.f32.mrb[44].mxu0 }
 0x154   : > { %v4164_v22 = vpop.f32.mrb[44].mxu1  ;;  %v4101_v4 = vpop.f32.mrb[45].mxu0 }
 0x155   : > { %v4102_v47 = vadd.f32 %v4101_v4, %v4100_v42  ;;  %v4165_v53 = vpop.f32.mrb[45].mxu1  ;;  %v4103_v35 = vpop.f32.mrb[46].mxu0 }
 0x156   : > { %v4166_v52 = vadd.f32 %v4165_v53, %v4164_v22  ;;  %v4167_v14 = vpop.f32.mrb[46].mxu1  ;;  %v4104_v56 = vpop.f32.mrb[47].mxu0 }
 0x157   : > { %v1499_v43 = vadd.f32 %v4102_v47, %v5613_v29  ;;  %v4168_v60 = vpop.f32.mrb[47].mxu1 }
 0x159   : > { %v5663_v20 = vadd.f32 %v4166_v52, %v1499_v43 }
 0x15b   : > { %v4106_v28 = vpop.f32.mrb[48].mxu0 }
 0x15c   : > { %v4170_v61 = vpop.f32.mrb[48].mxu1  ;;  %v4107_v55 = vpop.f32.mrb[49].mxu0 }
 0x15d   : > { %v4108_v62 = vadd.f32 %v4107_v55, %v4106_v28  ;;  %v4171_v63 = vpop.f32.mrb[49].mxu1  ;;  %v4109_v58 = vpop.f32.mrb[50].mxu0 }
 0x15e   : > { %v4172_v32 = vadd.f32 %v4171_v63, %v4170_v61  ;;  %v4173_v37 = vpop.f32.mrb[50].mxu1  ;;  %v4110_v0 = vpop.f32.mrb[51].mxu0 }
 0x15f   : > { %v1506_v39 = vadd.f32 %v4108_v62, %v5617_v5  ;;  %v4174_v45 = vpop.f32.mrb[51].mxu1 }
 0x161   : > { %v5666_v33 = vadd.f32 %v4172_v32, %v1506_v39 }
 0x163   : > { %v4112_v38 = vpop.f32.mrb[52].mxu0 }
 0x164   : > { %v4176_v1 = vpop.f32.mrb[52].mxu1  ;;  %v4113_v29 = vpop.f32.mrb[53].mxu0 }
 0x165   : > { %v4114_v2 = vadd.f32 %v4113_v29, %v4112_v38  ;;  %v4177_v40 = vpop.f32.mrb[53].mxu1  ;;  %v4115_v50 = vpop.f32.mrb[54].mxu0 }
 0x166   : > { %v4178_v12 = vadd.f32 %v4177_v40, %v4176_v1  ;;  %v4179_v3 = vpop.f32.mrb[54].mxu1  ;;  %v4116_v6 = vpop.f32.mrb[55].mxu0 }
 0x167   : > { %v1513_v7 = vadd.f32 %v4114_v2, %v5619_v31  ;;  %v4180_v25 = vpop.f32.mrb[55].mxu1 }
 0x169   : > { %v5669_v8 = vadd.f32 %v4178_v12, %v1513_v7 }
 0x16b   : > { %v4118_v16 = vpop.f32.mrb[56].mxu0 }
 0x16c   : > { %v4182_v9 = vpop.f32.mrb[56].mxu1  ;;  %v4119_v5 = vpop.f32.mrb[57].mxu0 }
 0x16d   : > { %v4120_v36 = vadd.f32 %v4119_v5, %v4118_v16  ;;  %v4183_v17 = vpop.f32.mrb[57].mxu1  ;;  %v4121_v44 = vpop.f32.mrb[58].mxu0 }
 0x16e   : > { %v4184_v48 = vadd.f32 %v4183_v17, %v4182_v9  ;;  %v4185_v18 = vpop.f32.mrb[58].mxu1  ;;  %v4122_v19 = vpop.f32.mrb[59].mxu0 }
 0x16f   : > { %v1520_v21 = vadd.f32 %v4120_v36, %v5621_v46  ;;  %v4186_v49 = vpop.f32.mrb[59].mxu1 }
 0x171   : > { %v5672_v27 = vadd.f32 %v4184_v48, %v1520_v21 }
 0x173   : > { %v4124_v34 = vpop.f32.mrb[60].mxu0 }
 0x174   : > { %v4188_v23 = vpop.f32.mrb[60].mxu1  ;;  %v4125_v31 = vpop.f32.mrb[61].mxu0 }
 0x175   : > { %v4126_v11 = vadd.f32 %v4125_v31, %v4124_v34  ;;  %v4189_v51 = vpop.f32.mrb[61].mxu1  ;;  %v4127_v10 = vpop.f32.mrb[62].mxu0 }
 0x176   : > { %v4190_v54 = vadd.f32 %v4189_v51, %v4188_v23  ;;  %v4191_v57 = vpop.f32.mrb[62].mxu1  ;;  %v4128_v13 = vpop.f32.mrb[63].mxu0 }
 0x177   : > { %v1527_v26 = vadd.f32 %v4126_v11, %v5623_v59  ;;  %v4192_v15 = vpop.f32.mrb[63].mxu1 }
 0x179   : > { %v5675_v42 = vadd.f32 %v4190_v54, %v1527_v26 }
 0x17b   : > { %v4210_v22 = vpop.f32.mrb[64].mxu0 }
 0x17c   : > { %v4274_v4 = vpop.f32.mrb[64].mxu1  ;;  %v4211_v46 = vpop.f32.mrb[65].mxu0 }
 0x17d   : > { %v4212_v47 = vadd.f32 %v4211_v46, %v4210_v22  ;;  %v4275_v53 = vpop.f32.mrb[65].mxu1  ;;  %v4213_v35 = vpop.f32.mrb[66].mxu0 }
 0x17e   : > { %v4276_v52 = vadd.f32 %v4275_v53, %v4274_v4  ;;  %v4277_v14 = vpop.f32.mrb[66].mxu1  ;;  %v4214_v56 = vpop.f32.mrb[67].mxu0 }
 0x17f   : > { %v4278_v43 = vpop.f32.mrb[67].mxu1 }
 0x180   : > { %v2194_v60 = vadd.f32 %v4276_v52, %v4212_v47 }
 0x182   : > { %v5678_v28 = vadd.f32 %v2194_v60, %v5654_v41 }
 0x183   : > { %v4216_v61 = vpop.f32.mrb[68].mxu0 }
 0x184   : > { %v4280_v55 = vpop.f32.mrb[68].mxu1  ;;  %v4217_v59 = vpop.f32.mrb[69].mxu0 }
 0x185   : > { %v4218_v62 = vadd.f32 %v4217_v59, %v4216_v61  ;;  %v4281_v63 = vpop.f32.mrb[69].mxu1  ;;  %v4219_v58 = vpop.f32.mrb[70].mxu0 }
 0x186   : > { %v4282_v32 = vadd.f32 %v4281_v63, %v4280_v55  ;;  %v4283_v37 = vpop.f32.mrb[70].mxu1  ;;  %v4220_v0 = vpop.f32.mrb[71].mxu0 }
 0x187   : > { %v4284_v39 = vpop.f32.mrb[71].mxu1 }
 0x188   : > { %v2201_v45 = vadd.f32 %v4282_v32, %v4218_v62 }
 0x18a   : > { %v5681_v38 = vadd.f32 %v2201_v45, %v5657_v24 }
 0x18b   : > { %v4222_v1 = vpop.f32.mrb[72].mxu0 }
 0x18c   : > { %v4286_v29 = vpop.f32.mrb[72].mxu1  ;;  %v4223_v2 = vpop.f32.mrb[73].mxu0 }
 0x18d   : > { %v4224_v40 = vadd.f32 %v4223_v2, %v4222_v1  ;;  %v4287_v41 = vpop.f32.mrb[73].mxu1  ;;  %v4225_v50 = vpop.f32.mrb[74].mxu0 }
 0x18e   : > { %v4288_v12 = vadd.f32 %v4287_v41, %v4286_v29  ;;  %v4289_v3 = vpop.f32.mrb[74].mxu1  ;;  %v4226_v6 = vpop.f32.mrb[75].mxu0 }
 0x18f   : > { %v4290_v7 = vpop.f32.mrb[75].mxu1 }
 0x190   : > { %v2208_v25 = vadd.f32 %v4288_v12, %v4224_v40 }
 0x192   : > { %v5684_v16 = vadd.f32 %v2208_v25, %v5660_v30 }
 0x193   : > { %v4228_v9 = vpop.f32.mrb[76].mxu0 }
 0x194   : > { %v4292_v5 = vpop.f32.mrb[76].mxu1  ;;  %v4229_v36 = vpop.f32.mrb[77].mxu0 }
 0x195   : > { %v4230_v17 = vadd.f32 %v4229_v36, %v4228_v9  ;;  %v4293_v24 = vpop.f32.mrb[77].mxu1  ;;  %v4231_v44 = vpop.f32.mrb[78].mxu0 }
 0x196   : > { %v4294_v48 = vadd.f32 %v4293_v24, %v4292_v5  ;;  %v4295_v18 = vpop.f32.mrb[78].mxu1  ;;  %v4232_v19 = vpop.f32.mrb[79].mxu0 }
 0x197   : > { %v4296_v21 = vpop.f32.mrb[79].mxu1 }
 0x198   : > { %v2215_v49 = vadd.f32 %v4294_v48, %v4230_v17 }
 0x19a   : > { %v5687_v34 = vadd.f32 %v2215_v49, %v5663_v20 }
 0x19b   : > { %v4234_v23 = vpop.f32.mrb[80].mxu0 }
 0x19c   : > { %v4298_v31 = vpop.f32.mrb[80].mxu1  ;;  %v4235_v11 = vpop.f32.mrb[81].mxu0 }
 0x19d   : > { %v4236_v51 = vadd.f32 %v4235_v11, %v4234_v23  ;;  %v4299_v30 = vpop.f32.mrb[81].mxu1  ;;  %v4237_v10 = vpop.f32.mrb[82].mxu0  ;;  %v5704_v23 = vld [vmem:[%s5820_s2] ss:$0 sm:$0xff] }
 0x19e   : > { %v4300_v54 = vadd.f32 %v4299_v30, %v4298_v31  ;;  %v4301_v57 = vpop.f32.mrb[82].mxu1  ;;  %v4238_v13 = vpop.f32.mrb[83].mxu0 }
 0x19f   : > { %v4302_v26 = vpop.f32.mrb[83].mxu1 }
 0x1a0   : > { %v2222_v15 = vadd.f32 %v4300_v54, %v4236_v51 }
 0x1a2   : > { %v5690_v22 = vadd.f32 %v2222_v15, %v5666_v33 }
 0x1a3   : > { %v4240_v4 = vpop.f32.mrb[84].mxu0 }
 0x1a4   : > { %v4304_v46 = vpop.f32.mrb[84].mxu1  ;;  %v4241_v47 = vpop.f32.mrb[85].mxu0 }
 0x1a5   : > { %v4242_v53 = vadd.f32 %v4241_v47, %v4240_v4  ;;  %v4305_v20 = vpop.f32.mrb[85].mxu1  ;;  %v4243_v35 = vpop.f32.mrb[86].mxu0 }
 0x1a6   : > { %v4306_v52 = vadd.f32 %v4305_v20, %v4304_v46  ;;  %v4307_v14 = vpop.f32.mrb[86].mxu1  ;;  %v4244_v56 = vpop.f32.mrb[87].mxu0 }
 0x1a7   : > { %v4308_v43 = vpop.f32.mrb[87].mxu1 }
 0x1a8   : > { %v2229_v60 = vadd.f32 %v4306_v52, %v4242_v53 }
 0x1aa   : > { %v5693_v61 = vadd.f32 %v2229_v60, %v5669_v8 }
 0x1ab   : > { %v4246_v55 = vpop.f32.mrb[88].mxu0 }
 0x1ac   : > { %v4310_v59 = vpop.f32.mrb[88].mxu1  ;;  %v4247_v62 = vpop.f32.mrb[89].mxu0 }
 0x1ad   : > { %v4248_v63 = vadd.f32 %v4247_v62, %v4246_v55  ;;  %v4311_v33 = vpop.f32.mrb[89].mxu1  ;;  %v4249_v58 = vpop.f32.mrb[90].mxu0 }
 0x1ae   : > { %v4312_v32 = vadd.f32 %v4311_v33, %v4310_v59  ;;  %v4313_v37 = vpop.f32.mrb[90].mxu1  ;;  %v4250_v0 = vpop.f32.mrb[91].mxu0 }
 0x1af   : > { %v4314_v39 = vpop.f32.mrb[91].mxu1 }
 0x1b0   : > { %v2236_v45 = vadd.f32 %v4312_v32, %v4248_v63  ;;  %v3896_v39 = vld [vmem:[%s5630_s26 + $0x8] sm:$0xf] }
 0x1b2   : > { %v5696_v1 = vadd.f32 %v2236_v45, %v5672_v27 }
 0x1b3   : > { %v4252_v29 = vpop.f32.mrb[92].mxu0 }
 0x1b4   : > { %v4316_v2 = vpop.f32.mrb[92].mxu1  ;;  %v4253_v40 = vpop.f32.mrb[93].mxu0 }
 0x1b5   : > { %v4254_v41 = vadd.f32 %v4253_v40, %v4252_v29  ;;  %v4317_v8 = vpop.f32.mrb[93].mxu1  ;;  %v4255_v50 = vpop.f32.mrb[94].mxu0  ;;  %v3898_v29 = vld [vmem:[%s5630_s26 + $0xc] sm:$0x1] }
 0x1b6   : > { %v4318_v12 = vadd.f32 %v4317_v8, %v4316_v2  ;;  %v4319_v3 = vpop.f32.mrb[94].mxu1  ;;  %v4256_v6 = vpop.f32.mrb[95].mxu0 }
 0x1b7   : > { %v4320_v7 = vpop.f32.mrb[95].mxu1 }
 0x1b8   : > { %v2243_v25 = vadd.f32 %v4318_v12, %v4254_v41 }
 0x1ba   : > { %v5699_v9 = vadd.f32 %v2243_v25, %v5675_v42  ;;  %v5710_v42 = vld [vmem:[%s5821_s3] ss:$0 sm:$0xff] }
 0x1bb   : > { %v4338_v5 = vpop.f32.mrb[96].mxu0 }
 0x1bc   : > { %v4402_v36 = vpop.f32.mrb[96].mxu1  ;;  %v4339_v17 = vpop.f32.mrb[97].mxu0 }
 0x1bd   : > { %v4340_v24 = vadd.f32 %v4339_v17, %v4338_v5  ;;  %v4403_v27 = vpop.f32.mrb[97].mxu1  ;;  %v4341_v44 = vpop.f32.mrb[98].mxu0 }
 0x1be   : > { %v4404_v48 = vadd.f32 %v4403_v27, %v4402_v36  ;;  %v4405_v18 = vpop.f32.mrb[98].mxu1  ;;  %v4342_v19 = vpop.f32.mrb[99].mxu0 }
 0x1bf   : > { %v4406_v21 = vpop.f32.mrb[99].mxu1 }
 0x1c0   : > { %v3113_v49 = vadd.f32 %v4404_v48, %v4340_v24 }
 0x1c2   : > { %v3167_v31 = vadd.f32 %v3113_v49, %v5678_v28 }
 0x1c3   : > { %v4344_v11 = vpop.f32.mrb[100].mxu0 }
 0x1c4   : > { %v3181_v51 = vmul.f32 %v5704_v23, %v3167_v31  ;;  %v4408_v30 = vpop.f32.mrb[100].mxu1  ;;  %v4345_v10 = vpop.f32.mrb[101].mxu0 }
 0x1c5   : > { %v4346_v54 = vadd.f32 %v4345_v10, %v4344_v11  ;;  %v4409_v57 = vpop.f32.mrb[101].mxu1  ;;  %v4347_v13 = vpop.f32.mrb[102].mxu0  ;;  %v3900_v11 = vld [vmem:[%s5630_s26 + $0x10] sm:$0xf] }
 0x1c6   : > { %v3195_v26 = vadd.f32 %v5710_v42, %v3181_v51  ;;  %v4410_v15 = vadd.f32 %v4409_v57, %v4408_v30  ;;  %v4411_v4 = vpop.f32.mrb[102].mxu1  ;;  %v4348_v46 = vpop.f32.mrb[103].mxu0  ;;  %v3902_v51 = vld [vmem:[%s5630_s26 + $0x14] sm:$0x1] }
 0x1c7   : > { %v4412_v47 = vpop.f32.mrb[103].mxu1 }
 0x1c8   : > { %v3203_v28 = vmax.f32 %v3195_v26, 0.0  ;;  %v3120_v53 = vadd.f32 %v4410_v15, %v4346_v54 }
 0x1ca   : > { %v3930_v20 = vpack.c.bf16 %v3203_v28, %v3203_v28  ;;  %v3168_v35 = vadd.f32 %v3120_v53, %v5681_v38 }
 0x1cb   : > { %v4350_v52 = vpop.f32.mrb[104].mxu0 }
 0x1cc   : > { %v3244_v14 = vshrl.u32 %v3930_v20, 16  ;;  %v3182_v56 = vmul.f32 %v5704_v23, %v3168_v35  ;;  %v4414_v43 = vpop.f32.mrb[104].mxu1  ;;  %v4351_v60 = vpop.f32.mrb[105].mxu0  ;;  %v3247_v33 = vshll.u32 %v3930_v20, 16 }
 0x1cd   : > { %v4352_v55 = vadd.f32 %v4351_v60, %v4350_v52  ;;  %v4415_v59 = vpop.f32.mrb[105].mxu1  ;;  %v4353_v62 = vpop.f32.mrb[106].mxu0 }
 0x1ce   : > { %v3246_v63 = vrot.slane %v3244_v14, 7  ;;  %v3196_v38 = vadd.f32 %v5710_v42, %v3182_v56  ;;  %v4416_v32 = vadd.f32 %v4415_v59, %v4414_v43  ;;  %v4417_v37 = vpop.f32.mrb[106].mxu1  ;;  %v4354_v0 = vpop.f32.mrb[107].mxu0 }
 0x1cf   : > { %v4418_v2 = vpop.f32.mrb[107].mxu1 }
 0x1d0   : > { %v3249_v40 = vor.u32 %v3247_v33, %v3246_v63  ;;  %v3250_v41 = vrot.slane %v3246_v63, 4  ;;  %v3204_v8 = vmax.f32 %v3196_v38, 0.0  ;;  %v3127_v50 = vadd.f32 %v4416_v32, %v4352_v55  ;;  %v3904_v63 = vld [vmem:[%s5630_s26 + $0x18] sm:$0xf]  ;;  %v3906_v33 = vld [vmem:[%s5630_s26 + $0x1c] sm:$0x1] }
 0x1d2   : > { %v3328_v12 = vsel %vm5716_vm5, %v3249_v40, %v3896_v39  ;;  %v3334_v3 = vsel %vm5724_vm6, %v3250_v41, %v3898_v29  ;;  %v3931_v6 = vpack.c.bf16 %v3204_v8, %v3204_v8  ;;  %v3169_v7 = vadd.f32 %v3127_v50, %v5684_v16 }
 0x1d3   : > { %3897 = vst [vmem:[%s5630_s26 + $0x8] sm:$0xf] %v3328_v12  ;;  %3899 = vst [vmem:[%s5630_s26 + $0xc] sm:$0x1] %v3334_v3  ;;  %v4356_v25 = vpop.f32.mrb[108].mxu0 }
 0x1d4   : > { %v3252_v5 = vshrl.u32 %v3931_v6, 16  ;;  %v3183_v36 = vmul.f32 %v5704_v23, %v3169_v7  ;;  %v4420_v17 = vpop.f32.mrb[108].mxu1  ;;  %v4357_v24 = vpop.f32.mrb[109].mxu0  ;;  %v3255_v19 = vshll.u32 %v3931_v6, 16 }
 0x1d5   : > { %v4358_v27 = vadd.f32 %v4357_v24, %v4356_v25  ;;  %v4421_v44 = vpop.f32.mrb[109].mxu1  ;;  %v4359_v48 = vpop.f32.mrb[110].mxu0 }
 0x1d6   : > { %v3254_v18 = vrot.slane %v3252_v5, 7  ;;  %v3197_v21 = vadd.f32 %v5710_v42, %v3183_v36  ;;  %v4422_v16 = vadd.f32 %v4421_v44, %v4420_v17  ;;  %v4423_v49 = vpop.f32.mrb[110].mxu1  ;;  %v4360_v31 = vpop.f32.mrb[111].mxu0  ;;  %v3908_v48 = vld [vmem:[%s5630_s26 + $0x20] sm:$0xf] }
 0x1d7   : > { %v4424_v30 = vpop.f32.mrb[111].mxu1 }
 0x1d8   : > { %v3257_v10 = vor.u32 %v3255_v19, %v3254_v18  ;;  %v3258_v54 = vrot.slane %v3254_v18, 4  ;;  %v3205_v57 = vmax.f32 %v3197_v21, 0.0  ;;  %v3134_v13 = vadd.f32 %v4422_v16, %v4358_v27  ;;  %v3910_v18 = vld [vmem:[%s5630_s26 + $0x24] sm:$0x1] }
 0x1da   : > { %v3337_v26 = vsel %vm5716_vm5, %v3257_v10, %v3900_v11  ;;  %v3340_v15 = vsel %vm5724_vm6, %v3258_v54, %v3902_v51  ;;  %v3932_v4 = vpack.c.bf16 %v3205_v57, %v3205_v57  ;;  %v3170_v46 = vadd.f32 %v3134_v13, %v5687_v34 }
 0x1db   : > { %3901 = vst [vmem:[%s5630_s26 + $0x10] sm:$0xf] %v3337_v26  ;;  %3903 = vst [vmem:[%s5630_s26 + $0x14] sm:$0x1] %v3340_v15  ;;  %v4362_v47 = vpop.f32.mrb[112].mxu0 }
 0x1dc   : > { %v3260_v28 = vshrl.u32 %v3932_v4, 16  ;;  %v3184_v53 = vmul.f32 %v5704_v23, %v3170_v46  ;;  %v4426_v20 = vpop.f32.mrb[112].mxu1  ;;  %v4363_v35 = vpop.f32.mrb[113].mxu0  ;;  %v3263_v60 = vshll.u32 %v3932_v4, 16 }
 0x1dd   : > { %v4364_v52 = vadd.f32 %v4363_v35, %v4362_v47  ;;  %v4427_v14 = vpop.f32.mrb[113].mxu1  ;;  %v4365_v56 = vpop.f32.mrb[114].mxu0 }
 0x1de   : > { %v3262_v43 = vrot.slane %v3260_v28, 7  ;;  %v3198_v55 = vadd.f32 %v5710_v42, %v3184_v53  ;;  %v4428_v34 = vadd.f32 %v4427_v14, %v4426_v20  ;;  %v4429_v59 = vpop.f32.mrb[114].mxu1  ;;  %v4366_v62 = vpop.f32.mrb[115].mxu0  ;;  %v3912_v14 = vld [vmem:[%s5630_s26 + $0x28] sm:$0xf] }
 0x1df   : > { %v4430_v38 = vpop.f32.mrb[115].mxu1  ;;  %v3914_v56 = vld [vmem:[%s5630_s26 + $0x2c] sm:$0x1] }
 0x1e0   : > { %v3265_v32 = vor.u32 %v3263_v60, %v3262_v43  ;;  %v3266_v37 = vrot.slane %v3262_v43, 4  ;;  %v3206_v0 = vmax.f32 %v3198_v55, 0.0  ;;  %v3141_v39 = vadd.f32 %v4428_v34, %v4364_v52 }
 0x1e2   : > { %v3343_v29 = vsel %vm5716_vm5, %v3265_v32, %v3904_v63  ;;  %v3346_v2 = vsel %vm5724_vm6, %v3266_v37, %v3906_v33  ;;  %v3933_v40 = vpack.c.bf16 %v3206_v0, %v3206_v0  ;;  %v3171_v41 = vadd.f32 %v3141_v39, %v5690_v22 }
 0x1e3   : > { %3905 = vst [vmem:[%s5630_s26 + $0x18] sm:$0xf] %v3343_v29  ;;  %3907 = vst [vmem:[%s5630_s26 + $0x1c] sm:$0x1] %v3346_v2  ;;  %v4368_v8 = vpop.f32.mrb[116].mxu0 }
 0x1e4   : > { %v3268_v50 = vshrl.u32 %v3933_v40, 16  ;;  %v3185_v12 = vmul.f32 %v5704_v23, %v3171_v41  ;;  %v4432_v3 = vpop.f32.mrb[116].mxu1  ;;  %v4369_v6 = vpop.f32.mrb[117].mxu0  ;;  %v3271_v17 = vshll.u32 %v3933_v40, 16 }
 0x1e5   : > { %v4370_v7 = vadd.f32 %v4369_v6, %v4368_v8  ;;  %v4433_v25 = vpop.f32.mrb[117].mxu1  ;;  %v4371_v5 = vpop.f32.mrb[118].mxu0 }
 0x1e6   : > { %v3270_v36 = vrot.slane %v3268_v50, 7  ;;  %v3199_v24 = vadd.f32 %v5710_v42, %v3185_v12  ;;  %v4434_v22 = vadd.f32 %v4433_v25, %v4432_v3  ;;  %v4435_v27 = vpop.f32.mrb[118].mxu1  ;;  %v4372_v44 = vpop.f32.mrb[119].mxu0  ;;  %v3918_v25 = vld [vmem:[%s5630_s26 + $0x34] sm:$0x1] }
 0x1e7   : > { %v4436_v19 = vpop.f32.mrb[119].mxu1 }
 0x1e8   : > { %v3273_v21 = vor.u32 %v3271_v17, %v3270_v36  ;;  %v3274_v16 = vrot.slane %v3270_v36, 4  ;;  %v3207_v49 = vmax.f32 %v3199_v24, 0.0  ;;  %v3148_v31 = vadd.f32 %v4434_v22, %v4370_v7  ;;  %v3916_v7 = vld [vmem:[%s5630_s26 + $0x30] sm:$0xf] }
 0x1ea   : > { %v3349_v11 = vsel %vm5716_vm5, %v3273_v21, %v3908_v48  ;;  %v3352_v51 = vsel %vm5724_vm6, %v3274_v16, %v3910_v18  ;;  %v3934_v30 = vpack.c.bf16 %v3207_v49, %v3207_v49  ;;  %v3172_v10 = vadd.f32 %v3148_v31, %v5693_v61 }
 0x1eb   : > { %3909 = vst [vmem:[%s5630_s26 + $0x20] sm:$0xf] %v3349_v11  ;;  %3911 = vst [vmem:[%s5630_s26 + $0x24] sm:$0x1] %v3352_v51  ;;  %v4374_v54 = vpop.f32.mrb[120].mxu0 }
 0x1ec   : > { %v3276_v57 = vshrl.u32 %v3934_v30, 16  ;;  %v3186_v13 = vmul.f32 %v5704_v23, %v3172_v10  ;;  %v4438_v26 = vpop.f32.mrb[120].mxu1  ;;  %v4375_v15 = vpop.f32.mrb[121].mxu0  ;;  %v3279_v53 = vshll.u32 %v3934_v30, 16  ;;  %v3920_v11 = vld [vmem:[%s5630_s26 + $0x38] sm:$0xf] }
 0x1ed   : > { %v4376_v4 = vadd.f32 %v4375_v15, %v4374_v54  ;;  %v4439_v46 = vpop.f32.mrb[121].mxu1  ;;  %v4377_v47 = vpop.f32.mrb[122].mxu0  ;;  %v3922_v51 = vld [vmem:[%s5630_s26 + $0x3c] sm:$0x1] }
 0x1ee   : > { %v3278_v28 = vrot.slane %v3276_v57, 7  ;;  %v3200_v20 = vadd.f32 %v5710_v42, %v3186_v13  ;;  %v4440_v61 = vadd.f32 %v4439_v46, %v4438_v26  ;;  %v4441_v35 = vpop.f32.mrb[122].mxu1  ;;  %v4378_v52 = vpop.f32.mrb[123].mxu0 }
 0x1ef   : > { %v4442_v43 = vpop.f32.mrb[123].mxu1 }
 0x1f0   : > { %v3281_v60 = vor.u32 %v3279_v53, %v3278_v28  ;;  %v3282_v55 = vrot.slane %v3278_v28, 4  ;;  %v3208_v34 = vmax.f32 %v3200_v20, 0.0  ;;  %v3155_v59 = vadd.f32 %v4440_v61, %v4376_v4  ;;  %v3926_v4 = vld [vmem:[%s5630_s26 + $0x44] sm:$0x1] }
 0x1f2   : > { %v3355_v62 = vsel %vm5716_vm5, %v3281_v60, %v3912_v14  ;;  %v3358_v63 = vsel %vm5724_vm6, %v3282_v55, %v3914_v56  ;;  %v3935_v33 = vpack.c.bf16 %v3208_v34, %v3208_v34  ;;  %v3173_v38 = vadd.f32 %v3155_v59, %v5696_v1 }
 0x1f3   : > { %3913 = vst [vmem:[%s5630_s26 + $0x28] sm:$0xf] %v3355_v62  ;;  %3915 = vst [vmem:[%s5630_s26 + $0x2c] sm:$0x1] %v3358_v63  ;;  %v4380_v32 = vpop.f32.mrb[124].mxu0 }
 0x1f4   : > { %v3284_v37 = vshrl.u32 %v3935_v33, 16  ;;  %v3187_v0 = vmul.f32 %v5704_v23, %v3173_v38  ;;  %v4444_v39 = vpop.f32.mrb[124].mxu1  ;;  %v4381_v29 = vpop.f32.mrb[125].mxu0  ;;  %v3287_v50 = vshll.u32 %v3935_v33, 16 }
 0x1f5   : > { %v4382_v2 = vadd.f32 %v4381_v29, %v4380_v32  ;;  %v4445_v40 = vpop.f32.mrb[125].mxu1  ;;  %v4383_v41 = vpop.f32.mrb[126].mxu0 }
 0x1f6   : > { %v3286_v8 = vrot.slane %v3284_v37, 7  ;;  %v3201_v12 = vadd.f32 %v5710_v42, %v3187_v0  ;;  %v4446_v1 = vadd.f32 %v4445_v40, %v4444_v39  ;;  %v4447_v3 = vpop.f32.mrb[126].mxu1  ;;  %v4384_v6 = vpop.f32.mrb[127].mxu0 }
 0x1f7   : > { %v4448_v5 = vpop.f32.mrb[127].mxu1 }
 0x1f8   : > { %v3289_v36 = vor.u32 %v3287_v50, %v3286_v8  ;;  %v3290_v17 = vrot.slane %v3286_v8, 4  ;;  %v3209_v24 = vmax.f32 %v3201_v12, 0.0  ;;  %v3162_v22 = vadd.f32 %v4446_v1, %v4382_v2 }
 0x1fa   : > { %v3361_v27 = vsel %vm5716_vm5, %v3289_v36, %v3916_v7  ;;  %v3364_v44 = vsel %vm5724_vm6, %v3290_v17, %v3918_v25  ;;  %v3936_v48 = vpack.c.bf16 %v3209_v24, %v3209_v24  ;;  %v3174_v18 = vadd.f32 %v3162_v22, %v5699_v9 }
 0x1fb   : > { %3917 = vst [vmem:[%s5630_s26 + $0x30] sm:$0xf] %v3361_v27  ;;  %3919 = vst [vmem:[%s5630_s26 + $0x34] sm:$0x1] %v3364_v44 }
 0x1fc   : > { %v3292_v19 = vshrl.u32 %v3936_v48, 16  ;;  %v3188_v21 = vmul.f32 %v5704_v23, %v3174_v18  ;;  %v3295_v49 = vshll.u32 %v3936_v48, 16 }
 0x1fe   : > { %v3294_v16 = vrot.slane %v3292_v19, 7  ;;  %v3202_v31 = vadd.f32 %v5710_v42, %v3188_v21  ;;  %v3924_v42 = vld [vmem:[%s5630_s26 + $0x40] sm:$0xf] }
 0x200   : > { %v3297_v30 = vor.u32 %v3295_v49, %v3294_v16  ;;  %v3298_v10 = vrot.slane %v3294_v16, 4  ;;  %v3210_v54 = vmax.f32 %v3202_v31, 0.0 }
 0x202   : > { %v3367_v9 = vsel %vm5716_vm5, %v3297_v30, %v3920_v11  ;;  %v3370_v57 = vsel %vm5724_vm6, %v3298_v10, %v3922_v51  ;;  %v3937_v23 = vpack.c.bf16 %v3210_v54, %v3210_v54 }
 0x203   : > { %3921 = vst [vmem:[%s5630_s26 + $0x38] sm:$0xf] %v3367_v9  ;;  %3923 = vst [vmem:[%s5630_s26 + $0x3c] sm:$0x1] %v3370_v57 }
 0x204   : > { %v3300_v13 = vshrl.u32 %v3937_v23, 16  ;;  %v3303_v15 = vshll.u32 %v3937_v23, 16 }
 0x206   : > { %v3302_v26 = vrot.slane %v3300_v13, 7 }
 0x208   : > { %v3305_v46 = vor.u32 %v3303_v15, %v3302_v26  ;;  %v3306_v47 = vrot.slane %v3302_v26, 4 }
 0x20a   : > { %v3373_v28 = vsel %vm5716_vm5, %v3305_v46, %v3924_v42  ;;  %v3376_v53 = vsel %vm5724_vm6, %v3306_v47, %v3926_v4 }
 0x20b   : > { %3925 = vst [vmem:[%s5630_s26 + $0x40] sm:$0xf] %v3373_v28  ;;  %3927 = vst [vmem:[%s5630_s26 + $0x44] sm:$0x1] %v3376_v53 }
 0x20c PF: > { %s14_s17 = sadd.s32 1, %s4743_s17   ;;  %s5827_s15 = smov %s4739_s16 }
 0x20d   : > { %p11_p5 = scmp.ge.s32.totalorder %s14_s17, 4   ;;  %s5828_s16 = smov %s5830_s18 }
 0x20f   :  { %13 = sbr.rel (!%p11_p5) target bundleno = 2 (0x2), region = 70 }

// kernel: _lambda_.7
= control target key start
LH: loop header
LB: loop body
LE: loop exit
PB: predicated region body
PF: predicated region fallthrough
CT: control target
= control target key end

     0   :  { %s3848_s18 = smov 0   ;;  %s3850_s19 = smov 0   ;;  %s4548_s0 = inlined_call_operand.vmem [shape: bf16[2,176,128], index: 0, kind: input, shape index: {}]   ;;  %s4549_s1 = inlined_call_operand.vmem [shape: bf16[9,128,128], index: 1, kind: input, shape index: {}]   ;;  %s4550_s2 = inlined_call_operand.vmem [shape: f32[1,128], index: 2, kind: input, shape index: {}]   ;;  %s4551_s3 = inlined_call_operand.vmem [shape: f32[1,128], index: 3, kind: input, shape index: {}]   ;;  %s4552_s4 = inlined_call_operand.vmem [shape: bf16[2,11,16,128], index: 4, kind: input, shape index: {}]   ;;  %s4553_s5 = inlined_call_operand.vmem [shape: bf16[2,11,16,128], index: 5, kind: output, shape index: {}]  }
   0x1   :  { %s3852_s20 = smov 0  }
   0x2 LB: > { %s27_s21 = sadd.s32 1, %s3811_s19  ;;  %p2767_p0 = scmp.ge.s32.totalorder %s3815_s20, 1  ;;  %s3815_s20 = sphi %s3852_s20, %s15_s20   ;;  %s3811_s19 = sphi %s3850_s19, %s4559_s19   ;;  %s3807_s18 = sphi %s3848_s18, %s4558_s18  }
   0x3   : > { %p29_p1 = scmp.ge.s32.totalorder %s27_s21, 2  ;;  %p216_p2 = scmp.lt.s32.totalorder %s3815_s20, 3 }
   0x5   : > { %s4561_s21 = smov (%p29_p1, %s27_s21), 0  ;;  %p217_p3 = pnand %p2767_p0, %p216_p2 }
   0x6   : > { %v3675_v0 = vld [vmem:[%s4549_s1 + $0x40] sm:$0xff] (!%p217_p3)   ;;  %p255_p4 = scmp.lt.s32.totalorder (!%p217_p3), %s3807_s18, 1  ;;  %v3677_v2 = vld [vmem:[%s4549_s1 + $0x48] sm:$0xff] (!%p217_p3)   ;;  %v3679_v4 = vld [vmem:[%s4549_s1 + $0x50] sm:$0xff] (!%p217_p3)   ;;  %vm394_vm0 = vsmask.f32 (!%p217_p3), 7424 }
   0x7   : > { %220 = sbr.rel (%p217_p3) target bundleno = 417 (0x1a1), region = 40  ;;  %v3676_v1 = vld [vmem:[%s4549_s1 + $0x100] sm:$0xff] (!%p217_p3)   ;;  %3229 = vmatprep.subr.bf16.mxu1 (!%p217_p3), %v3675_v0  ;;  %v3678_v3 = vld [vmem:[%s4549_s1 + $0x108] sm:$0xff] (!%p217_p3)   ;;  %v3680_v5 = vld [vmem:[%s4549_s1 + $0x110] sm:$0xff] (!%p217_p3)   ;;  %vm774_vm1 = vcmask (!%p217_p3), 1046528   ;;  %vm2614_vm2 = vcmask (!%p217_p3), 1043456  }
   0x8   : > { %3357 = vmatprep.subr.bf16.mxu0 (!%p217_p3), %v3676_v1  ;;  %3230 = vmatpush3.bf16.msra.mxu1 (!%p217_p3), %v3675_v0  ;;  %v3681_v6 = vld [vmem:[%s4549_s1 + $0x58] sm:$0xff] (!%p217_p3)   ;;  %v3683_v8 = vld [vmem:[%s4549_s1 + $0x60] sm:$0xff] (!%p217_p3)   ;;  %v3685_v10 = vld [vmem:[%s4549_s1 + $0x68] sm:$0xff] (!%p217_p3)   ;;  %vm2615_vm3 = vsmask.f32 (!%p217_p3), 7938  ;;  %vm2620_vm4 = vcmask (!%p217_p3), 1040384  }
   0x9   : > { %3358 = vmatpush3.bf16.msra.mxu0 (!%p217_p3), %v3676_v1  ;;  %3231 = vmatprep.subr.bf16.mxu1 (!%p217_p3), %v3677_v2  ;;  %v3682_v7 = vld [vmem:[%s4549_s1 + $0x118] sm:$0xff] (!%p217_p3)   ;;  %v3684_v9 = vld [vmem:[%s4549_s1 + $0x120] sm:$0xff] (!%p217_p3)   ;;  %v3686_v11 = vld [vmem:[%s4549_s1 + $0x128] sm:$0xff] (!%p217_p3)   ;;  %vm2621_vm5 = vsmask.f32 (!%p217_p3), 256 }
   0xa   : > { %3359 = vmatprep.subr.bf16.mxu0 (!%p217_p3), %v3678_v3  ;;  %v3687_v17 = vld [vmem:[%s4549_s1 + $0x70] sm:$0xff] (!%p217_p3)   ;;  %v3689_v31 = vld [vmem:[%s4549_s1 + $0x78] sm:$0xff] (!%p217_p3)   ;;  %v3696_v44 = vld [vmem:[%s4549_s1] sm:$0xff] (!%p217_p3)  }
   0xb   : > { %v3688_v25 = vld [vmem:[%s4549_s1 + $0x130] sm:$0xff] (!%p217_p3)   ;;  %v3690_v40 = vld [vmem:[%s4549_s1 + $0x138] sm:$0xff] (!%p217_p3)   ;;  %v3698_v48 = vld [vmem:[%s4549_s1 + $0x140] sm:$0xff] (!%p217_p3)  }
   0xc   : > { %3232 = vmatpush3.bf16.msra.mxu1 (!%p217_p3), %v3677_v2  ;;  %v3699_v54 = vld [vmem:[%s4549_s1 + $0x8] sm:$0xff] (!%p217_p3)   ;;  %vm4458_vm6 = vmand (!%p217_p3), %vm2614_vm2, %vm2615_vm3 }
   0xd   : > { %3360 = vmatpush3.bf16.msra.mxu0 (!%p217_p3), %v3678_v3  ;;  %3233 = vmatprep.subr.bf16.mxu1 (!%p217_p3), %v3679_v4  ;;  %v3700_v0 = vld [vmem:[%s4549_s1 + $0x148] sm:$0xff] (!%p217_p3)   ;;  %vm4467_vm7 = vmand (!%p217_p3), %vm2620_vm4, %vm2621_vm5 }
   0xe   : > { %s4563_s18 = smov (!%p255_p4, %s3807_s18), 1  ;;  %3361 = vmatprep.subr.bf16.mxu0 %v3680_v5 }
   0xf   : > { %s3890_s13 = smul.u32 88, %s4563_s18 }
  0x10   : > { %3234 = vmatpush3.bf16.msra.mxu1 %v3679_v4 }
  0x11   : > { %3362 = vmatpush3.bf16.msra.mxu0 %v3680_v5  ;;  %3235 = vmatprep.subr.bf16.mxu1 %v3681_v6  ;;  %s3902_s24 = scalar_lea.vmem %s4548_s0, %s3890_s13  ;;  %s4353_s29 = scalar_lea.vmem %s4553_s5, %s3890_s13 }
  0x12   : > { %3363 = vmatprep.subr.bf16.mxu0 %v3682_v7  ;;  %v301_v12 = vld [vmem:[%s3902_s24] sm:$0xf]  ;;  %v3912_v13 = vld [vmem:[%s3902_s24 + $0x4] sm:$0xf]  ;;  %v3918_v15 = vld [vmem:[%s3902_s24 + $0x8] sm:$0xff]   ;;  %s4389_s7 = scalar_lea.vmem %s4552_s4, %s3890_s13 }
  0x13   : > { %v3915_v14 = vcombine.low %v301_v12, %v3912_v13  ;;  %v3921_v16 = vld [vmem:[%s3902_s24 + $0x10] sm:$0xff]   ;;  %v1171_v18 = vld [vmem:[%s3902_s24 + $0x8] sm:$0xf]  ;;  %v3928_v19 = vld [vmem:[%s3902_s24 + $0xc] sm:$0xf]  ;;  %v403_v22 = vshll.u32 %v3918_v15, 16 }
  0x14   : > { %3236 = vmatpush3.bf16.msra.mxu1 %v3681_v6  ;;  %v2885_v23 = vcombine.low %v1171_v18, %v3928_v19  ;;  %v3935_v24 = vld [vmem:[%s3902_s24 + $0x10] sm:$0xff]   ;;  %v1256_v26 = vshll.u32 %v3921_v16, 16  ;;  %v407_v32 = vshrl.u32 %v3918_v15, 16  ;;  %v3947_v34 = vld [vmem:[%s3902_s24 + $0x18] sm:$0xff]   ;;  %v1260_v38 = vshrl.u32 %v3921_v16, 16  ;;  %v3968_v53 = vld [vmem:[%s3902_s24 + $0x20] sm:$0xff]  }
  0x15   : > { %3364 = vmatpush3.bf16.msra.mxu0 %v3682_v7  ;;  %3237 = vmatprep.subr.bf16.mxu1 %v3683_v8  ;;  %v396_v20 = vshrl.u32 %v3915_v14, 16  ;;  %v398_v21 = vshll.u32 %v3915_v14, 16  ;;  %v405_v28 = vrot.slane %v403_v22, 1  ;;  %v411_v33 = vshll.u32 %v3935_v24, 16  ;;  %v3965_v52 = vld [vmem:[%s3902_s24 + $0x18] sm:$0xff]   ;;  %v3975_v57 = vld [vmem:[%s3902_s24 + $0x20] sm:$0xff]  }
  0x16   : > { %3365 = vmatprep.subr.bf16.mxu0 %v3684_v9  ;;  %v1249_v29 = vshrl.u32 %v2885_v23, 16  ;;  %v1251_v30 = vshll.u32 %v2885_v23, 16  ;;  %v1258_v37 = vrot.slane %v1256_v26, 1  ;;  %v1264_v39 = vshll.u32 %v3947_v34, 16  ;;  %v3981_v62 = vld [vmem:[%s3902_s24 + $0x28] sm:$0xff]   ;;  %v3704_v7 = vld [vmem:[%s4549_s1 + $0x10] sm:$0xff]  }
  0x17   : > { %v400_v27 = vrot.slane %v398_v21, 1  ;;  %v413_v43 = vrot.slane %v411_v33, 1  ;;  %v415_v45 = vshrl.u32 %v3935_v24, 16  ;;  %v409_v47 = vor.u32 %v407_v32, %v405_v28  ;;  %v3706_v12 = vld [vmem:[%s4549_s1 + $0x150] sm:$0xff]   ;;  %v3999_v18 = vld [vmem:[%s3902_s24 + $0x28] sm:$0xff]   ;;  %v3707_v23 = vld [vmem:[%s4549_s1 + $0x18] sm:$0xff]  }
  0x18   : > { %3238 = vmatpush3.bf16.msra.mxu1 %v3683_v8  ;;  %v1253_v36 = vrot.slane %v1251_v30, 1  ;;  %v1268_v49 = vshrl.u32 %v3947_v34, 16  ;;  %v1262_v50 = vor.u32 %v1260_v38, %v1258_v37  ;;  %v1266_v51 = vrot.slane %v1264_v39, 1  ;;  %v4003_v21 = vld [vmem:[%s3902_s24 + $0x30] sm:$0xff]   ;;  %v3708_v33 = vld [vmem:[%s4549_s1 + $0x158] sm:$0xff]  }
  0x19   : > { %3366 = vmatpush3.bf16.msra.mxu0 %v3684_v9  ;;  %3239 = vmatprep.subr.bf16.mxu1 %v3685_v10  ;;  %v401_v35 = vor.u32 %v400_v27, %v396_v20  ;;  %v417_v55 = vor.u32 %v415_v45, %v413_v43  ;;  %v419_v56 = vshll.u32 %v3965_v52, 16  ;;  %v423_v58 = vshrl.u32 %v3965_v52, 16  ;;  %v4011_v27 = vld [vmem:[%s3902_s24 + $0x30] sm:$0xff]  }
  0x1a   : > { %3367 = vmatprep.subr.bf16.mxu0 %v3686_v11  ;;  %v1254_v42 = vor.u32 %v1253_v36, %v1249_v29  ;;  %v414_v59 = vsel %vm394_vm0, %v409_v47, %v413_v43  ;;  %v1270_v60 = vor.u32 %v1268_v49, %v1266_v51  ;;  %v1272_v61 = vshll.u32 %v3968_v53, 16  ;;  %v4035_v49 = vld [vmem:[%s3902_s24 + $0x38] sm:$0xff]  }
  0x1b   : > { %v406_v41 = vsel %vm394_vm0, %v401_v35, %v405_v28  ;;  %v1267_v63 = vsel %vm394_vm0, %v1262_v50, %v1266_v51  ;;  %v421_v1 = vrot.slane %v419_v56, 1  ;;  %v427_v2 = vshll.u32 %v3975_v57, 16  ;;  %v3715_v51 = vld [vmem:[%s4549_s1 + $0x28] sm:$0xff]  }
  0x1c   : > { %3240 = vmatpush3.bf16.msra.mxu1 %v3685_v10  ;;  %3245 = vmatprep.mubr.bf16.mxu1 %v406_v41  ;;  %v1259_v46 = vsel %vm394_vm0, %v1254_v42, %v1258_v37  ;;  %v1276_v3 = vshrl.u32 %v3968_v53, 16  ;;  %v1274_v4 = vrot.slane %v1272_v61, 1  ;;  %v1280_v5 = vshll.u32 %v3981_v62, 16  ;;  %v4022_v37 = vld [vmem:[%s3902_s24 + $0x38] sm:$0xff]   ;;  %v3712_v42 = vld [vmem:[%s4549_s1 + $0x20] sm:$0xff]  }
  0x1d   : > { %3368 = vmatpush3.bf16.msra.mxu0 %v3686_v11  ;;  %3241 = vmatprep.subr.bf16.mxu1 %v3687_v17  ;;  %v422_v6 = vsel %vm394_vm0, %v417_v55, %v421_v1  ;;  %v425_v9 = vor.u32 %v423_v58, %v421_v1  ;;  %v429_v10 = vrot.slane %v427_v2, 1  ;;  %v431_v20 = vshrl.u32 %v3975_v57, 16  ;;  %v3716_v58 = vld [vmem:[%s4549_s1 + $0x168] sm:$0xff]   ;;  %v4051_v61 = vld [vmem:[%s3902_s24 + $0x40] ss:$0 sps:$4 sm:$0x11]  }
  0x1e   : > { %3369 = vmatprep.subr.bf16.mxu0 %v3688_v25  ;;  %3373 = vmatprep.mubr.bf16.mxu0 %v1259_v46  ;;  %v1275_v8 = vsel %vm394_vm0, %v1270_v60, %v1274_v4  ;;  %v1282_v11 = vrot.slane %v1280_v5, 1  ;;  %v1284_v22 = vshrl.u32 %v3981_v62, 16  ;;  %v435_v26 = vshll.u32 %v3999_v18, 16 }
  0x1f   : > { %v430_v28 = vsel %vm394_vm0, %v425_v9, %v429_v10  ;;  %v1288_v30 = vshll.u32 %v4003_v21, 16  ;;  %v443_v36 = vshll.u32 %v4011_v27, 16  ;;  %v1292_v39 = vshrl.u32 %v4003_v21, 16 }
  0x20   : > { %3242 = vmatpush3.bf16.msra.mxu1 %v3687_v17  ;;  %v1278_v17 = vor.u32 %v1276_v3, %v1274_v4  ;;  %v1286_v29 = vor.u32 %v1284_v22, %v1282_v11  ;;  %v437_v35 = vrot.slane %v435_v26, 1  ;;  %v1296_v43 = vshll.u32 %v4022_v37, 16  ;;  %v3722_v22 = vld [vmem:[%s4549_s1 + $0x170] sm:$0xff]  }
  0x21   : > { %3370 = vmatpush3.bf16.msra.mxu0 %v3688_v25  ;;  %3243 = vmatprep.subr.bf16.mxu1 %v3689_v31  ;;  %v433_v25 = vor.u32 %v431_v20, %v429_v10  ;;  %v1290_v38 = vrot.slane %v1288_v30, 1  ;;  %v445_v41 = vrot.slane %v443_v36, 1  ;;  %v447_v50 = vshrl.u32 %v4011_v27, 16  ;;  %v3727_v36 = vld [vmem:[%s4549_s1 + $0x180] sm:$0xff]  }
  0x22   : > { %3371 = vmatprep.subr.bf16.mxu0 %v3690_v40  ;;  %v1283_v32 = vsel %vm394_vm0, %v1278_v17, %v1282_v11  ;;  %v1298_v47 = vrot.slane %v1296_v43, 1  ;;  %v1300_v55 = vshrl.u32 %v4022_v37, 16  ;;  %v451_v60 = vshll.u32 %v4035_v49, 16 }
  0x23   : > { %v1294_v46 = vor.u32 %v1292_v39, %v1290_v38  ;;  %v459_v5 = vshll.u32 %v4051_v61, 16  ;;  %v778_v39 = vrot.slane %v3935_v24, 1  ;;  %v782_v43 = vrot.slane %v3975_v57, 1 }
  0x24   : > { %3244 = vmatpush3.bf16.msra.mxu1 %v3689_v31  ;;  %v439_v31 = vshrl.u32 %v3999_v18, 16  ;;  %v1302_v1 = vor.u32 %v1300_v55, %v1298_v47  ;;  %v453_v4 = vrot.slane %v451_v60, 1  ;;  %v788_v55 = vrot.slane %v4035_v49, 1 }
  0x25   : > { %3372 = vmatpush3.bf16.msra.mxu0 %v3690_v40  ;;  %3261 = vmatprep.subr.bf16.mxu1 %v3696_v44  ;;  %v438_v40 = vsel %vm394_vm0, %v433_v25, %v437_v35  ;;  %v461_v10 = vrot.slane %v459_v5, 1  ;;  %v1501_v5 = vrot.slane %v4022_v37, 1 }
  0x26   : > { %3389 = vmatprep.subr.bf16.mxu0 %v3698_v48  ;;  %v441_v45 = vor.u32 %v439_v31, %v437_v35  ;;  %v3723_v31 = vld [vmem:[%s4549_s1 + $0x38] sm:$0xff]   ;;  %v1493_v35 = vrot.slane %v3947_v34, 1 }
  0x27   : > { %3246 = vmatmul.mubr.bf16.vlgmr.msra.gmra.mrb[0].mxu1 %v414_v59  ;;  %v449_v59 = vor.u32 %v447_v50, %v445_v41  ;;  %v1497_v50 = vrot.slane %v3981_v62, 1  ;;  %v3731_v62 = vld [vmem:[%s4549_s1 + $0x190] sm:$0xff]  }
  0x28   : > { %3374 = vmatmul.mubr.bf16.vlgmr.msra.gmra.mrb[0].mxu0 %v1267_v63  ;;  %3262 = vmatpush3.bf16.msra.mxu1 %v3696_v44  ;;  %v1291_v44 = vsel %vm394_vm0, %v1286_v29, %v1290_v38  ;;  %v446_v56 = vsel %vm394_vm0, %v441_v45, %v445_v41  ;;  %v455_v63 = vshrl.u32 %v4035_v49, 16  ;;  %v1491_v29 = vrot.slane %v3921_v16, 1  ;;  %v3726_v16 = vld [vmem:[%s4549_s1 + $0x80] sm:$0xff]  }
  0x29   : > { %3390 = vmatpush3.bf16.msra.mxu0 %v3698_v48  ;;  %3263 = vmatprep.subr.bf16.mxu1 %v3699_v54  ;;  %v3714_v48 = vld [vmem:[%s4549_s1 + $0x160] sm:$0xff]   ;;  %v776_v38 = vrot.slane %v3918_v15, 1  ;;  %v780_v41 = vrot.slane %v3965_v52, 1  ;;  %v784_v45 = vrot.slane %v3999_v18, 1 }
  0x2a   : > { %3391 = vmatprep.subr.bf16.mxu0 %v3700_v0  ;;  %3249 = vmatprep.mubr.bf16.mxu1 %v422_v6  ;;  %v457_v9 = vor.u32 %v455_v63, %v453_v4  ;;  %v1494_v34 = vsel %vm774_vm1, %v1491_v29, %v1493_v35 }
  0x2b   : > { %3377 = vmatprep.mubr.bf16.mxu0 %v1275_v8  ;;  %v454_v8 = vsel %vm394_vm0, %v449_v59, %v453_v4  ;;  %v753_v59 = vld [vmem:[%s3902_s24] sm:$0xe] }
  0x2c   : > { %3264 = vmatpush3.bf16.msra.mxu1 %v3699_v54  ;;  %v4042_v54 = vld [vmem:[%s3902_s24 + $0x40] sm:$0xff]   ;;  %v2828_v63 = vcombine.low %v753_v59, %v3912_v13  ;;  %v3733_v13 = vld [vmem:[%s4549_s1 + $0x198] sm:$0xff]  }
  0x2d   : > { %3392 = vmatpush3.bf16.msra.mxu0 %v3700_v0  ;;  %3265 = vmatprep.subr.bf16.mxu1 %v3704_v7  ;;  %v1299_v0 = vsel %vm394_vm0, %v1294_v46, %v1298_v47  ;;  %v1304_v2 = vshll.u32 %v4042_v54, 16  ;;  %v1308_v3 = vshrl.u32 %v4042_v54, 16  ;;  %v4111_v46 = vsel %vm774_vm1, %v780_v41, %v782_v43  ;;  %v3734_v4 = vld [vmem:[%s4549_s1 + $0xa0] sm:$0xff]  }
  0x2e   : > { %3393 = vmatprep.subr.bf16.mxu0 %v3706_v12  ;;  %v786_v47 = vrot.slane %v4011_v27, 1 }
  0x2f   : > { %3250 = vmatmul.mubr.bf16.gmra.mrb[4].mxu1 %v430_v28  ;;  %v1306_v6 = vrot.slane %v1304_v2, 1  ;;  %v462_v28 = vsel %vm394_vm0, %v457_v9, %v461_v10  ;;  %v775_v2 = vrot.slane %v2828_v63, 1  ;;  %v3736_v9 = vld [vmem:[%s4549_s1 + $0xa8] sm:$0xff]  }
  0x30   : > { %3378 = vmatmul.mubr.bf16.gmra.mrb[4].mxu0 %v1283_v32  ;;  %3266 = vmatpush3.bf16.msra.mxu1 %v3704_v7  ;;  %v4059_v7 = vld [vmem:[%s3902_s24 + $0x48] ss:$0 sps:$4 sm:$0x11]   ;;  %v4133_v60 = vsel %vm774_vm1, %v786_v47, %v788_v55 }
  0x31   : > { %3394 = vmatpush3.bf16.msra.mxu0 %v3706_v12  ;;  %3267 = vmatprep.subr.bf16.mxu1 %v3707_v23  ;;  %v1307_v11 = vsel %vm394_vm0, %v1302_v1, %v1306_v6  ;;  %v3720_v12 = vld [vmem:[%s4549_s1 + $0x30] sm:$0xff]   ;;  %v1310_v17 = vor.u32 %v1308_v3, %v1306_v6  ;;  %v1312_v20 = vshll.u32 %v4059_v7, 16  ;;  %v3732_v1 = vld [vmem:[%s4549_s1 + $0x98] sm:$0xff]   ;;  %v777_v3 = vsel %vm774_vm1, %v775_v2, %v776_v38 }
  0x32   : > { %3395 = vmatprep.subr.bf16.mxu0 %v3708_v33  ;;  %3253 = vmatprep.mubr.bf16.mxu1 %v438_v40  ;;  %v1495_v40 = vrot.slane %v3968_v53, 1  ;;  %v3729_v53 = vld [vmem:[%s4549_s1 + $0x188] sm:$0xff]   ;;  %v1503_v6 = vrot.slane %v4042_v54, 1  ;;  %v3738_v54 = vld [vmem:[%s4549_s1 + $0xb0] sm:$0xff]   ;;  %v1505_v10 = vrot.slane %v4059_v7, 1 }
  0x33   : > { %3381 = vmatprep.mubr.bf16.mxu0 %v1291_v44  ;;  %v1314_v25 = vrot.slane %v1312_v20, 1  ;;  %v4106_v44 = vsel %vm774_vm1, %v778_v39, %v780_v41  ;;  %v3743_v7 = vld [vmem:[%s3902_s24 + $0x10] sm:$0xff]   ;;  %v3746_v20 = vld [vmem:[%s4549_s1 + $0x1c0] sm:$0xff]  }
  0x34   : > { %3268 = vmatpush3.bf16.msra.mxu1 %v3707_v23  ;;  %v1469_v23 = vld [vmem:[%s3902_s24 + $0x8] sm:$0xe]  ;;  %v1504_v37 = vsel %vm774_vm1, %v1501_v5, %v1503_v6  ;;  %v4272_v2 = vld [vmem:[%s3902_s24 + $0x30] sm:$0xff]  }
  0x35   : > { %3396 = vmatpush3.bf16.msra.mxu0 %v3708_v33  ;;  %3269 = vmatprep.subr.bf16.mxu1 %v3712_v42  ;;  %v2918_v26 = vcombine.low %v1469_v23, %v3928_v19  ;;  %v1315_v30 = vsel %vm394_vm0, %v1310_v17, %v1314_v25  ;;  %v3724_v19 = vld [vmem:[%s4549_s1 + $0x178] sm:$0xff]   ;;  %v3744_v17 = vld [vmem:[%s4549_s1 + $0xc0] sm:$0xff]   ;;  %v3748_v23 = vld [vmem:[%s4549_s1 + $0x1c8] sm:$0xff]  }
  0x36   : > { %3397 = vmatprep.subr.bf16.mxu0 %v3714_v48  ;;  %v3749_v25 = vld [vmem:[%s3902_s24 + $0x20] sm:$0xff]  }
  0x37   : > { %3254 = vmatmul.mubr.bf16.gmra.mrb[8].mxu1 %v446_v56  ;;  %v1490_v32 = vrot.slane %v2918_v26, 1  ;;  %v4124_v56 = vsel %vm774_vm1, %v784_v45, %v786_v47  ;;  %v3750_v26 = vld [vmem:[%s4549_s1 + $0xd0] sm:$0xff]   ;;  %v3763_v47 = vld [vmem:[%s3902_s24 + $0x48] sm:$0xff]  }
  0x38   : > { %3382 = vmatmul.mubr.bf16.gmra.mrb[8].mxu0 %v1299_v0  ;;  %3270 = vmatpush3.bf16.msra.mxu1 %v3712_v42  ;;  %v4099_v42 = vsel %vm774_vm1, %v776_v38, %v778_v39  ;;  %v3758_v38 = vld [vmem:[%s4549_s1 + $0x1e0] sm:$0xff]   ;;  %v3759_v39 = vld [vmem:[%s4549_s1 + $0xe8] sm:$0xff]  }
  0x39   : > { %3398 = vmatpush3.bf16.msra.mxu0 %v3714_v48  ;;  %3271 = vmatprep.subr.bf16.mxu1 %v3715_v51  ;;  %v1492_v33 = vsel %vm774_vm1, %v1490_v32, %v1491_v29  ;;  %v1496_v48 = vsel %vm774_vm1, %v1493_v35, %v1495_v40  ;;  %v3752_v29 = vld [vmem:[%s4549_s1 + $0x1d0] sm:$0xff]  }
  0x3a   : > { %3399 = vmatprep.subr.bf16.mxu0 %v3716_v58  ;;  %3257 = vmatprep.mubr.bf16.mxu1 %v454_v8  ;;  %v4213_v32 = vld [vmem:[%s3902_s24 + $0x14] sm:$0xf] }
  0x3b   : > { %3385 = vmatprep.mubr.bf16.mxu0 %v1307_v11  ;;  %v1506_v11 = vsel %vm774_vm1, %v1503_v6, %v1505_v10  ;;  %v1995_v6 = vshll.u32 %v4272_v2, 16 }
  0x3c   : > { %3272 = vmatpush3.bf16.msra.mxu1 %v3715_v51  ;;  %v4117_v51 = vsel %vm774_vm1, %v782_v43, %v784_v45  ;;  %v4245_v45 = vld [vmem:[%s3902_s24 + $0x20] sm:$0xff]  }
  0x3d   : > { %3400 = vmatpush3.bf16.msra.mxu0 %v3716_v58  ;;  %3273 = vmatprep.subr.bf16.mxu1 %v3720_v12  ;;  %v790_v58 = vrot.slane %v4051_v61, 1  ;;  %v1499_v61 = vrot.slane %v4003_v21, 1  ;;  %v1997_v10 = vrot.slane %v1995_v6, 1 }
  0x3e   : > { %3401 = vmatprep.subr.bf16.mxu0 %v3722_v22 }
  0x3f   : > { %3258 = vmatmul.mubr.bf16.gmra.mrb[12].mxu1 %v462_v28  ;;  %v4137_v0 = vsel %vm774_vm1, %v788_v55, %v790_v58  ;;  %v1500_v21 = vsel %vm774_vm1, %v1497_v50, %v1499_v61  ;;  %v1502_v8 = vsel %vm774_vm1, %v1499_v61, %v1501_v5  ;;  %v3751_v28 = vld [vmem:[%s3902_s24 + $0x28] sm:$0xff]   ;;  %v3765_v55 = vld [vmem:[%s4549_s1 + $0xf8] sm:$0xff]  }
  0x40   : > { %3386 = vmatmul.mubr.bf16.gmra.mrb[12].mxu0 %v1315_v30  ;;  %3274 = vmatpush3.bf16.msra.mxu1 %v3720_v12  ;;  %v3740_v12 = vld [vmem:[%s4549_s1 + $0xb8] sm:$0xff]   ;;  %v3773_v5 = vld [vmem:[%s4549_s1 + $0x208] sm:$0xff]  }
  0x41   : > { %3402 = vmatpush3.bf16.msra.mxu0 %v3722_v22  ;;  %3275 = vmatprep.subr.bf16.mxu1 %v3723_v31  ;;  %v3747_v22 = vld [vmem:[%s4549_s1 + $0xc8] sm:$0xff]   ;;  %v3753_v30 = vld [vmem:[%s4549_s1 + $0xd8] sm:$0xff]  }
  0x42   : > { %3403 = vmatprep.subr.bf16.mxu0 %v3724_v19  ;;  %3277 = vmatprep.mubr.bf16.mxu1 %v3915_v14  ;;  %v3728_v14 = vld [vmem:[%s4549_s1 + $0x88] sm:$0xff]   ;;  %v3766_v58 = vld [vmem:[%s4549_s1 + $0x1f8] sm:$0xff]  }
  0x43   : > { %3405 = vmatprep.mubr.bf16.mxu0 %v1492_v33  ;;  %v3755_v33 = vld [vmem:[%s3902_s24 + $0x30] sm:$0xff]  }
  0x44   : > { %3276 = vmatpush3.bf16.msra.mxu1 %v3723_v31  ;;  %v1886_v31 = vld [vmem:[%s3902_s24 + $0x10] sm:$0xf] }
  0x45   : > { %3404 = vmatpush3.bf16.msra.mxu0 %v3724_v19  ;;  %3293 = vmatprep.subr.bf16.mxu1 %v3726_v16  ;;  %v3754_v19 = vld [vmem:[%s4549_s1 + $0x1d8] sm:$0xff]   ;;  %v2975_v35 = vcombine.low %v1886_v31, %v4213_v32 }
  0x46   : > { %3421 = vmatprep.subr.bf16.mxu0 %v3727_v36 }
  0x47   : > { %3278 = vmatmul.mubr.bf16.vlgmr.msra.gmra.mrb[0].mxu1 %v3918_v15  ;;  %v3730_v15 = vld [vmem:[%s4549_s1 + $0x90] sm:$0xff]   ;;  %v1966_v41 = vshll.u32 %v2975_v35, 16  ;;  %v1964_v43 = vshrl.u32 %v2975_v35, 16 }
  0x48   : > { %3406 = vmatmul.mubr.bf16.vlgmr.msra.gmra.mrb[0].mxu0 %v1494_v34  ;;  %3294 = vmatpush3.bf16.msra.mxu1 %v3726_v16  ;;  %v3756_v16 = vld [vmem:[%s4549_s1 + $0xe0] sm:$0xff]   ;;  %v3760_v34 = vld [vmem:[%s4549_s1 + $0x1e8] sm:$0xff]  }
  0x49   : > { %3422 = vmatpush3.bf16.msra.mxu0 %v3727_v36  ;;  %3295 = vmatprep.subr.bf16.mxu1 %v3728_v14  ;;  %v3757_v36 = vld [vmem:[%s3902_s24 + $0x38] sm:$0xff]  }
  0x4a   : > { %3423 = vmatprep.subr.bf16.mxu0 %v3729_v53  ;;  %3281 = vmatprep.mubr.bf16.mxu1 %v3935_v24  ;;  %v1498_v24 = vsel %vm774_vm1, %v1495_v40, %v1497_v50  ;;  %v4233_v40 = vld [vmem:[%s3902_s24 + $0x18] sm:$0xff]  }
  0x4b   : > { %3409 = vmatprep.mubr.bf16.mxu0 %v1496_v48 }
  0x4c   : > { %3296 = vmatpush3.bf16.msra.mxu1 %v3728_v14  ;;  %v3761_v14 = vld [vmem:[%s3902_s24 + $0x40] sm:$0xff]  }
  0x4d   : > { %3424 = vmatpush3.bf16.msra.mxu0 %v3729_v53  ;;  %3297 = vmatprep.subr.bf16.mxu1 %v3730_v15  ;;  %v1968_v53 = vrot.slane %v1966_v41, 1  ;;  %v3785_v41 = vld [vmem:[%s4549_s1 + $0x228] sm:$0xff]  }
  0x4e   : > { %3425 = vmatprep.subr.bf16.mxu0 %v3731_v62 }
  0x4f   : > { %3282 = vmatmul.mubr.bf16.gmra.mrb[4].mxu1 %v3965_v52  ;;  %v3735_v52 = vld [vmem:[%s4549_s1 + $0x1a0] sm:$0xff]   ;;  %v1969_v48 = vor.u32 %v1968_v53, %v1964_v43 }
  0x50   : > { %3410 = vmatmul.mubr.bf16.gmra.mrb[4].mxu0 %v1498_v24  ;;  %3298 = vmatpush3.bf16.msra.mxu1 %v3730_v15  ;;  %v1975_v15 = vshrl.u32 %v4233_v40, 16 }
  0x51   : > { %3426 = vmatpush3.bf16.msra.mxu0 %v3731_v62  ;;  %3299 = vmatprep.subr.bf16.mxu1 %v3732_v1  ;;  %v3767_v62 = vld [vmem:[%s3902_s24 + $0x8] sm:$0xff]  }
  0x52   : > { %3427 = vmatprep.subr.bf16.mxu0 %v3733_v13  ;;  %3285 = vmatprep.mubr.bf16.mxu1 %v3975_v57  ;;  %v3737_v57 = vld [vmem:[%s4549_s1 + $0x1a8] sm:$0xff]  }
  0x53   : > { %3413 = vmatprep.mubr.bf16.mxu0 %v1500_v21  ;;  %v4276_v21 = vld [vmem:[%s3902_s24 + $0x38] sm:$0xff]  }
  0x54   : > { %3300 = vmatpush3.bf16.msra.mxu1 %v3732_v1  ;;  %v3772_v1 = vld [vmem:[%s4549_s1 + $0x200] sm:$0xff]  }
  0x55   : > { %3428 = vmatpush3.bf16.msra.mxu0 %v3733_v13  ;;  %3301 = vmatprep.subr.bf16.mxu1 %v3734_v4 }
  0x56   : > { %3429 = vmatprep.subr.bf16.mxu0 %v3735_v52 }
  0x57   : > { %3286 = vmatmul.mubr.bf16.gmra.mrb[8].mxu1 %v3999_v18  ;;  %v3739_v18 = vld [vmem:[%s4549_s1 + $0x1b0] sm:$0xff]  }
  0x58   : > { %3414 = vmatmul.mubr.bf16.gmra.mrb[8].mxu0 %v1502_v8  ;;  %3302 = vmatpush3.bf16.msra.mxu1 %v3734_v4  ;;  %v3774_v8 = vld [vmem:[%s3902_s24 + $0x18] sm:$0xff]  }
  0x59   : > { %3430 = vmatpush3.bf16.msra.mxu0 %v3735_v52  ;;  %3303 = vmatprep.subr.bf16.mxu1 %v3736_v9 }
  0x5a   : > { %3431 = vmatprep.subr.bf16.mxu0 %v3737_v57  ;;  %3289 = vmatprep.mubr.bf16.mxu1 %v4011_v27  ;;  %v3741_v27 = vld [vmem:[%s4549_s1 + $0x1b8] sm:$0xff]  }
  0x5b   : > { %3417 = vmatprep.mubr.bf16.mxu0 %v1504_v37  ;;  %v2003_v37 = vshll.u32 %v4276_v21, 16 }
  0x5c   : > { %3304 = vmatpush3.bf16.msra.mxu1 %v3736_v9 }
  0x5d   : > { %3432 = vmatpush3.bf16.msra.mxu0 %v3737_v57  ;;  %3305 = vmatprep.subr.bf16.mxu1 %v3738_v54  ;;  %v1999_v57 = vshrl.u32 %v4272_v2, 16 }
  0x5e   : > { %3433 = vmatprep.subr.bf16.mxu0 %v3739_v18 }
  0x5f   : > { %3290 = vmatmul.mubr.bf16.gmra.mrb[12].mxu1 %v4035_v49  ;;  %v3745_v49 = vld [vmem:[%s3902_s24 + $0x18] sm:$0xff]  }
  0x60   : > { %3418 = vmatmul.mubr.bf16.gmra.mrb[12].mxu0 %v1506_v11  ;;  %3306 = vmatpush3.bf16.msra.mxu1 %v3738_v54  ;;  %v4292_v11 = vld [vmem:[%s3902_s24 + $0x40] sm:$0xff]  }
  0x61   : > { %3434 = vmatpush3.bf16.msra.mxu0 %v3739_v18  ;;  %3307 = vmatprep.subr.bf16.mxu1 %v3740_v12  ;;  %v3778_v18 = vld [vmem:[%s4549_s1 + $0x210] sm:$0xff]  }
  0x62   : > { %3435 = vmatprep.subr.bf16.mxu0 %v3741_v27  ;;  %3309 = vmatprep.mubr.bf16.mxu1 %v777_v3 }
  0x63   : > { %3437 = vmatprep.mubr.bf16.mxu0 %v3743_v7  ;;  %v2005_v7 = vrot.slane %v2003_v37, 1 }
  0x64   : > { %3308 = vmatpush3.bf16.msra.mxu1 %v3740_v12  ;;  %v3776_v12 = vld [vmem:[%s3902_s24 + $0x20] sm:$0xff]  }
  0x65   : > { %3436 = vmatpush3.bf16.msra.mxu0 %v3741_v27  ;;  %3325 = vmatprep.subr.bf16.mxu1 %v3744_v17  ;;  %v2001_v27 = vor.u32 %v1999_v57, %v1997_v10 }
  0x66   : > { %3453 = vmatprep.subr.bf16.mxu0 %v3746_v20 }
  0x67   : > { %3310 = vmatmul.mubr.bf16.vlgmr.msra.gmra.mrb[0].mxu1 %v4099_v42  ;;  %v3762_v42 = vld [vmem:[%s4549_s1 + $0xf0] sm:$0xff]  }
  0x68   : > { %3438 = vmatmul.mubr.bf16.vlgmr.msra.gmra.mrb[0].mxu0 %v3745_v49  ;;  %3326 = vmatpush3.bf16.msra.mxu1 %v3744_v17  ;;  %v4296_v17 = vld [vmem:[%s3902_s24 + $0x48] sm:$0xff]   ;;  %v3779_v49 = vld [vmem:[%s4549_s1 + $0x218] sm:$0xff]  }
  0x69   : > { %3454 = vmatpush3.bf16.msra.mxu0 %v3746_v20  ;;  %3327 = vmatprep.subr.bf16.mxu1 %v3747_v22 }
  0x6a   : > { %3455 = vmatprep.subr.bf16.mxu0 %v3748_v23  ;;  %3313 = vmatprep.mubr.bf16.mxu1 %v4106_v44  ;;  %v1971_v44 = vshll.u32 %v4233_v40, 16 }
  0x6b   : > { %3441 = vmatprep.mubr.bf16.mxu0 %v3749_v25  ;;  %v3780_v25 = vld [vmem:[%s3902_s24 + $0x28] sm:$0xff]  }
  0x6c   : > { %3328 = vmatpush3.bf16.msra.mxu1 %v3747_v22  ;;  %v1973_v50 = vrot.slane %v1971_v44, 1  ;;  %v2007_v22 = vshrl.u32 %v4276_v21, 16 }
  0x6d   : > { %3456 = vmatpush3.bf16.msra.mxu0 %v3748_v23  ;;  %3329 = vmatprep.subr.bf16.mxu1 %v3750_v26  ;;  %v2011_v23 = vshll.u32 %v4292_v11, 16 }
  0x6e   : > { %3457 = vmatprep.subr.bf16.mxu0 %v3752_v29  ;;  %v1974_v59 = vsel %vm394_vm0, %v1969_v48, %v1973_v50  ;;  %v1977_v61 = vor.u32 %v1975_v15, %v1973_v50  ;;  %v3788_v48 = vld [vmem:[%s3902_s24 + $0x40] sm:$0xff]   ;;  %v2214_v15 = vrot.slane %v4276_v21, 1 }
  0x6f   : > { %3314 = vmatmul.mubr.bf16.gmra.mrb[4].mxu1 %v4111_v46  ;;  %v3764_v46 = vld [vmem:[%s4549_s1 + $0x1f0] sm:$0xff]   ;;  %v2013_v31 = vrot.slane %v2011_v23, 1 }
  0x70   : > { %3442 = vmatmul.mubr.bf16.gmra.mrb[4].mxu0 %v3751_v28  ;;  %3330 = vmatpush3.bf16.msra.mxu1 %v3750_v26  ;;  %v2006_v26 = vsel %vm394_vm0, %v2001_v27, %v2005_v7  ;;  %v2015_v28 = vshrl.u32 %v4292_v11, 16  ;;  %v3029_v23 = vld [vmem:[%s4389_s7 + $0x28] ss:$8 sps:$4 sm:$0xff]  }
  0x71   : > { %3458 = vmatpush3.bf16.msra.mxu0 %v3752_v29  ;;  %3331 = vmatprep.subr.bf16.mxu1 %v3753_v30  ;;  %v2019_v29 = vshll.u32 %v4296_v17, 16 }
  0x72   : > { %3459 = vmatprep.subr.bf16.mxu0 %v3754_v19  ;;  %3317 = vmatprep.mubr.bf16.mxu1 %v4117_v51  ;;  %v4253_v51 = vld [vmem:[%s3902_s24 + $0x28] sm:$0xff]   ;;  %v2017_v35 = vor.u32 %v2015_v28, %v2013_v31 }
  0x73   : > { %3445 = vmatprep.mubr.bf16.mxu0 %v3755_v33  ;;  %v1987_v63 = vshll.u32 %v4253_v51, 16  ;;  %v1991_v52 = vshrl.u32 %v4253_v51, 16  ;;  %v4312_v33 = vld [vmem:[%s3902_s24 + $0x50] ss:$0 sps:$4 sm:$0x11]  }
  0x74   : > { %3332 = vmatpush3.bf16.msra.mxu1 %v3753_v30  ;;  %v2009_v30 = vor.u32 %v2007_v22, %v2005_v7  ;;  %v3022_v22 = vld [vmem:[%s4389_s7 + $0x14] sm:$0x1] }
  0x75   : > { %3460 = vmatpush3.bf16.msra.mxu0 %v3754_v19  ;;  %3333 = vmatprep.subr.bf16.mxu1 %v3756_v16  ;;  %v1989_v3 = vrot.slane %v1987_v63, 1  ;;  %v3784_v19 = vld [vmem:[%s4549_s1 + $0x220] sm:$0xff]   ;;  %v2218_v63 = vrot.slane %v4296_v17, 1 }
  0x76   : > { %3461 = vmatprep.subr.bf16.mxu0 %v3758_v38 }
  0x77   : > { %3318 = vmatmul.mubr.bf16.gmra.mrb[8].mxu1 %v4124_v56  ;;  %v1979_v56 = vshll.u32 %v4245_v45, 16  ;;  %v1993_v54 = vor.u32 %v1991_v52, %v1989_v3 }
  0x78   : > { %3446 = vmatmul.mubr.bf16.gmra.mrb[8].mxu0 %v3757_v36  ;;  %3334 = vmatpush3.bf16.msra.mxu1 %v3756_v16  ;;  %v3782_v16 = vld [vmem:[%s3902_s24 + $0x30] sm:$0xff]   ;;  %v2021_v36 = vrot.slane %v2019_v29, 1  ;;  %v2423_v29 = vunpack.c.l.bf16 %v3022_v22 }
  0x79   : > { %3462 = vmatpush3.bf16.msra.mxu0 %v3758_v38  ;;  %3335 = vmatprep.subr.bf16.mxu1 %v3759_v39  ;;  %v1981_v24 = vrot.slane %v1979_v56, 1  ;;  %v1998_v20 = vsel %vm394_vm0, %v1993_v54, %v1997_v10  ;;  %v2184_v38 = vld [vmem:[%s3902_s24 + $0x10] sm:$0xe] }
  0x7a   : > { %3463 = vmatprep.subr.bf16.mxu0 %v3760_v34  ;;  %3321 = vmatprep.mubr.bf16.mxu1 %v4133_v60  ;;  %v1983_v60 = vshrl.u32 %v4245_v45, 16  ;;  %v3008_v43 = vcombine.low %v2184_v38, %v4213_v32  ;;  %v2022_v53 = vsel %vm394_vm0, %v2017_v35, %v2021_v36  ;;  %v2212_v32 = vrot.slane %v4272_v2, 1 }
  0x7b   : > { %3449 = vmatprep.mubr.bf16.mxu0 %v3761_v14  ;;  %v1982_v4 = vsel %vm394_vm0, %v1977_v61, %v1981_v24  ;;  %v2027_v14 = vshll.u32 %v4312_v33, 16  ;;  %v2210_v61 = vrot.slane %v4253_v51, 1 }
  0x7c   : > { %3336 = vmatpush3.bf16.msra.mxu1 %v3759_v39  ;;  %v1985_v13 = vor.u32 %v1983_v60, %v1981_v24  ;;  %v2014_v39 = vsel %vm394_vm0, %v2009_v30, %v2013_v31  ;;  %v2205_v50 = vrot.slane %v3008_v43, 1  ;;  %v2208_v60 = vrot.slane %v4245_v45, 1  ;;  %v3028_v31 = vld [vmem:[%s4389_s7 + $0x2c] sm:$0x1] }
  0x7d   : > { %3464 = vmatpush3.bf16.msra.mxu0 %v3760_v34  ;;  %3337 = vmatprep.subr.bf16.mxu1 %v3762_v42  ;;  %v2023_v34 = vshrl.u32 %v4296_v17, 16  ;;  %v2220_v45 = vrot.slane %v4312_v33, 1  ;;  %v2430_v30 = vunpack.c.h.bf16 %v3029_v23  ;;  %v3026_v33 = vld [vmem:[%s4389_s7 + $0x24] sm:$0x1] }
  0x7e   : > { %3465 = vmatprep.subr.bf16.mxu0 %v3764_v46  ;;  %v1990_v9 = vsel %vm394_vm0, %v1985_v13, %v1989_v3  ;;  %v2213_v13 = vsel %vm774_vm1, %v2210_v61, %v2212_v32  ;;  %v3817_v3 = vmov 0  }
  0x7f   : > { %3322 = vmatmul.mubr.bf16.gmra.mrb[12].mxu1 %v4137_v0  ;;  %v3770_v0 = vld [vmem:[%s3902_s24 + $0x10] sm:$0xff]   ;;  %v2025_v44 = vor.u32 %v2023_v34, %v2021_v36  ;;  %v2221_v51 = vsel %vm774_vm1, %v2218_v63, %v2220_v45  ;;  %279 = vst [vmem:[%s4353_s29] sm:$0xf] %v3817_v3  ;;  %280 = vst [vmem:[%s4353_s29 + $0x4] sm:$0xf] %v3817_v3  ;;  %v2428_v34 = vunpack.c.l.bf16 %v3029_v23 }
  0x80   : > { %3450 = vmatmul.mubr.bf16.gmra.mrb[12].mxu0 %v3763_v47  ;;  %3338 = vmatpush3.bf16.msra.mxu1 %v3762_v42  ;;  %v3786_v42 = vld [vmem:[%s3902_s24 + $0x38] sm:$0xff]   ;;  %v3790_v47 = vld [vmem:[%s4549_s1 + $0x230] sm:$0xff]   ;;  %283 = vst [vmem:[%s4353_s29 + $0x10] sm:$0xf] %v3817_v3  ;;  %284 = vst [vmem:[%s4353_s29 + $0x14] sm:$0xf] %v3817_v3 }
  0x81   : > { %3466 = vmatpush3.bf16.msra.mxu0 %v3764_v46  ;;  %3339 = vmatprep.subr.bf16.mxu1 %v3765_v55  ;;  %v2029_v46 = vrot.slane %v2027_v14, 1  ;;  %297 = vst [vmem:[%s4353_s29 + $0x48] sm:$0xf] %v3817_v3  ;;  %298 = vst [vmem:[%s4353_s29 + $0x4c] sm:$0xf] %v3817_v3 }
  0x82   : > { %3467 = vmatprep.subr.bf16.mxu0 %v3766_v58  ;;  %3341 = vmatprep.mubr.bf16.mxu1 %v3767_v62  ;;  %299 = vst [vmem:[%s4353_s29 + $0x50] sm:$0xf] %v3817_v3  ;;  %300 = vst [vmem:[%s4353_s29 + $0x54] sm:$0xf] %v3817_v3 }
  0x83   : > { %3469 = vmatprep.mubr.bf16.mxu0 %v1974_v59  ;;  %v2030_v56 = vsel %vm394_vm0, %v2025_v44, %v2029_v46  ;;  %v2216_v59 = vrot.slane %v4292_v11, 1  ;;  %281 = vst [vmem:[%s4353_s29 + $0x8] sm:$0xf] %v3817_v3  ;;  %282 = vst [vmem:[%s4353_s29 + $0xc] sm:$0xf] %v3817_v3  ;;  %v2427_v46 = vunpack.c.l.bf16 %v3026_v33 }
  0x84   : > { %3340 = vmatpush3.bf16.msra.mxu1 %v3765_v55  ;;  %v2206_v55 = vrot.slane %v4233_v40, 1  ;;  %v2215_v40 = vsel %vm774_vm1, %v2212_v32, %v2214_v15  ;;  %285 = vst [vmem:[%s4353_s29 + $0x18] sm:$0xf] %v3817_v3  ;;  %286 = vst [vmem:[%s4353_s29 + $0x1c] sm:$0xf] %v3817_v3  ;;  %v2457_v32 = vrot.slane %v2423_v29, 1 }
  0x85   : > { %3468 = vmatpush3.bf16.msra.mxu0 %v3766_v58  ;;  %3517 = vmatprep.subr.bf16.mxu1 %v3772_v1  ;;  %v3791_v58 = vld [vmem:[%s4549_s1 + $0x238] sm:$0xff]   ;;  %v2217_v24 = vsel %vm774_vm1, %v2214_v15, %v2216_v59  ;;  %v2219_v2 = vsel %vm774_vm1, %v2216_v59, %v2218_v63  ;;  %287 = vst [vmem:[%s4353_s29 + $0x20] sm:$0xf] %v3817_v3  ;;  %288 = vst [vmem:[%s4353_s29 + $0x24] sm:$0xf] %v3817_v3  ;;  %v2468_v15 = vrot.slane %v2430_v30, 1 }
  0x86   : > { %3485 = vmatprep.subr.bf16.mxu0 %v3772_v1  ;;  %v2207_v62 = vsel %vm774_vm1, %v2205_v50, %v2206_v55  ;;  %289 = vst [vmem:[%s4353_s29 + $0x28] sm:$0xf] %v3817_v3  ;;  %290 = vst [vmem:[%s4353_s29 + $0x2c] sm:$0xf] %v3817_v3  ;;  %v3024_v63 = vld [vmem:[%s4389_s7 + $0x1c] sm:$0x1] }
  0x87   : > { %3342 = vmatmul.mubr.bf16.vlgmr.msra.gmra.mrb[0].mxu1 %v3770_v0  ;;  %v2211_v0 = vsel %vm774_vm1, %v2208_v60, %v2210_v61  ;;  %291 = vst [vmem:[%s4353_s29 + $0x30] sm:$0xf] %v3817_v3  ;;  %292 = vst [vmem:[%s4353_s29 + $0x34] sm:$0xf] %v3817_v3  ;;  %v2465_v61 = vrot.slane %v2428_v34, 1 }
  0x88   : > { %3470 = vmatmul.mubr.bf16.vlgmr.msra.gmra.mrb[0].mxu0 %v1982_v4  ;;  %3525 = vmatpush3.bf16.msra.mxu1 %v3772_v1  ;;  %293 = vst [vmem:[%s4353_s29 + $0x38] sm:$0xf] %v3817_v3  ;;  %294 = vst [vmem:[%s4353_s29 + $0x3c] sm:$0xf] %v3817_v3 }
  0x89   : > { %3486 = vmatpush3.bf16.msra.mxu0 %v3772_v1  ;;  %3518 = vmatprep.subr.bf16.mxu1 %v3773_v5  ;;  %v2209_v1 = vsel %vm774_vm1, %v2206_v55, %v2208_v60  ;;  %295 = vst [vmem:[%s4353_s29 + $0x40] sm:$0xf] %v3817_v3  ;;  %296 = vst [vmem:[%s4353_s29 + $0x44] sm:$0xf] %v3817_v3 }
  0x8a   : > { %3487 = vmatprep.subr.bf16.mxu0 %v3773_v5  ;;  %3345 = vmatprep.mubr.bf16.mxu1 %v3774_v8 }
  0x8b   : > { %3473 = vmatprep.mubr.bf16.mxu0 %v1990_v9 }
  0x8c   : > { %3526 = vmatpush3.bf16.msra.mxu1 %v3773_v5 }
  0x8d   : > { %3488 = vmatpush3.bf16.msra.mxu0 %v3773_v5  ;;  %3519 = vmatprep.subr.bf16.mxu1 %v3778_v18 }
  0x8e   : > { %3489 = vmatprep.subr.bf16.mxu0 %v3778_v18 }
  0x8f   : > { %3346 = vmatmul.mubr.bf16.gmra.mrb[4].mxu1 %v3776_v12 }
  0x90   : > { %3474 = vmatmul.mubr.bf16.gmra.mrb[4].mxu0 %v1998_v20  ;;  %3527 = vmatpush3.bf16.msra.mxu1 %v3778_v18  ;;  %v3021_v20 = vld [vmem:[%s4389_s7 + $0x8] ss:$8 sps:$4 sm:$0xff]  }
  0x91   : > { %3490 = vmatpush3.bf16.msra.mxu0 %v3778_v18  ;;  %3520 = vmatprep.subr.bf16.mxu1 %v3779_v49  ;;  %v2422_v28 = vunpack.c.h.bf16 %v3021_v20 }
  0x92   : > { %3491 = vmatprep.subr.bf16.mxu0 %v3779_v49  ;;  %3349 = vmatprep.mubr.bf16.mxu1 %v3780_v25  ;;  %v3030_v25 = vld [vmem:[%s4389_s7 + $0x34] sm:$0x1] }
  0x93   : > { %3477 = vmatprep.mubr.bf16.mxu0 %v2006_v26  ;;  %v3020_v26 = vld [vmem:[%s4389_s7 + $0xc] sm:$0x1]  ;;  %v2431_v35 = vunpack.c.l.bf16 %v3030_v25  ;;  %v2456_v55 = vrot.slane %v2422_v28, 1 }
  0x94   : > { %3528 = vmatpush3.bf16.msra.mxu1 %v3779_v49 }
  0x95   : > { %3492 = vmatpush3.bf16.msra.mxu0 %v3779_v49  ;;  %3521 = vmatprep.subr.bf16.mxu1 %v3784_v19  ;;  %v2458_v3 = vsel %vm774_vm1, %v2456_v55, %v2457_v32 }
  0x96   : > { %3493 = vmatprep.subr.bf16.mxu0 %v3784_v19 }
  0x97   : > { %3350 = vmatmul.mubr.bf16.gmra.mrb[8].mxu1 %v3782_v16 }
  0x98   : > { %3478 = vmatmul.mubr.bf16.gmra.mrb[8].mxu0 %v2014_v39  ;;  %3529 = vmatpush3.bf16.msra.mxu1 %v3784_v19  ;;  %v2420_v39 = vunpack.c.l.bf16 %v3021_v20 }
  0x99   : > { %3494 = vmatpush3.bf16.msra.mxu0 %v3784_v19  ;;  %3522 = vmatprep.subr.bf16.mxu1 %v3785_v41  ;;  %v4400_v19 = vld [vmem:[%s4389_s7 + $0x18] ss:$8 sps:$4 sm:$0xff]  }
  0x9a   : > { %3495 = vmatprep.subr.bf16.mxu0 %v3785_v41  ;;  %3353 = vmatprep.mubr.bf16.mxu1 %v3786_v42  ;;  %v2426_v44 = vunpack.c.h.bf16 %v4400_v19  ;;  %v2453_v59 = vrot.slane %v2420_v39, 1 }
  0x9b   : > { %3481 = vmatprep.mubr.bf16.mxu0 %v2022_v53  ;;  %v2429_v53 = vunpack.c.l.bf16 %v3028_v31 }
  0x9c   : > { %3530 = vmatpush3.bf16.msra.mxu1 %v3785_v41 }
  0x9d   : > { %3496 = vmatpush3.bf16.msra.mxu0 %v3785_v41  ;;  %3523 = vmatprep.subr.bf16.mxu1 %v3790_v47  ;;  %v2421_v41 = vunpack.c.l.bf16 %v3020_v26 }
  0x9e   : > { %3497 = vmatprep.subr.bf16.mxu0 %v3790_v47 }
  0x9f   : > { %3354 = vmatmul.mubr.bf16.gmra.mrb[12].mxu1 %v3788_v48  ;;  %v2454_v60 = vrot.slane %v2421_v41, 1 }
  0xa0   : > { %3482 = vmatmul.mubr.bf16.gmra.mrb[12].mxu0 %v2030_v56  ;;  %3531 = vmatpush3.bf16.msra.mxu1 %v3790_v47 }
  0xa1   : > { %3498 = vmatpush3.bf16.msra.mxu0 %v3790_v47  ;;  %3524 = vmatprep.subr.bf16.mxu1 %v3791_v58 }
  0xa2   : > { %3499 = vmatprep.subr.bf16.mxu0 %v3791_v58  ;;  %3501 = vmatprep.mubr.bf16.mxu0 %v2207_v62  ;;  %v3033_v62 = vld [vmem:[%s4389_s7 + $0x38] ss:$8 sps:$4 sm:$0xff]  }
  0xa3   : > { %3509 = vmatprep.mubr.bf16.mxu1 %v2215_v40  ;;  %v3034_v40 = vld [vmem:[%s4389_s7 + $0x44] sm:$0x1]  ;;  %v2434_v45 = vunpack.c.h.bf16 %v3033_v62 }
  0xa4   : > { %3532 = vmatpush3.bf16.msra.mxu1 %v3791_v58 }
  0xa5   : > { %3500 = vmatpush3.bf16.msra.mxu0 %v3791_v58  ;;  %v2469_v58 = vrot.slane %v2431_v35, 1  ;;  %v2474_v31 = vrot.slane %v2434_v45, 1 }
  0xa7   : > { %3510 = vmatmul.mubr.bf16.vlgmr.msra.gmra.mrb[16].mxu1 %v2217_v24  ;;  %v2466_v24 = vrot.slane %v2429_v53, 1 }
  0xa8   : > { %3502 = vmatmul.mubr.bf16.vlgmr.msra.gmra.mrb[0].mxu0 %v2209_v1  ;;  %3513 = vmatprep.mubr.bf16.mxu1 %v2219_v2  ;;  %v2462_v1 = vrot.slane %v2426_v44, 1  ;;  %v2463_v2 = vrot.slane %v2427_v46, 1 }
  0xa9   : > { %3505 = vmatprep.mubr.bf16.mxu0 %v2211_v0  ;;  %v3032_v0 = vld [vmem:[%s4389_s7 + $0x3c] sm:$0x1]  ;;  %v2467_v23 = vsel %vm774_vm1, %v2465_v61, %v2466_v24 }
  0xaf   : > { %3514 = vmatmul.mubr.bf16.gmra.mrb[20].mxu1 %v2221_v51  ;;  %v2435_v51 = vunpack.c.l.bf16 %v3034_v40 }
  0xb0   : > { %3506 = vmatmul.mubr.bf16.gmra.mrb[4].mxu0 %v2213_v13  ;;  %v4415_v13 = vld [vmem:[%s4550_s2] ss:$0 sm:$0xff] }
 0x15a   : > { %v4377_v21 = vpop.f32.mrb[0].mxu1 }
 0x15b   : > { %v4379_v4 = vpop.f32.mrb[1].mxu1 }
 0x15c   : > { %v3344_v5 = vpop.f32.mrb[2].mxu1 }
 0x15d   : > { %v1111_v52 = vpop.f32.mrb[3].mxu1 }
 0x15e   : > { %v2470_v52 = vsel %vm774_vm1, %v2468_v15, %v2469_v58 }
 0x162   : > { %v4381_v6 = vpop.f32.mrb[4].mxu1 }
 0x163   : > { %v4383_v8 = vpop.f32.mrb[5].mxu1 }
 0x164   : > { %v3348_v9 = vpop.f32.mrb[6].mxu1 }
 0x165   : > { %v1125_v57 = vpop.f32.mrb[7].mxu1  ;;  %v2424_v9 = vunpack.c.l.bf16 %v4400_v19  ;;  %v2475_v19 = vrot.slane %v2435_v51, 1 }
 0x166   : > { %v2425_v57 = vunpack.c.l.bf16 %v3024_v63 }
 0x168   : > { %v2460_v35 = vrot.slane %v2425_v57, 1 }
 0x16a   : > { %v3351_v37 = vpop.f32.mrb[8].mxu1 }
 0x16b   : > { %v3479_v54 = vpop.f32.mrb[8].mxu0  ;;  %v1136_v10 = vpop.f32.mrb[9].mxu1 }
 0x16c   : > { %v3537_v18 = vadd.f32 %v3479_v54, %v3351_v37  ;;  %v2149_v11 = vpop.f32.mrb[9].mxu0  ;;  %v3352_v12 = vpop.f32.mrb[10].mxu1 }
 0x16d   : > { %v4391_v27 = vadd.f32 %v2149_v11, %v1136_v10  ;;  %v3480_v7 = vpop.f32.mrb[10].mxu0  ;;  %v1139_v17 = vpop.f32.mrb[11].mxu1  ;;  %v2455_v10 = vsel %vm774_vm1, %v2453_v59, %v2454_v60  ;;  %v2432_v12 = vunpack.c.l.bf16 %v3033_v62 }
 0x16e   : > { %v2152_v49 = vpop.f32.mrb[11].mxu0  ;;  %v2433_v7 = vunpack.c.l.bf16 %v3032_v0  ;;  %v4424_v17 = vld [vmem:[%s4551_s3] ss:$0 sm:$0xff] }
 0x16f   : > { %v2471_v39 = vrot.slane %v2432_v12, 1 }
 0x170   : > { %v2472_v41 = vrot.slane %v2433_v7, 1 }
 0x172   : > { %v3355_v16 = vpop.f32.mrb[12].mxu1  ;;  %v4447_v62 = vsel %vm774_vm1, %v2471_v39, %v2472_v41 }
 0x173   : > { %v3483_v36 = vpop.f32.mrb[12].mxu0  ;;  %v1150_v38 = vpop.f32.mrb[13].mxu1 }
 0x174   : > { %v4403_v14 = vadd.f32 %v3483_v36, %v3355_v16  ;;  %v2163_v42 = vpop.f32.mrb[13].mxu0  ;;  %v3356_v43 = vpop.f32.mrb[14].mxu1 }
 0x175   : > { %v4406_v47 = vadd.f32 %v2163_v42, %v1150_v38  ;;  %v3484_v48 = vpop.f32.mrb[14].mxu0  ;;  %v1153_v50 = vpop.f32.mrb[15].mxu1 }
 0x176   : > { %v2166_v56 = vpop.f32.mrb[15].mxu0  ;;  %v2476_v48 = vsel %vm774_vm1, %v2474_v31, %v2475_v19  ;;  %v3065_v31 = vld [vmem:[%s4353_s29 + $0x34] sm:$0x1] }
 0x17a   : > { %v3511_v5 = vpop.f32.mrb[16].mxu1 }
 0x17b   : > { %v3503_v37 = vpop.f32.mrb[0].mxu0  ;;  %v3538_v54 = vadd.f32 %v3537_v18, %v3511_v5  ;;  %v2340_v11 = vpop.f32.mrb[17].mxu1  ;;  %v4430_v18 = vsel %vm774_vm1, %v2462_v1, %v2463_v2 }
 0x17c   : > { %v3533_v20 = vadd.f32 %v3503_v37, %v4377_v21  ;;  %v2312_v49 = vpop.f32.mrb[1].mxu0  ;;  %v3540_v22 = vadd.f32 %v4391_v27, %v2340_v11  ;;  %v3512_v25 = vpop.f32.mrb[18].mxu1  ;;  %v2459_v27 = vrot.slane %v2424_v9, 1 }
 0x17d   : > { %v2386_v26 = vmul.f32 %v3538_v54, %v4415_v13  ;;  %v3534_v28 = vadd.f32 %v2312_v49, %v4379_v4  ;;  %v3504_v29 = vpop.f32.mrb[2].mxu0  ;;  %v2343_v30 = vpop.f32.mrb[19].mxu1  ;;  %v3049_v49 = vld [vmem:[%s4353_s29 + $0x14] sm:$0x1] }
 0x17e   : > { %v2382_v33 = vmul.f32 %v3533_v20, %v4415_v13  ;;  %v2385_v21 = vmul.f32 %v3540_v22, %v4415_v13  ;;  %v2315_v16 = vpop.f32.mrb[3].mxu0  ;;  %v4443_v50 = vsel %vm774_vm1, %v2459_v27, %v2460_v35  ;;  %v3047_v20 = vld [vmem:[%s4353_s29 + $0x10] sm:$0xf] }
 0x17f   : > { %v2400_v36 = vadd.f32 %v4424_v17, %v2386_v26  ;;  %v2381_v38 = vmul.f32 %v3534_v28, %v4415_v13  ;;  %v3063_v30 = vld [vmem:[%s4353_s29 + $0x30] sm:$0xf] }
 0x180   : > { %v2396_v34 = vadd.f32 %v4424_v17, %v2382_v33  ;;  %v2399_v4 = vadd.f32 %v4424_v17, %v2385_v21 }
 0x181   : > { %v2490_v42 = vadd.f32 %v2470_v52, %v2400_v36  ;;  %v2395_v43 = vadd.f32 %v4424_v17, %v2381_v38  ;;  %v3059_v36 = vld [vmem:[%s4353_s29 + $0x28] sm:$0xf]  ;;  %v3061_v38 = vld [vmem:[%s4353_s29 + $0x2c] sm:$0x1] }
 0x182   : > { %v2486_v53 = vadd.f32 %v2458_v3, %v2396_v34  ;;  %v2489_v44 = vadd.f32 %v2467_v23, %v2399_v4  ;;  %v3515_v46 = vpop.f32.mrb[20].mxu1  ;;  %v3043_v4 = vld [vmem:[%s4353_s29 + $0x8] sm:$0xf] }
 0x183   : > { %v2498_v55 = vmax.f32 %v2490_v42, 0.0  ;;  %v2485_v32 = vadd.f32 %v2455_v10, %v2395_v43  ;;  %v3507_v15 = vpop.f32.mrb[4].mxu0  ;;  %v3542_v56 = vadd.f32 %v4403_v14, %v3515_v46  ;;  %v2354_v58 = vpop.f32.mrb[21].mxu1  ;;  %v3045_v42 = vld [vmem:[%s4353_s29 + $0xc] sm:$0x1] }
 0x184   : > { %v2494_v40 = vmax.f32 %v2486_v53, 0.0  ;;  %v2497_v59 = vmax.f32 %v2489_v44, 0.0  ;;  %v3535_v60 = vadd.f32 %v3507_v15, %v4381_v6  ;;  %v2326_v63 = vpop.f32.mrb[5].mxu0  ;;  %v3544_v61 = vadd.f32 %v4406_v47, %v2354_v58  ;;  %v3516_v24 = vpop.f32.mrb[22].mxu1 }
 0x185   : > { %v3082_v1 = vpack.c.bf16 %v2498_v55, %v2498_v55  ;;  %v2493_v2 = vmax.f32 %v2485_v32, 0.0  ;;  %v2388_v0 = vmul.f32 %v3542_v56, %v4415_v13  ;;  %v3536_v45 = vadd.f32 %v2326_v63, %v4383_v8  ;;  %v3508_v51 = vpop.f32.mrb[6].mxu0  ;;  %v2357_v14 = vpop.f32.mrb[23].mxu1 }
 0x186   : > { %v3078_v3 = vpack.c.bf16 %v2494_v40, %v2494_v40  ;;  %v3081_v5 = vpack.c.bf16 %v2497_v59, %v2497_v59  ;;  %v2384_v52 = vmul.f32 %v3535_v60, %v4415_v13  ;;  %v2387_v6 = vmul.f32 %v3544_v61, %v4415_v13  ;;  %v2329_v9 = vpop.f32.mrb[7].mxu0 }
 0x187   : > { %v2574_v57 = vshrl.u32 %v3082_v1, 16  ;;  %v2577_v47 = vshll.u32 %v3082_v1, 16  ;;  %v3077_v37 = vpack.c.bf16 %v2493_v2, %v2493_v2  ;;  %v2402_v54 = vadd.f32 %v4424_v17, %v2388_v0 }
 0x188   : > { %v2542_v10 = vshrl.u32 %v3078_v3, 16  ;;  %v2545_v8 = vshll.u32 %v3078_v3, 16  ;;  %v2566_v11 = vshrl.u32 %v3081_v5, 16  ;;  %v2569_v12 = vshll.u32 %v3081_v5, 16 }
 0x189   : > { %v2576_v22 = vrot.slane %v2574_v57, 7  ;;  %v2534_v23 = vshrl.u32 %v3077_v37, 16  ;;  %v2537_v25 = vshll.u32 %v3077_v37, 16  ;;  %v2398_v26 = vadd.f32 %v4424_v17, %v2384_v52  ;;  %v3055_v52 = vld [vmem:[%s4353_s29 + $0x20] sm:$0xf] }
 0x18a   : > { %v2544_v28 = vrot.slane %v2542_v10, 7  ;;  %v2568_v19 = vrot.slane %v2566_v11, 7  ;;  %v2492_v33 = vadd.f32 %v2476_v48, %v2402_v54  ;;  %v2383_v21 = vmul.f32 %v3536_v45, %v4415_v13 }
 0x18b   : > { %v2579_v16 = vor.u32 %v2577_v47, %v2576_v22  ;;  %v2580_v27 = vrot.slane %v2576_v22, 4  ;;  %v2536_v35 = vrot.slane %v2534_v23, 7  ;;  %v2488_v39 = vadd.f32 %v4430_v18, %v2398_v26  ;;  %v3057_v47 = vld [vmem:[%s4353_s29 + $0x24] sm:$0x1] }
 0x18c   : > { %v2547_v41 = vor.u32 %v2545_v8, %v2544_v28  ;;  %v2548_v34 = vrot.slane %v2544_v28, 4  ;;  %v2571_v43 = vor.u32 %v2569_v12, %v2568_v19  ;;  %v2572_v53 = vrot.slane %v2568_v19, 4  ;;  %v3051_v28 = vld [vmem:[%s4353_s29 + $0x18] sm:$0xf]  ;;  %v3053_v19 = vld [vmem:[%s4353_s29 + $0x1c] sm:$0x1] }
 0x18d   : > { %v2651_v13 = vsel %vm4458_vm6, %v2579_v16, %v3063_v30  ;;  %v2654_v44 = vsel %vm4467_vm7, %v2580_v27, %v3065_v31  ;;  %v2539_v46 = vor.u32 %v2537_v25, %v2536_v35  ;;  %v2540_v48 = vrot.slane %v2536_v35, 4 }
 0x18e   : > { %v2627_v18 = vsel %vm4458_vm6, %v2547_v41, %v3047_v20  ;;  %v2630_v55 = vsel %vm4467_vm7, %v2548_v34, %v3049_v49  ;;  %3064 = vst [vmem:[%s4353_s29 + $0x30] sm:$0xf] %v2651_v13  ;;  %3066 = vst [vmem:[%s4353_s29 + $0x34] sm:$0x1] %v2654_v44  ;;  %v2645_v32 = vsel %vm4458_vm6, %v2571_v43, %v3059_v36  ;;  %v2496_v40 = vmax.f32 %v2488_v39, 0.0 }
 0x18f   : > { %v2648_v15 = vsel %vm4467_vm7, %v2572_v53, %v3061_v38  ;;  %3048 = vst [vmem:[%s4353_s29 + $0x10] sm:$0xf] %v2627_v18  ;;  %3050 = vst [vmem:[%s4353_s29 + $0x14] sm:$0x1] %v2630_v55  ;;  %v2618_v56 = vsel %vm4458_vm6, %v2539_v46, %v3043_v4  ;;  %v2624_v58 = vsel %vm4467_vm7, %v2540_v48, %v3045_v42  ;;  %v2500_v59 = vmax.f32 %v2492_v33, 0.0 }
 0x190   : > { %3060 = vst [vmem:[%s4353_s29 + $0x28] sm:$0xf] %v2645_v32  ;;  %3062 = vst [vmem:[%s4353_s29 + $0x2c] sm:$0x1] %v2648_v15  ;;  %v2397_v60 = vadd.f32 %v4424_v17, %v2383_v21  ;;  %v2401_v63 = vadd.f32 %v4424_v17, %v2387_v6  ;;  %v3080_v61 = vpack.c.bf16 %v2496_v40, %v2496_v40  ;;  %v3071_v17 = vld [vmem:[%s4353_s29 + $0x40] sm:$0xf] }
 0x191   : > { %3044 = vst [vmem:[%s4353_s29 + $0x8] sm:$0xf] %v2618_v56  ;;  %3046 = vst [vmem:[%s4353_s29 + $0xc] sm:$0x1] %v2624_v58  ;;  %v3084_v24 = vpack.c.bf16 %v2500_v59, %v2500_v59  ;;  %v3073_v6 = vld [vmem:[%s4353_s29 + $0x44] sm:$0x1] }
 0x192   : > { %v2487_v1 = vadd.f32 %v4443_v50, %v2397_v60  ;;  %v2491_v2 = vadd.f32 %v4447_v62, %v2401_v63  ;;  %v2558_v0 = vshrl.u32 %v3080_v61, 16  ;;  %v2561_v5 = vshll.u32 %v3080_v61, 16  ;;  %v3067_v33 = vld [vmem:[%s4353_s29 + $0x38] sm:$0xf]  ;;  %v3069_v21 = vld [vmem:[%s4353_s29 + $0x3c] sm:$0x1] }
 0x193   : > { %v2590_v45 = vshrl.u32 %v3084_v24, 16  ;;  %v2593_v57 = vshll.u32 %v3084_v24, 16 }
 0x194   : > { %v2495_v51 = vmax.f32 %v2487_v1, 0.0  ;;  %v2499_v14 = vmax.f32 %v2491_v2, 0.0  ;;  %v2560_v3 = vrot.slane %v2558_v0, 7 }
 0x195   : > { %v2592_v9 = vrot.slane %v2590_v45, 7 }
 0x196   : > { %v3079_v37 = vpack.c.bf16 %v2495_v51, %v2495_v51  ;;  %v3083_v50 = vpack.c.bf16 %v2499_v14, %v2499_v14  ;;  %v2563_v54 = vor.u32 %v2561_v5, %v2560_v3  ;;  %v2564_v62 = vrot.slane %v2560_v3, 4 }
 0x197   : > { %v2595_v10 = vor.u32 %v2593_v57, %v2592_v9  ;;  %v2596_v8 = vrot.slane %v2592_v9, 4 }
 0x198   : > { %v2550_v11 = vshrl.u32 %v3079_v37, 16  ;;  %v2582_v12 = vshrl.u32 %v3083_v50, 16  ;;  %v2639_v20 = vsel %vm4458_vm6, %v2563_v54, %v3055_v52  ;;  %v2642_v49 = vsel %vm4467_vm7, %v2564_v62, %v3057_v47 }
 0x199   : > { %v2663_v22 = vsel %vm4458_vm6, %v2595_v10, %v3071_v17  ;;  %v2666_v23 = vsel %vm4467_vm7, %v2596_v8, %v3073_v6  ;;  %3056 = vst [vmem:[%s4353_s29 + $0x20] sm:$0xf] %v2639_v20  ;;  %3058 = vst [vmem:[%s4353_s29 + $0x24] sm:$0x1] %v2642_v49  ;;  %v2553_v26 = vshll.u32 %v3079_v37, 16  ;;  %v2585_v31 = vshll.u32 %v3083_v50, 16 }
 0x19a   : > { %3072 = vst [vmem:[%s4353_s29 + $0x40] sm:$0xf] %v2663_v22  ;;  %3074 = vst [vmem:[%s4353_s29 + $0x44] sm:$0x1] %v2666_v23  ;;  %v2552_v25 = vrot.slane %v2550_v11, 7  ;;  %v2584_v30 = vrot.slane %v2582_v12, 7 }
 0x19c   : > { %v2555_v16 = vor.u32 %v2553_v26, %v2552_v25  ;;  %v2556_v27 = vrot.slane %v2552_v25, 4  ;;  %v2587_v35 = vor.u32 %v2585_v31, %v2584_v30  ;;  %v2588_v36 = vrot.slane %v2584_v30, 4 }
 0x19e   : > { %v2633_v38 = vsel %vm4458_vm6, %v2555_v16, %v3051_v28  ;;  %v2636_v39 = vsel %vm4467_vm7, %v2556_v27, %v3053_v19  ;;  %v2657_v41 = vsel %vm4458_vm6, %v2587_v35, %v3067_v33  ;;  %v2660_v34 = vsel %vm4467_vm7, %v2588_v36, %v3069_v21 }
 0x19f   : > { %3052 = vst [vmem:[%s4353_s29 + $0x18] sm:$0xf] %v2633_v38  ;;  %3054 = vst [vmem:[%s4353_s29 + $0x1c] sm:$0x1] %v2636_v39 }
 0x1a0   : > { %3068 = vst [vmem:[%s4353_s29 + $0x38] sm:$0xf] %v2657_v41  ;;  %3070 = vst [vmem:[%s4353_s29 + $0x3c] sm:$0x1] %v2660_v34 }
 0x1a1 PF: > { %s15_s20 = sadd.s32 1, %s3815_s20   ;;  %s4558_s18 = smov %s3811_s19 }
 0x1a2   : > { %p12_p5 = scmp.ge.s32.totalorder %s15_s20, 4   ;;  %s4559_s19 = smov %s4561_s21 }
 0x1a4   :  { %14 = sbr.rel (!%p12_p5) target bundleno = 2 (0x2), region = 83 }

// kernel: _lambda_.8
= control target key start
LH: loop header
LB: loop body
LE: loop exit
PB: predicated region body
PF: predicated region fallthrough
CT: control target
= control target key end

     0   :  { %s3660_s15 = smov 0   ;;  %s3662_s16 = smov 0   ;;  %s4306_s0 = inlined_call_operand.vmem [shape: bf16[2,176,128], index: 0, kind: input, shape index: {}]   ;;  %s4307_s1 = inlined_call_operand.vmem [shape: bf16[9,128,128], index: 1, kind: input, shape index: {}]   ;;  %s4308_s2 = inlined_call_operand.vmem [shape: f32[1,128], index: 2, kind: input, shape index: {}]   ;;  %s4309_s3 = inlined_call_operand.vmem [shape: f32[1,128], index: 3, kind: input, shape index: {}]   ;;  %s4310_s4 = inlined_call_operand.vmem [shape: bf16[2,11,16,128], index: 4, kind: output, shape index: {}]  }
   0x1   :  { %s3664_s17 = smov 0  }
   0x2 LB: > { %s26_s18 = sadd.s32 1, %s3628_s16  ;;  %p2601_p0 = scmp.ge.s32.totalorder %s3632_s17, 1  ;;  %s3632_s17 = sphi %s3664_s17, %s14_s17   ;;  %s3628_s16 = sphi %s3662_s16, %s4316_s16   ;;  %s3624_s15 = sphi %s3660_s15, %s4315_s15  }
   0x3   : > { %p28_p1 = scmp.ge.s32.totalorder %s26_s18, 2  ;;  %p176_p2 = scmp.lt.s32.totalorder %s3632_s17, 3 }
   0x5   : > { %s4318_s18 = smov (%p28_p1, %s26_s18), 0  ;;  %p177_p3 = pnand %p2601_p0, %p176_p2 }
   0x6   : > { %v3492_v0 = vld [vmem:[%s4307_s1 + $0x40] sm:$0xff] (!%p177_p3)   ;;  %p205_p4 = scmp.lt.s32.totalorder (!%p177_p3), %s3624_s15, 1  ;;  %v3494_v2 = vld [vmem:[%s4307_s1 + $0x48] sm:$0xff] (!%p177_p3)   ;;  %v3496_v4 = vld [vmem:[%s4307_s1 + $0x50] sm:$0xff] (!%p177_p3)   ;;  %vm336_vm0 = vsmask.f32 (!%p177_p3), 7424 }
   0x7   : > { %180 = sbr.rel (%p177_p3) target bundleno = 415 (0x19f), region = 36  ;;  %v3493_v1 = vld [vmem:[%s4307_s1 + $0x100] sm:$0xff] (!%p177_p3)   ;;  %3046 = vmatprep.subr.bf16.mxu1 (!%p177_p3), %v3492_v0  ;;  %v3495_v3 = vld [vmem:[%s4307_s1 + $0x108] sm:$0xff] (!%p177_p3)   ;;  %v3497_v5 = vld [vmem:[%s4307_s1 + $0x110] sm:$0xff] (!%p177_p3)   ;;  %vm716_vm1 = vcmask (!%p177_p3), 1046528   ;;  %vm2466_vm2 = vcmask (!%p177_p3), 1043456  }
   0x8   : > { %3174 = vmatprep.subr.bf16.mxu0 (!%p177_p3), %v3493_v1  ;;  %3047 = vmatpush3.bf16.msra.mxu1 (!%p177_p3), %v3492_v0  ;;  %v3498_v6 = vld [vmem:[%s4307_s1 + $0x58] sm:$0xff] (!%p177_p3)   ;;  %v3500_v8 = vld [vmem:[%s4307_s1 + $0x60] sm:$0xff] (!%p177_p3)   ;;  %v3502_v10 = vld [vmem:[%s4307_s1 + $0x68] sm:$0xff] (!%p177_p3)   ;;  %vm2467_vm3 = vsmask.f32 (!%p177_p3), 7938  ;;  %vm2472_vm4 = vcmask (!%p177_p3), 1040384  }
   0x9   : > { %3175 = vmatpush3.bf16.msra.mxu0 (!%p177_p3), %v3493_v1  ;;  %3048 = vmatprep.subr.bf16.mxu1 (!%p177_p3), %v3494_v2  ;;  %v3499_v7 = vld [vmem:[%s4307_s1 + $0x118] sm:$0xff] (!%p177_p3)   ;;  %v3501_v9 = vld [vmem:[%s4307_s1 + $0x120] sm:$0xff] (!%p177_p3)   ;;  %v3503_v11 = vld [vmem:[%s4307_s1 + $0x128] sm:$0xff] (!%p177_p3)   ;;  %vm2473_vm5 = vsmask.f32 (!%p177_p3), 256 }
   0xa   : > { %3176 = vmatprep.subr.bf16.mxu0 (!%p177_p3), %v3495_v3  ;;  %v3504_v17 = vld [vmem:[%s4307_s1 + $0x70] sm:$0xff] (!%p177_p3)   ;;  %v3506_v31 = vld [vmem:[%s4307_s1 + $0x78] sm:$0xff] (!%p177_p3)   ;;  %v3513_v44 = vld [vmem:[%s4307_s1] sm:$0xff] (!%p177_p3)  }
   0xb   : > { %v3505_v25 = vld [vmem:[%s4307_s1 + $0x130] sm:$0xff] (!%p177_p3)   ;;  %v3507_v40 = vld [vmem:[%s4307_s1 + $0x138] sm:$0xff] (!%p177_p3)   ;;  %v3515_v48 = vld [vmem:[%s4307_s1 + $0x140] sm:$0xff] (!%p177_p3)  }
   0xc   : > { %3049 = vmatpush3.bf16.msra.mxu1 (!%p177_p3), %v3494_v2  ;;  %v3516_v54 = vld [vmem:[%s4307_s1 + $0x8] sm:$0xff] (!%p177_p3)   ;;  %vm4215_vm6 = vmand (!%p177_p3), %vm2466_vm2, %vm2467_vm3 }
   0xd   : > { %3177 = vmatpush3.bf16.msra.mxu0 (!%p177_p3), %v3495_v3  ;;  %3050 = vmatprep.subr.bf16.mxu1 (!%p177_p3), %v3496_v4  ;;  %v3517_v0 = vld [vmem:[%s4307_s1 + $0x148] sm:$0xff] (!%p177_p3)   ;;  %vm4224_vm7 = vmand (!%p177_p3), %vm2472_vm4, %vm2473_vm5 }
   0xe   : > { %s4320_s15 = smov (!%p205_p4, %s3624_s15), 1  ;;  %3178 = vmatprep.subr.bf16.mxu0 %v3497_v5 }
   0xf   : > { %s3466_s9 = smul.u32 88, %s4320_s15 }
  0x10   : > { %3051 = vmatpush3.bf16.msra.mxu1 %v3496_v4 }
  0x11   : > { %3179 = vmatpush3.bf16.msra.mxu0 %v3497_v5  ;;  %3052 = vmatprep.subr.bf16.mxu1 %v3498_v6  ;;  %s3716_s20 = scalar_lea.vmem %s4306_s0, %s3466_s9  ;;  %s4168_s26 = scalar_lea.vmem %s4310_s4, %s3466_s9 }
  0x12   : > { %3180 = vmatprep.subr.bf16.mxu0 %v3499_v7  ;;  %v243_v12 = vld [vmem:[%s3716_s20] sm:$0xf]  ;;  %v3726_v13 = vld [vmem:[%s3716_s20 + $0x4] sm:$0xf]  ;;  %v3732_v15 = vld [vmem:[%s3716_s20 + $0x8] sm:$0xff]  }
  0x13   : > { %v3729_v14 = vcombine.low %v243_v12, %v3726_v13  ;;  %v3735_v16 = vld [vmem:[%s3716_s20 + $0x10] sm:$0xff]   ;;  %v1113_v18 = vld [vmem:[%s3716_s20 + $0x8] sm:$0xf]  ;;  %v3742_v19 = vld [vmem:[%s3716_s20 + $0xc] sm:$0xf]  ;;  %v345_v22 = vshll.u32 %v3732_v15, 16 }
  0x14   : > { %3053 = vmatpush3.bf16.msra.mxu1 %v3498_v6  ;;  %v2718_v23 = vcombine.low %v1113_v18, %v3742_v19  ;;  %v3749_v24 = vld [vmem:[%s3716_s20 + $0x10] sm:$0xff]   ;;  %v1198_v26 = vshll.u32 %v3735_v16, 16  ;;  %v349_v32 = vshrl.u32 %v3732_v15, 16  ;;  %v3761_v34 = vld [vmem:[%s3716_s20 + $0x18] sm:$0xff]   ;;  %v1202_v38 = vshrl.u32 %v3735_v16, 16  ;;  %v3782_v53 = vld [vmem:[%s3716_s20 + $0x20] sm:$0xff]  }
  0x15   : > { %3181 = vmatpush3.bf16.msra.mxu0 %v3499_v7  ;;  %3054 = vmatprep.subr.bf16.mxu1 %v3500_v8  ;;  %v338_v20 = vshrl.u32 %v3729_v14, 16  ;;  %v340_v21 = vshll.u32 %v3729_v14, 16  ;;  %v347_v28 = vrot.slane %v345_v22, 1  ;;  %v353_v33 = vshll.u32 %v3749_v24, 16  ;;  %v3779_v52 = vld [vmem:[%s3716_s20 + $0x18] sm:$0xff]   ;;  %v3789_v57 = vld [vmem:[%s3716_s20 + $0x20] sm:$0xff]  }
  0x16   : > { %3182 = vmatprep.subr.bf16.mxu0 %v3501_v9  ;;  %v1191_v29 = vshrl.u32 %v2718_v23, 16  ;;  %v1193_v30 = vshll.u32 %v2718_v23, 16  ;;  %v1200_v37 = vrot.slane %v1198_v26, 1  ;;  %v1206_v39 = vshll.u32 %v3761_v34, 16  ;;  %v3795_v62 = vld [vmem:[%s3716_s20 + $0x28] sm:$0xff]   ;;  %v3521_v7 = vld [vmem:[%s4307_s1 + $0x10] sm:$0xff]  }
  0x17   : > { %v342_v27 = vrot.slane %v340_v21, 1  ;;  %v355_v43 = vrot.slane %v353_v33, 1  ;;  %v357_v45 = vshrl.u32 %v3749_v24, 16  ;;  %v351_v47 = vor.u32 %v349_v32, %v347_v28  ;;  %v3523_v12 = vld [vmem:[%s4307_s1 + $0x150] sm:$0xff]   ;;  %v3813_v18 = vld [vmem:[%s3716_s20 + $0x28] sm:$0xff]   ;;  %v3524_v23 = vld [vmem:[%s4307_s1 + $0x18] sm:$0xff]  }
  0x18   : > { %3055 = vmatpush3.bf16.msra.mxu1 %v3500_v8  ;;  %v1195_v36 = vrot.slane %v1193_v30, 1  ;;  %v1210_v49 = vshrl.u32 %v3761_v34, 16  ;;  %v1204_v50 = vor.u32 %v1202_v38, %v1200_v37  ;;  %v1208_v51 = vrot.slane %v1206_v39, 1  ;;  %v3817_v21 = vld [vmem:[%s3716_s20 + $0x30] sm:$0xff]   ;;  %v3525_v33 = vld [vmem:[%s4307_s1 + $0x158] sm:$0xff]  }
  0x19   : > { %3183 = vmatpush3.bf16.msra.mxu0 %v3501_v9  ;;  %3056 = vmatprep.subr.bf16.mxu1 %v3502_v10  ;;  %v343_v35 = vor.u32 %v342_v27, %v338_v20  ;;  %v359_v55 = vor.u32 %v357_v45, %v355_v43  ;;  %v361_v56 = vshll.u32 %v3779_v52, 16  ;;  %v365_v58 = vshrl.u32 %v3779_v52, 16  ;;  %v3825_v27 = vld [vmem:[%s3716_s20 + $0x30] sm:$0xff]  }
  0x1a   : > { %3184 = vmatprep.subr.bf16.mxu0 %v3503_v11  ;;  %v1196_v42 = vor.u32 %v1195_v36, %v1191_v29  ;;  %v356_v59 = vsel %vm336_vm0, %v351_v47, %v355_v43  ;;  %v1212_v60 = vor.u32 %v1210_v49, %v1208_v51  ;;  %v1214_v61 = vshll.u32 %v3782_v53, 16  ;;  %v3849_v49 = vld [vmem:[%s3716_s20 + $0x38] sm:$0xff]  }
  0x1b   : > { %v348_v41 = vsel %vm336_vm0, %v343_v35, %v347_v28  ;;  %v1209_v63 = vsel %vm336_vm0, %v1204_v50, %v1208_v51  ;;  %v363_v1 = vrot.slane %v361_v56, 1  ;;  %v369_v2 = vshll.u32 %v3789_v57, 16  ;;  %v3532_v51 = vld [vmem:[%s4307_s1 + $0x28] sm:$0xff]  }
  0x1c   : > { %3057 = vmatpush3.bf16.msra.mxu1 %v3502_v10  ;;  %3062 = vmatprep.mubr.bf16.mxu1 %v348_v41  ;;  %v1201_v46 = vsel %vm336_vm0, %v1196_v42, %v1200_v37  ;;  %v1218_v3 = vshrl.u32 %v3782_v53, 16  ;;  %v1216_v4 = vrot.slane %v1214_v61, 1  ;;  %v1222_v5 = vshll.u32 %v3795_v62, 16  ;;  %v3836_v37 = vld [vmem:[%s3716_s20 + $0x38] sm:$0xff]   ;;  %v3529_v42 = vld [vmem:[%s4307_s1 + $0x20] sm:$0xff]  }
  0x1d   : > { %3185 = vmatpush3.bf16.msra.mxu0 %v3503_v11  ;;  %3058 = vmatprep.subr.bf16.mxu1 %v3504_v17  ;;  %v364_v6 = vsel %vm336_vm0, %v359_v55, %v363_v1  ;;  %v367_v9 = vor.u32 %v365_v58, %v363_v1  ;;  %v371_v10 = vrot.slane %v369_v2, 1  ;;  %v373_v20 = vshrl.u32 %v3789_v57, 16  ;;  %v3533_v58 = vld [vmem:[%s4307_s1 + $0x168] sm:$0xff]   ;;  %v3865_v61 = vld [vmem:[%s3716_s20 + $0x40] ss:$0 sps:$4 sm:$0x11]  }
  0x1e   : > { %3186 = vmatprep.subr.bf16.mxu0 %v3505_v25  ;;  %3190 = vmatprep.mubr.bf16.mxu0 %v1201_v46  ;;  %v1217_v8 = vsel %vm336_vm0, %v1212_v60, %v1216_v4  ;;  %v1224_v11 = vrot.slane %v1222_v5, 1  ;;  %v1226_v22 = vshrl.u32 %v3795_v62, 16  ;;  %v377_v26 = vshll.u32 %v3813_v18, 16 }
  0x1f   : > { %v372_v28 = vsel %vm336_vm0, %v367_v9, %v371_v10  ;;  %v1230_v30 = vshll.u32 %v3817_v21, 16  ;;  %v385_v36 = vshll.u32 %v3825_v27, 16  ;;  %v1234_v39 = vshrl.u32 %v3817_v21, 16 }
  0x20   : > { %3059 = vmatpush3.bf16.msra.mxu1 %v3504_v17  ;;  %v1220_v17 = vor.u32 %v1218_v3, %v1216_v4  ;;  %v1228_v29 = vor.u32 %v1226_v22, %v1224_v11  ;;  %v379_v35 = vrot.slane %v377_v26, 1  ;;  %v1238_v43 = vshll.u32 %v3836_v37, 16  ;;  %v3539_v22 = vld [vmem:[%s4307_s1 + $0x170] sm:$0xff]  }
  0x21   : > { %3187 = vmatpush3.bf16.msra.mxu0 %v3505_v25  ;;  %3060 = vmatprep.subr.bf16.mxu1 %v3506_v31  ;;  %v375_v25 = vor.u32 %v373_v20, %v371_v10  ;;  %v1232_v38 = vrot.slane %v1230_v30, 1  ;;  %v387_v41 = vrot.slane %v385_v36, 1  ;;  %v389_v50 = vshrl.u32 %v3825_v27, 16  ;;  %v3544_v36 = vld [vmem:[%s4307_s1 + $0x180] sm:$0xff]  }
  0x22   : > { %3188 = vmatprep.subr.bf16.mxu0 %v3507_v40  ;;  %v1225_v32 = vsel %vm336_vm0, %v1220_v17, %v1224_v11  ;;  %v1240_v47 = vrot.slane %v1238_v43, 1  ;;  %v1242_v55 = vshrl.u32 %v3836_v37, 16  ;;  %v393_v60 = vshll.u32 %v3849_v49, 16 }
  0x23   : > { %v1236_v46 = vor.u32 %v1234_v39, %v1232_v38  ;;  %v401_v5 = vshll.u32 %v3865_v61, 16  ;;  %v720_v39 = vrot.slane %v3749_v24, 1  ;;  %v724_v43 = vrot.slane %v3789_v57, 1 }
  0x24   : > { %3061 = vmatpush3.bf16.msra.mxu1 %v3506_v31  ;;  %v381_v31 = vshrl.u32 %v3813_v18, 16  ;;  %v1244_v1 = vor.u32 %v1242_v55, %v1240_v47  ;;  %v395_v4 = vrot.slane %v393_v60, 1  ;;  %v730_v55 = vrot.slane %v3849_v49, 1 }
  0x25   : > { %3189 = vmatpush3.bf16.msra.mxu0 %v3507_v40  ;;  %3078 = vmatprep.subr.bf16.mxu1 %v3513_v44  ;;  %v380_v40 = vsel %vm336_vm0, %v375_v25, %v379_v35  ;;  %v403_v10 = vrot.slane %v401_v5, 1  ;;  %v1443_v5 = vrot.slane %v3836_v37, 1 }
  0x26   : > { %3206 = vmatprep.subr.bf16.mxu0 %v3515_v48  ;;  %v383_v45 = vor.u32 %v381_v31, %v379_v35  ;;  %v3540_v31 = vld [vmem:[%s4307_s1 + $0x38] sm:$0xff]   ;;  %v1435_v35 = vrot.slane %v3761_v34, 1 }
  0x27   : > { %3063 = vmatmul.mubr.bf16.vlgmr.msra.gmra.mrb[0].mxu1 %v356_v59  ;;  %v391_v59 = vor.u32 %v389_v50, %v387_v41  ;;  %v1439_v50 = vrot.slane %v3795_v62, 1  ;;  %v3548_v62 = vld [vmem:[%s4307_s1 + $0x190] sm:$0xff]  }
  0x28   : > { %3191 = vmatmul.mubr.bf16.vlgmr.msra.gmra.mrb[0].mxu0 %v1209_v63  ;;  %3079 = vmatpush3.bf16.msra.mxu1 %v3513_v44  ;;  %v1233_v44 = vsel %vm336_vm0, %v1228_v29, %v1232_v38  ;;  %v388_v56 = vsel %vm336_vm0, %v383_v45, %v387_v41  ;;  %v397_v63 = vshrl.u32 %v3849_v49, 16  ;;  %v1433_v29 = vrot.slane %v3735_v16, 1  ;;  %v3543_v16 = vld [vmem:[%s4307_s1 + $0x80] sm:$0xff]  }
  0x29   : > { %3207 = vmatpush3.bf16.msra.mxu0 %v3515_v48  ;;  %3080 = vmatprep.subr.bf16.mxu1 %v3516_v54  ;;  %v3531_v48 = vld [vmem:[%s4307_s1 + $0x160] sm:$0xff]   ;;  %v718_v38 = vrot.slane %v3732_v15, 1  ;;  %v722_v41 = vrot.slane %v3779_v52, 1  ;;  %v726_v45 = vrot.slane %v3813_v18, 1 }
  0x2a   : > { %3208 = vmatprep.subr.bf16.mxu0 %v3517_v0  ;;  %3066 = vmatprep.mubr.bf16.mxu1 %v364_v6  ;;  %v399_v9 = vor.u32 %v397_v63, %v395_v4  ;;  %v1436_v34 = vsel %vm716_vm1, %v1433_v29, %v1435_v35 }
  0x2b   : > { %3194 = vmatprep.mubr.bf16.mxu0 %v1217_v8  ;;  %v396_v8 = vsel %vm336_vm0, %v391_v59, %v395_v4  ;;  %v695_v59 = vld [vmem:[%s3716_s20] sm:$0xe] }
  0x2c   : > { %3081 = vmatpush3.bf16.msra.mxu1 %v3516_v54  ;;  %v3856_v54 = vld [vmem:[%s3716_s20 + $0x40] sm:$0xff]   ;;  %v2661_v63 = vcombine.low %v695_v59, %v3726_v13  ;;  %v3550_v13 = vld [vmem:[%s4307_s1 + $0x198] sm:$0xff]  }
  0x2d   : > { %3209 = vmatpush3.bf16.msra.mxu0 %v3517_v0  ;;  %3082 = vmatprep.subr.bf16.mxu1 %v3521_v7  ;;  %v1241_v0 = vsel %vm336_vm0, %v1236_v46, %v1240_v47  ;;  %v1246_v2 = vshll.u32 %v3856_v54, 16  ;;  %v1250_v3 = vshrl.u32 %v3856_v54, 16  ;;  %v3925_v46 = vsel %vm716_vm1, %v722_v41, %v724_v43  ;;  %v3551_v4 = vld [vmem:[%s4307_s1 + $0xa0] sm:$0xff]  }
  0x2e   : > { %3210 = vmatprep.subr.bf16.mxu0 %v3523_v12  ;;  %v728_v47 = vrot.slane %v3825_v27, 1 }
  0x2f   : > { %3067 = vmatmul.mubr.bf16.gmra.mrb[4].mxu1 %v372_v28  ;;  %v1248_v6 = vrot.slane %v1246_v2, 1  ;;  %v404_v28 = vsel %vm336_vm0, %v399_v9, %v403_v10  ;;  %v717_v2 = vrot.slane %v2661_v63, 1  ;;  %v3553_v9 = vld [vmem:[%s4307_s1 + $0xa8] sm:$0xff]  }
  0x30   : > { %3195 = vmatmul.mubr.bf16.gmra.mrb[4].mxu0 %v1225_v32  ;;  %3083 = vmatpush3.bf16.msra.mxu1 %v3521_v7  ;;  %v3873_v7 = vld [vmem:[%s3716_s20 + $0x48] ss:$0 sps:$4 sm:$0x11]   ;;  %v3947_v60 = vsel %vm716_vm1, %v728_v47, %v730_v55 }
  0x31   : > { %3211 = vmatpush3.bf16.msra.mxu0 %v3523_v12  ;;  %3084 = vmatprep.subr.bf16.mxu1 %v3524_v23  ;;  %v1249_v11 = vsel %vm336_vm0, %v1244_v1, %v1248_v6  ;;  %v3537_v12 = vld [vmem:[%s4307_s1 + $0x30] sm:$0xff]   ;;  %v1252_v17 = vor.u32 %v1250_v3, %v1248_v6  ;;  %v1254_v20 = vshll.u32 %v3873_v7, 16  ;;  %v3549_v1 = vld [vmem:[%s4307_s1 + $0x98] sm:$0xff]   ;;  %v719_v3 = vsel %vm716_vm1, %v717_v2, %v718_v38 }
  0x32   : > { %3212 = vmatprep.subr.bf16.mxu0 %v3525_v33  ;;  %3070 = vmatprep.mubr.bf16.mxu1 %v380_v40  ;;  %v1437_v40 = vrot.slane %v3782_v53, 1  ;;  %v3546_v53 = vld [vmem:[%s4307_s1 + $0x188] sm:$0xff]   ;;  %v1445_v6 = vrot.slane %v3856_v54, 1  ;;  %v3555_v54 = vld [vmem:[%s4307_s1 + $0xb0] sm:$0xff]   ;;  %v1447_v10 = vrot.slane %v3873_v7, 1 }
  0x33   : > { %3198 = vmatprep.mubr.bf16.mxu0 %v1233_v44  ;;  %v1256_v25 = vrot.slane %v1254_v20, 1  ;;  %v3920_v44 = vsel %vm716_vm1, %v720_v39, %v722_v41  ;;  %v3560_v7 = vld [vmem:[%s3716_s20 + $0x10] sm:$0xff]   ;;  %v3563_v20 = vld [vmem:[%s4307_s1 + $0x1c0] sm:$0xff]  }
  0x34   : > { %3085 = vmatpush3.bf16.msra.mxu1 %v3524_v23  ;;  %v1411_v23 = vld [vmem:[%s3716_s20 + $0x8] sm:$0xe]  ;;  %v1446_v37 = vsel %vm716_vm1, %v1443_v5, %v1445_v6  ;;  %v4086_v2 = vld [vmem:[%s3716_s20 + $0x30] sm:$0xff]  }
  0x35   : > { %3213 = vmatpush3.bf16.msra.mxu0 %v3525_v33  ;;  %3086 = vmatprep.subr.bf16.mxu1 %v3529_v42  ;;  %v2751_v26 = vcombine.low %v1411_v23, %v3742_v19  ;;  %v1257_v30 = vsel %vm336_vm0, %v1252_v17, %v1256_v25  ;;  %v3541_v19 = vld [vmem:[%s4307_s1 + $0x178] sm:$0xff]   ;;  %v3561_v17 = vld [vmem:[%s4307_s1 + $0xc0] sm:$0xff]   ;;  %v3565_v23 = vld [vmem:[%s4307_s1 + $0x1c8] sm:$0xff]  }
  0x36   : > { %3214 = vmatprep.subr.bf16.mxu0 %v3531_v48  ;;  %v3566_v25 = vld [vmem:[%s3716_s20 + $0x20] sm:$0xff]  }
  0x37   : > { %3071 = vmatmul.mubr.bf16.gmra.mrb[8].mxu1 %v388_v56  ;;  %v1432_v32 = vrot.slane %v2751_v26, 1  ;;  %v3938_v56 = vsel %vm716_vm1, %v726_v45, %v728_v47  ;;  %v3567_v26 = vld [vmem:[%s4307_s1 + $0xd0] sm:$0xff]   ;;  %v3580_v47 = vld [vmem:[%s3716_s20 + $0x48] sm:$0xff]  }
  0x38   : > { %3199 = vmatmul.mubr.bf16.gmra.mrb[8].mxu0 %v1241_v0  ;;  %3087 = vmatpush3.bf16.msra.mxu1 %v3529_v42  ;;  %v3913_v42 = vsel %vm716_vm1, %v718_v38, %v720_v39  ;;  %v3575_v38 = vld [vmem:[%s4307_s1 + $0x1e0] sm:$0xff]   ;;  %v3576_v39 = vld [vmem:[%s4307_s1 + $0xe8] sm:$0xff]  }
  0x39   : > { %3215 = vmatpush3.bf16.msra.mxu0 %v3531_v48  ;;  %3088 = vmatprep.subr.bf16.mxu1 %v3532_v51  ;;  %v1434_v33 = vsel %vm716_vm1, %v1432_v32, %v1433_v29  ;;  %v1438_v48 = vsel %vm716_vm1, %v1435_v35, %v1437_v40  ;;  %v3569_v29 = vld [vmem:[%s4307_s1 + $0x1d0] sm:$0xff]  }
  0x3a   : > { %3216 = vmatprep.subr.bf16.mxu0 %v3533_v58  ;;  %3074 = vmatprep.mubr.bf16.mxu1 %v396_v8  ;;  %v4027_v32 = vld [vmem:[%s3716_s20 + $0x14] sm:$0xf] }
  0x3b   : > { %3202 = vmatprep.mubr.bf16.mxu0 %v1249_v11  ;;  %v1448_v11 = vsel %vm716_vm1, %v1445_v6, %v1447_v10  ;;  %v1937_v6 = vshll.u32 %v4086_v2, 16 }
  0x3c   : > { %3089 = vmatpush3.bf16.msra.mxu1 %v3532_v51  ;;  %v3931_v51 = vsel %vm716_vm1, %v724_v43, %v726_v45  ;;  %v4059_v45 = vld [vmem:[%s3716_s20 + $0x20] sm:$0xff]  }
  0x3d   : > { %3217 = vmatpush3.bf16.msra.mxu0 %v3533_v58  ;;  %3090 = vmatprep.subr.bf16.mxu1 %v3537_v12  ;;  %v732_v58 = vrot.slane %v3865_v61, 1  ;;  %v1441_v61 = vrot.slane %v3817_v21, 1  ;;  %v1939_v10 = vrot.slane %v1937_v6, 1 }
  0x3e   : > { %3218 = vmatprep.subr.bf16.mxu0 %v3539_v22 }
  0x3f   : > { %3075 = vmatmul.mubr.bf16.gmra.mrb[12].mxu1 %v404_v28  ;;  %v3951_v0 = vsel %vm716_vm1, %v730_v55, %v732_v58  ;;  %v1442_v21 = vsel %vm716_vm1, %v1439_v50, %v1441_v61  ;;  %v1444_v8 = vsel %vm716_vm1, %v1441_v61, %v1443_v5  ;;  %v3568_v28 = vld [vmem:[%s3716_s20 + $0x28] sm:$0xff]   ;;  %v3582_v55 = vld [vmem:[%s4307_s1 + $0xf8] sm:$0xff]  }
  0x40   : > { %3203 = vmatmul.mubr.bf16.gmra.mrb[12].mxu0 %v1257_v30  ;;  %3091 = vmatpush3.bf16.msra.mxu1 %v3537_v12  ;;  %v3557_v12 = vld [vmem:[%s4307_s1 + $0xb8] sm:$0xff]   ;;  %v3590_v5 = vld [vmem:[%s4307_s1 + $0x208] sm:$0xff]  }
  0x41   : > { %3219 = vmatpush3.bf16.msra.mxu0 %v3539_v22  ;;  %3092 = vmatprep.subr.bf16.mxu1 %v3540_v31  ;;  %v3564_v22 = vld [vmem:[%s4307_s1 + $0xc8] sm:$0xff]   ;;  %v3570_v30 = vld [vmem:[%s4307_s1 + $0xd8] sm:$0xff]  }
  0x42   : > { %3220 = vmatprep.subr.bf16.mxu0 %v3541_v19  ;;  %3094 = vmatprep.mubr.bf16.mxu1 %v3729_v14  ;;  %v3545_v14 = vld [vmem:[%s4307_s1 + $0x88] sm:$0xff]   ;;  %v3583_v58 = vld [vmem:[%s4307_s1 + $0x1f8] sm:$0xff]  }
  0x43   : > { %3222 = vmatprep.mubr.bf16.mxu0 %v1434_v33  ;;  %v3572_v33 = vld [vmem:[%s3716_s20 + $0x30] sm:$0xff]  }
  0x44   : > { %3093 = vmatpush3.bf16.msra.mxu1 %v3540_v31  ;;  %v1828_v31 = vld [vmem:[%s3716_s20 + $0x10] sm:$0xf] }
  0x45   : > { %3221 = vmatpush3.bf16.msra.mxu0 %v3541_v19  ;;  %3110 = vmatprep.subr.bf16.mxu1 %v3543_v16  ;;  %v3571_v19 = vld [vmem:[%s4307_s1 + $0x1d8] sm:$0xff]   ;;  %v2808_v35 = vcombine.low %v1828_v31, %v4027_v32 }
  0x46   : > { %3238 = vmatprep.subr.bf16.mxu0 %v3544_v36 }
  0x47   : > { %3095 = vmatmul.mubr.bf16.vlgmr.msra.gmra.mrb[0].mxu1 %v3732_v15  ;;  %v3547_v15 = vld [vmem:[%s4307_s1 + $0x90] sm:$0xff]   ;;  %v1908_v41 = vshll.u32 %v2808_v35, 16  ;;  %v1906_v43 = vshrl.u32 %v2808_v35, 16 }
  0x48   : > { %3223 = vmatmul.mubr.bf16.vlgmr.msra.gmra.mrb[0].mxu0 %v1436_v34  ;;  %3111 = vmatpush3.bf16.msra.mxu1 %v3543_v16  ;;  %v3573_v16 = vld [vmem:[%s4307_s1 + $0xe0] sm:$0xff]   ;;  %v3577_v34 = vld [vmem:[%s4307_s1 + $0x1e8] sm:$0xff]  }
  0x49   : > { %3239 = vmatpush3.bf16.msra.mxu0 %v3544_v36  ;;  %3112 = vmatprep.subr.bf16.mxu1 %v3545_v14  ;;  %v3574_v36 = vld [vmem:[%s3716_s20 + $0x38] sm:$0xff]  }
  0x4a   : > { %3240 = vmatprep.subr.bf16.mxu0 %v3546_v53  ;;  %3098 = vmatprep.mubr.bf16.mxu1 %v3749_v24  ;;  %v1440_v24 = vsel %vm716_vm1, %v1437_v40, %v1439_v50  ;;  %v4047_v40 = vld [vmem:[%s3716_s20 + $0x18] sm:$0xff]  }
  0x4b   : > { %3226 = vmatprep.mubr.bf16.mxu0 %v1438_v48 }
  0x4c   : > { %3113 = vmatpush3.bf16.msra.mxu1 %v3545_v14  ;;  %v3578_v14 = vld [vmem:[%s3716_s20 + $0x40] sm:$0xff]  }
  0x4d   : > { %3241 = vmatpush3.bf16.msra.mxu0 %v3546_v53  ;;  %3114 = vmatprep.subr.bf16.mxu1 %v3547_v15  ;;  %v1910_v53 = vrot.slane %v1908_v41, 1  ;;  %v3602_v41 = vld [vmem:[%s4307_s1 + $0x228] sm:$0xff]  }
  0x4e   : > { %3242 = vmatprep.subr.bf16.mxu0 %v3548_v62 }
  0x4f   : > { %3099 = vmatmul.mubr.bf16.gmra.mrb[4].mxu1 %v3779_v52  ;;  %v3552_v52 = vld [vmem:[%s4307_s1 + $0x1a0] sm:$0xff]   ;;  %v1911_v48 = vor.u32 %v1910_v53, %v1906_v43 }
  0x50   : > { %3227 = vmatmul.mubr.bf16.gmra.mrb[4].mxu0 %v1440_v24  ;;  %3115 = vmatpush3.bf16.msra.mxu1 %v3547_v15  ;;  %v1917_v15 = vshrl.u32 %v4047_v40, 16 }
  0x51   : > { %3243 = vmatpush3.bf16.msra.mxu0 %v3548_v62  ;;  %3116 = vmatprep.subr.bf16.mxu1 %v3549_v1  ;;  %v3584_v62 = vld [vmem:[%s3716_s20 + $0x8] sm:$0xff]  }
  0x52   : > { %3244 = vmatprep.subr.bf16.mxu0 %v3550_v13  ;;  %3102 = vmatprep.mubr.bf16.mxu1 %v3789_v57  ;;  %v3554_v57 = vld [vmem:[%s4307_s1 + $0x1a8] sm:$0xff]  }
  0x53   : > { %3230 = vmatprep.mubr.bf16.mxu0 %v1442_v21  ;;  %v4090_v21 = vld [vmem:[%s3716_s20 + $0x38] sm:$0xff]  }
  0x54   : > { %3117 = vmatpush3.bf16.msra.mxu1 %v3549_v1  ;;  %v3589_v1 = vld [vmem:[%s4307_s1 + $0x200] sm:$0xff]  }
  0x55   : > { %3245 = vmatpush3.bf16.msra.mxu0 %v3550_v13  ;;  %3118 = vmatprep.subr.bf16.mxu1 %v3551_v4 }
  0x56   : > { %3246 = vmatprep.subr.bf16.mxu0 %v3552_v52 }
  0x57   : > { %3103 = vmatmul.mubr.bf16.gmra.mrb[8].mxu1 %v3813_v18  ;;  %v3556_v18 = vld [vmem:[%s4307_s1 + $0x1b0] sm:$0xff]  }
  0x58   : > { %3231 = vmatmul.mubr.bf16.gmra.mrb[8].mxu0 %v1444_v8  ;;  %3119 = vmatpush3.bf16.msra.mxu1 %v3551_v4  ;;  %v3591_v8 = vld [vmem:[%s3716_s20 + $0x18] sm:$0xff]  }
  0x59   : > { %3247 = vmatpush3.bf16.msra.mxu0 %v3552_v52  ;;  %3120 = vmatprep.subr.bf16.mxu1 %v3553_v9 }
  0x5a   : > { %3248 = vmatprep.subr.bf16.mxu0 %v3554_v57  ;;  %3106 = vmatprep.mubr.bf16.mxu1 %v3825_v27  ;;  %v3558_v27 = vld [vmem:[%s4307_s1 + $0x1b8] sm:$0xff]  }
  0x5b   : > { %3234 = vmatprep.mubr.bf16.mxu0 %v1446_v37  ;;  %v1945_v37 = vshll.u32 %v4090_v21, 16 }
  0x5c   : > { %3121 = vmatpush3.bf16.msra.mxu1 %v3553_v9 }
  0x5d   : > { %3249 = vmatpush3.bf16.msra.mxu0 %v3554_v57  ;;  %3122 = vmatprep.subr.bf16.mxu1 %v3555_v54  ;;  %v1941_v57 = vshrl.u32 %v4086_v2, 16 }
  0x5e   : > { %3250 = vmatprep.subr.bf16.mxu0 %v3556_v18 }
  0x5f   : > { %3107 = vmatmul.mubr.bf16.gmra.mrb[12].mxu1 %v3849_v49  ;;  %v3562_v49 = vld [vmem:[%s3716_s20 + $0x18] sm:$0xff]  }
  0x60   : > { %3235 = vmatmul.mubr.bf16.gmra.mrb[12].mxu0 %v1448_v11  ;;  %3123 = vmatpush3.bf16.msra.mxu1 %v3555_v54  ;;  %v4106_v11 = vld [vmem:[%s3716_s20 + $0x40] sm:$0xff]  }
  0x61   : > { %3251 = vmatpush3.bf16.msra.mxu0 %v3556_v18  ;;  %3124 = vmatprep.subr.bf16.mxu1 %v3557_v12  ;;  %v3595_v18 = vld [vmem:[%s4307_s1 + $0x210] sm:$0xff]  }
  0x62   : > { %3252 = vmatprep.subr.bf16.mxu0 %v3558_v27  ;;  %3126 = vmatprep.mubr.bf16.mxu1 %v719_v3 }
  0x63   : > { %3254 = vmatprep.mubr.bf16.mxu0 %v3560_v7  ;;  %v1947_v7 = vrot.slane %v1945_v37, 1 }
  0x64   : > { %3125 = vmatpush3.bf16.msra.mxu1 %v3557_v12  ;;  %v3593_v12 = vld [vmem:[%s3716_s20 + $0x20] sm:$0xff]  }
  0x65   : > { %3253 = vmatpush3.bf16.msra.mxu0 %v3558_v27  ;;  %3142 = vmatprep.subr.bf16.mxu1 %v3561_v17  ;;  %v1943_v27 = vor.u32 %v1941_v57, %v1939_v10 }
  0x66   : > { %3270 = vmatprep.subr.bf16.mxu0 %v3563_v20 }
  0x67   : > { %3127 = vmatmul.mubr.bf16.vlgmr.msra.gmra.mrb[0].mxu1 %v3913_v42  ;;  %v3579_v42 = vld [vmem:[%s4307_s1 + $0xf0] sm:$0xff]  }
  0x68   : > { %3255 = vmatmul.mubr.bf16.vlgmr.msra.gmra.mrb[0].mxu0 %v3562_v49  ;;  %3143 = vmatpush3.bf16.msra.mxu1 %v3561_v17  ;;  %v4110_v17 = vld [vmem:[%s3716_s20 + $0x48] sm:$0xff]   ;;  %v3596_v49 = vld [vmem:[%s4307_s1 + $0x218] sm:$0xff]  }
  0x69   : > { %3271 = vmatpush3.bf16.msra.mxu0 %v3563_v20  ;;  %3144 = vmatprep.subr.bf16.mxu1 %v3564_v22 }
  0x6a   : > { %3272 = vmatprep.subr.bf16.mxu0 %v3565_v23  ;;  %3130 = vmatprep.mubr.bf16.mxu1 %v3920_v44  ;;  %v1913_v44 = vshll.u32 %v4047_v40, 16 }
  0x6b   : > { %3258 = vmatprep.mubr.bf16.mxu0 %v3566_v25  ;;  %v3597_v25 = vld [vmem:[%s3716_s20 + $0x28] sm:$0xff]  }
  0x6c   : > { %3145 = vmatpush3.bf16.msra.mxu1 %v3564_v22  ;;  %v1915_v50 = vrot.slane %v1913_v44, 1  ;;  %v1949_v22 = vshrl.u32 %v4090_v21, 16 }
  0x6d   : > { %3273 = vmatpush3.bf16.msra.mxu0 %v3565_v23  ;;  %3146 = vmatprep.subr.bf16.mxu1 %v3567_v26  ;;  %v1953_v23 = vshll.u32 %v4106_v11, 16 }
  0x6e   : > { %3274 = vmatprep.subr.bf16.mxu0 %v3569_v29  ;;  %v1916_v59 = vsel %vm336_vm0, %v1911_v48, %v1915_v50  ;;  %v1919_v61 = vor.u32 %v1917_v15, %v1915_v50  ;;  %v3605_v48 = vld [vmem:[%s3716_s20 + $0x40] sm:$0xff]   ;;  %v2156_v15 = vrot.slane %v4090_v21, 1 }
  0x6f   : > { %3131 = vmatmul.mubr.bf16.gmra.mrb[4].mxu1 %v3925_v46  ;;  %v3581_v46 = vld [vmem:[%s4307_s1 + $0x1f0] sm:$0xff]   ;;  %v1955_v31 = vrot.slane %v1953_v23, 1 }
  0x70   : > { %3259 = vmatmul.mubr.bf16.gmra.mrb[4].mxu0 %v3568_v28  ;;  %3147 = vmatpush3.bf16.msra.mxu1 %v3567_v26  ;;  %v1948_v26 = vsel %vm336_vm0, %v1943_v27, %v1947_v7  ;;  %v1957_v28 = vshrl.u32 %v4106_v11, 16 }
  0x71   : > { %3275 = vmatpush3.bf16.msra.mxu0 %v3569_v29  ;;  %3148 = vmatprep.subr.bf16.mxu1 %v3570_v30  ;;  %v1961_v29 = vshll.u32 %v4110_v17, 16 }
  0x72   : > { %3276 = vmatprep.subr.bf16.mxu0 %v3571_v19  ;;  %3134 = vmatprep.mubr.bf16.mxu1 %v3931_v51  ;;  %v4067_v51 = vld [vmem:[%s3716_s20 + $0x28] sm:$0xff]   ;;  %v1959_v35 = vor.u32 %v1957_v28, %v1955_v31 }
  0x73   : > { %3262 = vmatprep.mubr.bf16.mxu0 %v3572_v33  ;;  %v1929_v63 = vshll.u32 %v4067_v51, 16  ;;  %v1933_v52 = vshrl.u32 %v4067_v51, 16  ;;  %v4126_v33 = vld [vmem:[%s3716_s20 + $0x50] ss:$0 sps:$4 sm:$0x11]  }
  0x74   : > { %3149 = vmatpush3.bf16.msra.mxu1 %v3570_v30  ;;  %v1951_v30 = vor.u32 %v1949_v22, %v1947_v7 }
  0x75   : > { %3277 = vmatpush3.bf16.msra.mxu0 %v3571_v19  ;;  %3150 = vmatprep.subr.bf16.mxu1 %v3573_v16  ;;  %v1931_v3 = vrot.slane %v1929_v63, 1  ;;  %v3601_v19 = vld [vmem:[%s4307_s1 + $0x220] sm:$0xff]   ;;  %v2160_v63 = vrot.slane %v4110_v17, 1 }
  0x76   : > { %3278 = vmatprep.subr.bf16.mxu0 %v3575_v38 }
  0x77   : > { %3135 = vmatmul.mubr.bf16.gmra.mrb[8].mxu1 %v3938_v56  ;;  %v1921_v56 = vshll.u32 %v4059_v45, 16  ;;  %v1935_v54 = vor.u32 %v1933_v52, %v1931_v3 }
  0x78   : > { %3263 = vmatmul.mubr.bf16.gmra.mrb[8].mxu0 %v3574_v36  ;;  %3151 = vmatpush3.bf16.msra.mxu1 %v3573_v16  ;;  %v3599_v16 = vld [vmem:[%s3716_s20 + $0x30] sm:$0xff]   ;;  %v1963_v36 = vrot.slane %v1961_v29, 1 }
  0x79   : > { %3279 = vmatpush3.bf16.msra.mxu0 %v3575_v38  ;;  %3152 = vmatprep.subr.bf16.mxu1 %v3576_v39  ;;  %v1923_v24 = vrot.slane %v1921_v56, 1  ;;  %v1940_v20 = vsel %vm336_vm0, %v1935_v54, %v1939_v10  ;;  %v2126_v38 = vld [vmem:[%s3716_s20 + $0x10] sm:$0xe] }
  0x7a   : > { %3280 = vmatprep.subr.bf16.mxu0 %v3577_v34  ;;  %3138 = vmatprep.mubr.bf16.mxu1 %v3947_v60  ;;  %v1925_v60 = vshrl.u32 %v4059_v45, 16  ;;  %v2841_v43 = vcombine.low %v2126_v38, %v4027_v32  ;;  %v1964_v53 = vsel %vm336_vm0, %v1959_v35, %v1963_v36  ;;  %v2154_v32 = vrot.slane %v4086_v2, 1 }
  0x7b   : > { %3266 = vmatprep.mubr.bf16.mxu0 %v3578_v14  ;;  %v1924_v4 = vsel %vm336_vm0, %v1919_v61, %v1923_v24  ;;  %v1969_v14 = vshll.u32 %v4126_v33, 16  ;;  %v2152_v61 = vrot.slane %v4067_v51, 1 }
  0x7c   : > { %3153 = vmatpush3.bf16.msra.mxu1 %v3576_v39  ;;  %v1927_v13 = vor.u32 %v1925_v60, %v1923_v24  ;;  %v1956_v39 = vsel %vm336_vm0, %v1951_v30, %v1955_v31  ;;  %v2147_v50 = vrot.slane %v2841_v43, 1  ;;  %v2150_v60 = vrot.slane %v4059_v45, 1 }
  0x7d   : > { %3281 = vmatpush3.bf16.msra.mxu0 %v3577_v34  ;;  %3154 = vmatprep.subr.bf16.mxu1 %v3579_v42  ;;  %v1965_v34 = vshrl.u32 %v4110_v17, 16  ;;  %v2162_v45 = vrot.slane %v4126_v33, 1  ;;  %v4197_v33 = vld [vmem:[%s4308_s2] ss:$0 sm:$0xff] }
  0x7e   : > { %3282 = vmatprep.subr.bf16.mxu0 %v3581_v46  ;;  %v1932_v9 = vsel %vm336_vm0, %v1927_v13, %v1931_v3  ;;  %v2155_v13 = vsel %vm716_vm1, %v2152_v61, %v2154_v32  ;;  %v3634_v3 = vmov 0  }
  0x7f   : > { %3139 = vmatmul.mubr.bf16.gmra.mrb[12].mxu1 %v3951_v0  ;;  %v3587_v0 = vld [vmem:[%s3716_s20 + $0x10] sm:$0xff]   ;;  %v1967_v44 = vor.u32 %v1965_v34, %v1963_v36  ;;  %v2163_v51 = vsel %vm716_vm1, %v2160_v63, %v2162_v45  ;;  %221 = vst [vmem:[%s4168_s26] sm:$0xf] %v3634_v3  ;;  %222 = vst [vmem:[%s4168_s26 + $0x4] sm:$0xf] %v3634_v3 }
  0x80   : > { %3267 = vmatmul.mubr.bf16.gmra.mrb[12].mxu0 %v3580_v47  ;;  %3155 = vmatpush3.bf16.msra.mxu1 %v3579_v42  ;;  %v3603_v42 = vld [vmem:[%s3716_s20 + $0x38] sm:$0xff]   ;;  %v3607_v47 = vld [vmem:[%s4307_s1 + $0x230] sm:$0xff]   ;;  %225 = vst [vmem:[%s4168_s26 + $0x10] sm:$0xf] %v3634_v3  ;;  %226 = vst [vmem:[%s4168_s26 + $0x14] sm:$0xf] %v3634_v3 }
  0x81   : > { %3283 = vmatpush3.bf16.msra.mxu0 %v3581_v46  ;;  %3156 = vmatprep.subr.bf16.mxu1 %v3582_v55  ;;  %v1971_v46 = vrot.slane %v1969_v14, 1  ;;  %239 = vst [vmem:[%s4168_s26 + $0x48] sm:$0xf] %v3634_v3  ;;  %240 = vst [vmem:[%s4168_s26 + $0x4c] sm:$0xf] %v3634_v3 }
  0x82   : > { %3284 = vmatprep.subr.bf16.mxu0 %v3583_v58  ;;  %3158 = vmatprep.mubr.bf16.mxu1 %v3584_v62  ;;  %241 = vst [vmem:[%s4168_s26 + $0x50] sm:$0xf] %v3634_v3  ;;  %242 = vst [vmem:[%s4168_s26 + $0x54] sm:$0xf] %v3634_v3 }
  0x83   : > { %3286 = vmatprep.mubr.bf16.mxu0 %v1916_v59  ;;  %v1972_v56 = vsel %vm336_vm0, %v1967_v44, %v1971_v46  ;;  %v2158_v59 = vrot.slane %v4106_v11, 1  ;;  %223 = vst [vmem:[%s4168_s26 + $0x8] sm:$0xf] %v3634_v3  ;;  %224 = vst [vmem:[%s4168_s26 + $0xc] sm:$0xf] %v3634_v3 }
  0x84   : > { %3157 = vmatpush3.bf16.msra.mxu1 %v3582_v55  ;;  %v2148_v55 = vrot.slane %v4047_v40, 1  ;;  %v2157_v40 = vsel %vm716_vm1, %v2154_v32, %v2156_v15  ;;  %227 = vst [vmem:[%s4168_s26 + $0x18] sm:$0xf] %v3634_v3  ;;  %228 = vst [vmem:[%s4168_s26 + $0x1c] sm:$0xf] %v3634_v3 }
  0x85   : > { %3285 = vmatpush3.bf16.msra.mxu0 %v3583_v58  ;;  %3334 = vmatprep.subr.bf16.mxu1 %v3589_v1  ;;  %v3608_v58 = vld [vmem:[%s4307_s1 + $0x238] sm:$0xff]   ;;  %v2159_v24 = vsel %vm716_vm1, %v2156_v15, %v2158_v59  ;;  %v2161_v2 = vsel %vm716_vm1, %v2158_v59, %v2160_v63  ;;  %229 = vst [vmem:[%s4168_s26 + $0x20] sm:$0xf] %v3634_v3  ;;  %230 = vst [vmem:[%s4168_s26 + $0x24] sm:$0xf] %v3634_v3 }
  0x86   : > { %3302 = vmatprep.subr.bf16.mxu0 %v3589_v1  ;;  %v2149_v62 = vsel %vm716_vm1, %v2147_v50, %v2148_v55  ;;  %231 = vst [vmem:[%s4168_s26 + $0x28] sm:$0xf] %v3634_v3  ;;  %232 = vst [vmem:[%s4168_s26 + $0x2c] sm:$0xf] %v3634_v3 }
  0x87   : > { %3159 = vmatmul.mubr.bf16.vlgmr.msra.gmra.mrb[0].mxu1 %v3587_v0  ;;  %v2153_v0 = vsel %vm716_vm1, %v2150_v60, %v2152_v61  ;;  %233 = vst [vmem:[%s4168_s26 + $0x30] sm:$0xf] %v3634_v3  ;;  %234 = vst [vmem:[%s4168_s26 + $0x34] sm:$0xf] %v3634_v3 }
  0x88   : > { %3287 = vmatmul.mubr.bf16.vlgmr.msra.gmra.mrb[0].mxu0 %v1924_v4  ;;  %3342 = vmatpush3.bf16.msra.mxu1 %v3589_v1  ;;  %235 = vst [vmem:[%s4168_s26 + $0x38] sm:$0xf] %v3634_v3  ;;  %236 = vst [vmem:[%s4168_s26 + $0x3c] sm:$0xf] %v3634_v3 }
  0x89   : > { %3303 = vmatpush3.bf16.msra.mxu0 %v3589_v1  ;;  %3335 = vmatprep.subr.bf16.mxu1 %v3590_v5  ;;  %v2151_v1 = vsel %vm716_vm1, %v2148_v55, %v2150_v60  ;;  %237 = vst [vmem:[%s4168_s26 + $0x40] sm:$0xf] %v3634_v3  ;;  %238 = vst [vmem:[%s4168_s26 + $0x44] sm:$0xf] %v3634_v3 }
  0x8a   : > { %3304 = vmatprep.subr.bf16.mxu0 %v3590_v5  ;;  %3162 = vmatprep.mubr.bf16.mxu1 %v3591_v8 }
  0x8b   : > { %3290 = vmatprep.mubr.bf16.mxu0 %v1932_v9 }
  0x8c   : > { %3343 = vmatpush3.bf16.msra.mxu1 %v3590_v5 }
  0x8d   : > { %3305 = vmatpush3.bf16.msra.mxu0 %v3590_v5  ;;  %3336 = vmatprep.subr.bf16.mxu1 %v3595_v18 }
  0x8e   : > { %3306 = vmatprep.subr.bf16.mxu0 %v3595_v18 }
  0x8f   : > { %3163 = vmatmul.mubr.bf16.gmra.mrb[4].mxu1 %v3593_v12 }
  0x90   : > { %3291 = vmatmul.mubr.bf16.gmra.mrb[4].mxu0 %v1940_v20  ;;  %3344 = vmatpush3.bf16.msra.mxu1 %v3595_v18 }
  0x91   : > { %3307 = vmatpush3.bf16.msra.mxu0 %v3595_v18  ;;  %3337 = vmatprep.subr.bf16.mxu1 %v3596_v49 }
  0x92   : > { %3308 = vmatprep.subr.bf16.mxu0 %v3596_v49  ;;  %3166 = vmatprep.mubr.bf16.mxu1 %v3597_v25 }
  0x93   : > { %3294 = vmatprep.mubr.bf16.mxu0 %v1948_v26 }
  0x94   : > { %3345 = vmatpush3.bf16.msra.mxu1 %v3596_v49 }
  0x95   : > { %3309 = vmatpush3.bf16.msra.mxu0 %v3596_v49  ;;  %3338 = vmatprep.subr.bf16.mxu1 %v3601_v19 }
  0x96   : > { %3310 = vmatprep.subr.bf16.mxu0 %v3601_v19 }
  0x97   : > { %3167 = vmatmul.mubr.bf16.gmra.mrb[8].mxu1 %v3599_v16 }
  0x98   : > { %3295 = vmatmul.mubr.bf16.gmra.mrb[8].mxu0 %v1956_v39  ;;  %3346 = vmatpush3.bf16.msra.mxu1 %v3601_v19  ;;  %v4202_v39 = vld [vmem:[%s4309_s3] ss:$0 sm:$0xff] }
  0x99   : > { %3311 = vmatpush3.bf16.msra.mxu0 %v3601_v19  ;;  %3339 = vmatprep.subr.bf16.mxu1 %v3602_v41 }
  0x9a   : > { %3312 = vmatprep.subr.bf16.mxu0 %v3602_v41  ;;  %3170 = vmatprep.mubr.bf16.mxu1 %v3603_v42 }
  0x9b   : > { %3298 = vmatprep.mubr.bf16.mxu0 %v1964_v53 }
  0x9c   : > { %3347 = vmatpush3.bf16.msra.mxu1 %v3602_v41 }
  0x9d   : > { %3313 = vmatpush3.bf16.msra.mxu0 %v3602_v41  ;;  %3340 = vmatprep.subr.bf16.mxu1 %v3607_v47 }
  0x9e   : > { %3314 = vmatprep.subr.bf16.mxu0 %v3607_v47 }
  0x9f   : > { %3171 = vmatmul.mubr.bf16.gmra.mrb[12].mxu1 %v3605_v48 }
  0xa0   : > { %3299 = vmatmul.mubr.bf16.gmra.mrb[12].mxu0 %v1972_v56  ;;  %3348 = vmatpush3.bf16.msra.mxu1 %v3607_v47 }
  0xa1   : > { %3315 = vmatpush3.bf16.msra.mxu0 %v3607_v47  ;;  %3341 = vmatprep.subr.bf16.mxu1 %v3608_v58 }
  0xa2   : > { %3316 = vmatprep.subr.bf16.mxu0 %v3608_v58  ;;  %3318 = vmatprep.mubr.bf16.mxu0 %v2149_v62 }
  0xa3   : > { %3326 = vmatprep.mubr.bf16.mxu1 %v2157_v40 }
  0xa4   : > { %3349 = vmatpush3.bf16.msra.mxu1 %v3608_v58 }
  0xa5   : > { %3317 = vmatpush3.bf16.msra.mxu0 %v3608_v58 }
  0xa7   : > { %3327 = vmatmul.mubr.bf16.vlgmr.msra.gmra.mrb[16].mxu1 %v2159_v24 }
  0xa8   : > { %3319 = vmatmul.mubr.bf16.vlgmr.msra.gmra.mrb[0].mxu0 %v2151_v1  ;;  %3330 = vmatprep.mubr.bf16.mxu1 %v2161_v2 }
  0xa9   : > { %3322 = vmatprep.mubr.bf16.mxu0 %v2153_v0 }
  0xaf   : > { %3331 = vmatmul.mubr.bf16.gmra.mrb[20].mxu1 %v2163_v51 }
  0xb0   : > { %3323 = vmatmul.mubr.bf16.gmra.mrb[4].mxu0 %v2155_v13 }
 0x15a   : > { %v3160_v21 = vpop.f32.mrb[0].mxu1 }
 0x15b   : > { %v1050_v4 = vpop.f32.mrb[1].mxu1 }
 0x15c   : > { %v3161_v5 = vpop.f32.mrb[2].mxu1 }
 0x15d   : > { %v1053_v52 = vpop.f32.mrb[3].mxu1 }
 0x162   : > { %v3164_v6 = vpop.f32.mrb[4].mxu1 }
 0x163   : > { %v4192_v8 = vpop.f32.mrb[5].mxu1 }
 0x164   : > { %v3165_v9 = vpop.f32.mrb[6].mxu1 }
 0x165   : > { %v1067_v57 = vpop.f32.mrb[7].mxu1 }
 0x16a   : > { %v3168_v37 = vpop.f32.mrb[8].mxu1 }
 0x16b   : > { %v3296_v54 = vpop.f32.mrb[8].mxu0  ;;  %v1078_v10 = vpop.f32.mrb[9].mxu1 }
 0x16c   : > { %v3354_v18 = vadd.f32 %v3296_v54, %v3168_v37  ;;  %v2091_v11 = vpop.f32.mrb[9].mxu0  ;;  %v3169_v12 = vpop.f32.mrb[10].mxu1 }
 0x16d   : > { %v3356_v27 = vadd.f32 %v2091_v11, %v1078_v10  ;;  %v3297_v7 = vpop.f32.mrb[10].mxu0  ;;  %v1081_v17 = vpop.f32.mrb[11].mxu1 }
 0x16e   : > { %v2094_v20 = vpop.f32.mrb[11].mxu0  ;;  %v2866_v7 = vld [vmem:[%s4168_s26 + $0x14] sm:$0x1] }
 0x172   : > { %v3172_v49 = vpop.f32.mrb[12].mxu1 }
 0x173   : > { %v3300_v22 = vpop.f32.mrb[12].mxu0  ;;  %v1092_v23 = vpop.f32.mrb[13].mxu1 }
 0x174   : > { %v3358_v25 = vadd.f32 %v3300_v22, %v3172_v49  ;;  %v2105_v26 = vpop.f32.mrb[13].mxu0  ;;  %v3173_v28 = vpop.f32.mrb[14].mxu1 }
 0x175   : > { %v3360_v29 = vadd.f32 %v2105_v26, %v1092_v23  ;;  %v3301_v30 = vpop.f32.mrb[14].mxu0  ;;  %v1095_v31 = vpop.f32.mrb[15].mxu1  ;;  %v2880_v26 = vld [vmem:[%s4168_s26 + $0x30] sm:$0xf]  ;;  %v2882_v28 = vld [vmem:[%s4168_s26 + $0x34] sm:$0x1] }
 0x176   : > { %v2108_v19 = vpop.f32.mrb[15].mxu0 }
 0x17a   : > { %v3328_v16 = vpop.f32.mrb[16].mxu1 }
 0x17b   : > { %v3320_v35 = vpop.f32.mrb[0].mxu0  ;;  %v3355_v36 = vadd.f32 %v3354_v18, %v3328_v16  ;;  %v2282_v38 = vpop.f32.mrb[17].mxu1 }
 0x17c   : > { %v3350_v41 = vadd.f32 %v3320_v35, %v3160_v21  ;;  %v2254_v34 = vpop.f32.mrb[1].mxu0  ;;  %v3357_v14 = vadd.f32 %v3356_v27, %v2282_v38  ;;  %v3329_v42 = vpop.f32.mrb[18].mxu1  ;;  %v2864_v27 = vld [vmem:[%s4168_s26 + $0x10] sm:$0xf]  ;;  %v2878_v38 = vld [vmem:[%s4168_s26 + $0x2c] sm:$0x1] }
 0x17d   : > { %v2328_v43 = vmul.f32 %v3355_v36, %v4197_v33  ;;  %v3351_v53 = vadd.f32 %v2254_v34, %v1050_v4  ;;  %v3321_v44 = vpop.f32.mrb[2].mxu0  ;;  %v2285_v46 = vpop.f32.mrb[19].mxu1  ;;  %v2876_v36 = vld [vmem:[%s4168_s26 + $0x28] sm:$0xf] }
 0x17e   : > { %v2324_v47 = vmul.f32 %v3350_v41, %v4197_v33  ;;  %v2327_v48 = vmul.f32 %v3357_v14, %v4197_v33  ;;  %v2257_v50 = vpop.f32.mrb[3].mxu0  ;;  %v2860_v42 = vld [vmem:[%s4168_s26 + $0x8] sm:$0xf] }
 0x17f   : > { %v2342_v55 = vadd.f32 %v4202_v39, %v2328_v43  ;;  %v2323_v32 = vmul.f32 %v3351_v53, %v4197_v33  ;;  %v2862_v43 = vld [vmem:[%s4168_s26 + $0xc] sm:$0x1] }
 0x180   : > { %v2338_v15 = vadd.f32 %v4202_v39, %v2324_v47  ;;  %v2341_v56 = vadd.f32 %v4202_v39, %v2327_v48 }
 0x181   : > { %v2350_v58 = vmax.f32 %v2342_v55, 0.0  ;;  %v2337_v62 = vadd.f32 %v4202_v39, %v2323_v32 }
 0x182   : > { %v2346_v40 = vmax.f32 %v2338_v15, 0.0  ;;  %v2349_v59 = vmax.f32 %v2341_v56, 0.0  ;;  %v3332_v60 = vpop.f32.mrb[20].mxu1 }
 0x183   : > { %v2899_v63 = vpack.c.bf16 %v2350_v58, %v2350_v58  ;;  %v2345_v61 = vmax.f32 %v2337_v62, 0.0  ;;  %v3324_v24 = vpop.f32.mrb[4].mxu0  ;;  %v3359_v1 = vadd.f32 %v3358_v25, %v3332_v60  ;;  %v2296_v2 = vpop.f32.mrb[21].mxu1 }
 0x184   : > { %v2895_v0 = vpack.c.bf16 %v2346_v40, %v2346_v40  ;;  %v2898_v45 = vpack.c.bf16 %v2349_v59, %v2349_v59  ;;  %v3352_v51 = vadd.f32 %v3324_v24, %v3164_v6  ;;  %v2268_v13 = vpop.f32.mrb[5].mxu0  ;;  %v3361_v3 = vadd.f32 %v3360_v29, %v2296_v2  ;;  %v3333_v21 = vpop.f32.mrb[22].mxu1 }
 0x185   : > { %v2426_v4 = vshrl.u32 %v2899_v63, 16  ;;  %v2429_v5 = vshll.u32 %v2899_v63, 16  ;;  %v2894_v52 = vpack.c.bf16 %v2345_v61, %v2345_v61  ;;  %v2330_v9 = vmul.f32 %v3359_v1, %v4197_v33  ;;  %v3325_v57 = vpop.f32.mrb[6].mxu0  ;;  %v2299_v37 = vpop.f32.mrb[23].mxu1 }
 0x186   : > { %v2394_v54 = vshrl.u32 %v2895_v0, 16  ;;  %v2397_v10 = vshll.u32 %v2895_v0, 16  ;;  %v2418_v18 = vshrl.u32 %v2898_v45, 16  ;;  %v2421_v11 = vshll.u32 %v2898_v45, 16  ;;  %v2271_v12 = vpop.f32.mrb[7].mxu0 }
 0x187   : > { %v2428_v17 = vrot.slane %v2426_v4, 7  ;;  %v2386_v20 = vshrl.u32 %v2894_v52, 16  ;;  %v2389_v49 = vshll.u32 %v2894_v52, 16  ;;  %v2326_v22 = vmul.f32 %v3352_v51, %v4197_v33  ;;  %v2872_v4 = vld [vmem:[%s4168_s26 + $0x20] sm:$0xf] }
 0x188   : > { %v2396_v23 = vrot.slane %v2394_v54, 7  ;;  %v2420_v29 = vrot.slane %v2418_v18, 7  ;;  %v2344_v30 = vadd.f32 %v4202_v39, %v2330_v9  ;;  %v3353_v31 = vadd.f32 %v2268_v13, %v4192_v8  ;;  %v2874_v9 = vld [vmem:[%s4168_s26 + $0x24] sm:$0x1] }
 0x189   : > { %v2431_v19 = vor.u32 %v2429_v5, %v2428_v17  ;;  %v2432_v16 = vrot.slane %v2428_v17, 4  ;;  %v2388_v35 = vrot.slane %v2386_v20, 7  ;;  %v2340_v41 = vadd.f32 %v4202_v39, %v2326_v22 }
 0x18a   : > { %v2399_v34 = vor.u32 %v2397_v10, %v2396_v23  ;;  %v2400_v14 = vrot.slane %v2396_v23, 4  ;;  %v2423_v53 = vor.u32 %v2421_v11, %v2420_v29  ;;  %v2424_v44 = vrot.slane %v2420_v29, 4  ;;  %v2868_v23 = vld [vmem:[%s4168_s26 + $0x18] sm:$0xf]  ;;  %v2870_v29 = vld [vmem:[%s4168_s26 + $0x1c] sm:$0x1] }
 0x18b   : > { %v2503_v8 = vsel %vm4215_vm6, %v2431_v19, %v2880_v26  ;;  %v2506_v46 = vsel %vm4224_vm7, %v2432_v16, %v2882_v28  ;;  %v2391_v47 = vor.u32 %v2389_v49, %v2388_v35  ;;  %v2392_v48 = vrot.slane %v2388_v35, 4 }
 0x18c   : > { %v2479_v50 = vsel %vm4215_vm6, %v2399_v34, %v2864_v27  ;;  %v2482_v55 = vsel %vm4224_vm7, %v2400_v14, %v2866_v7  ;;  %2881 = vst [vmem:[%s4168_s26 + $0x30] sm:$0xf] %v2503_v8  ;;  %2883 = vst [vmem:[%s4168_s26 + $0x34] sm:$0x1] %v2506_v46  ;;  %v2497_v32 = vsel %vm4215_vm6, %v2423_v53, %v2876_v36  ;;  %v2348_v62 = vmax.f32 %v2340_v41, 0.0 }
 0x18d   : > { %v2500_v15 = vsel %vm4224_vm7, %v2424_v44, %v2878_v38  ;;  %2865 = vst [vmem:[%s4168_s26 + $0x10] sm:$0xf] %v2479_v50  ;;  %2867 = vst [vmem:[%s4168_s26 + $0x14] sm:$0x1] %v2482_v55  ;;  %v2470_v56 = vsel %vm4215_vm6, %v2391_v47, %v2860_v42  ;;  %v2476_v58 = vsel %vm4224_vm7, %v2392_v48, %v2862_v43  ;;  %v2352_v40 = vmax.f32 %v2344_v30, 0.0 }
 0x18e   : > { %2877 = vst [vmem:[%s4168_s26 + $0x28] sm:$0xf] %v2497_v32  ;;  %2879 = vst [vmem:[%s4168_s26 + $0x2c] sm:$0x1] %v2500_v15  ;;  %v2325_v59 = vmul.f32 %v3353_v31, %v4197_v33  ;;  %v2329_v60 = vmul.f32 %v3361_v3, %v4197_v33  ;;  %v2897_v63 = vpack.c.bf16 %v2348_v62, %v2348_v62  ;;  %v2888_v33 = vld [vmem:[%s4168_s26 + $0x40] sm:$0xf] }
 0x18f   : > { %2861 = vst [vmem:[%s4168_s26 + $0x8] sm:$0xf] %v2470_v56  ;;  %2863 = vst [vmem:[%s4168_s26 + $0xc] sm:$0x1] %v2476_v58  ;;  %v2901_v61 = vpack.c.bf16 %v2352_v40, %v2352_v40  ;;  %v2890_v3 = vld [vmem:[%s4168_s26 + $0x44] sm:$0x1] }
 0x190   : > { %v2339_v24 = vadd.f32 %v4202_v39, %v2325_v59  ;;  %v2343_v1 = vadd.f32 %v4202_v39, %v2329_v60  ;;  %v2410_v2 = vshrl.u32 %v2897_v63, 16  ;;  %v2413_v21 = vshll.u32 %v2897_v63, 16  ;;  %v2884_v30 = vld [vmem:[%s4168_s26 + $0x38] sm:$0xf]  ;;  %v2886_v31 = vld [vmem:[%s4168_s26 + $0x3c] sm:$0x1] }
 0x191   : > { %v2442_v0 = vshrl.u32 %v2901_v61, 16  ;;  %v2445_v52 = vshll.u32 %v2901_v61, 16 }
 0x192   : > { %v2347_v45 = vmax.f32 %v2339_v24, 0.0  ;;  %v2351_v51 = vmax.f32 %v2343_v1, 0.0  ;;  %v2412_v13 = vrot.slane %v2410_v2, 7 }
 0x193   : > { %v2444_v5 = vrot.slane %v2442_v0, 7 }
 0x194   : > { %v2896_v57 = vpack.c.bf16 %v2347_v45, %v2347_v45  ;;  %v2900_v37 = vpack.c.bf16 %v2351_v51, %v2351_v51  ;;  %v2415_v54 = vor.u32 %v2413_v21, %v2412_v13  ;;  %v2416_v39 = vrot.slane %v2412_v13, 4 }
 0x195   : > { %v2447_v10 = vor.u32 %v2445_v52, %v2444_v5  ;;  %v2448_v18 = vrot.slane %v2444_v5, 4 }
 0x196   : > { %v2402_v11 = vshrl.u32 %v2896_v57, 16  ;;  %v2434_v12 = vshrl.u32 %v2900_v37, 16  ;;  %v2491_v27 = vsel %vm4215_vm6, %v2415_v54, %v2872_v4  ;;  %v2494_v7 = vsel %vm4224_vm7, %v2416_v39, %v2874_v9 }
 0x197   : > { %v2515_v17 = vsel %vm4215_vm6, %v2447_v10, %v2888_v33  ;;  %v2518_v20 = vsel %vm4224_vm7, %v2448_v18, %v2890_v3  ;;  %2873 = vst [vmem:[%s4168_s26 + $0x20] sm:$0xf] %v2491_v27  ;;  %2875 = vst [vmem:[%s4168_s26 + $0x24] sm:$0x1] %v2494_v7  ;;  %v2405_v22 = vshll.u32 %v2896_v57, 16  ;;  %v2437_v28 = vshll.u32 %v2900_v37, 16 }
 0x198   : > { %2889 = vst [vmem:[%s4168_s26 + $0x40] sm:$0xf] %v2515_v17  ;;  %2891 = vst [vmem:[%s4168_s26 + $0x44] sm:$0x1] %v2518_v20  ;;  %v2404_v49 = vrot.slane %v2402_v11, 7  ;;  %v2436_v26 = vrot.slane %v2434_v12, 7 }
 0x19a   : > { %v2407_v19 = vor.u32 %v2405_v22, %v2404_v49  ;;  %v2408_v16 = vrot.slane %v2404_v49, 4  ;;  %v2439_v35 = vor.u32 %v2437_v28, %v2436_v26  ;;  %v2440_v36 = vrot.slane %v2436_v26, 4 }
 0x19c   : > { %v2485_v38 = vsel %vm4215_vm6, %v2407_v19, %v2868_v23  ;;  %v2488_v41 = vsel %vm4224_vm7, %v2408_v16, %v2870_v29  ;;  %v2509_v34 = vsel %vm4215_vm6, %v2439_v35, %v2884_v30  ;;  %v2512_v14 = vsel %vm4224_vm7, %v2440_v36, %v2886_v31 }
 0x19d   : > { %2869 = vst [vmem:[%s4168_s26 + $0x18] sm:$0xf] %v2485_v38  ;;  %2871 = vst [vmem:[%s4168_s26 + $0x1c] sm:$0x1] %v2488_v41 }
 0x19e   : > { %2885 = vst [vmem:[%s4168_s26 + $0x38] sm:$0xf] %v2509_v34  ;;  %2887 = vst [vmem:[%s4168_s26 + $0x3c] sm:$0x1] %v2512_v14 }
 0x19f PF: > { %s14_s17 = sadd.s32 1, %s3632_s17   ;;  %s4315_s15 = smov %s3628_s16 }
 0x1a0   : > { %p11_p5 = scmp.ge.s32.totalorder %s14_s17, 4   ;;  %s4316_s16 = smov %s4318_s18 }
 0x1a2   :  { %13 = sbr.rel (!%p11_p5) target bundleno = 2 (0x2), region = 75 }

</bundles_post_ra>
